<compile_context>
chip_gen: v7x
topology: tpu7x:2x2x1
jax: 0.10.0
libtpu: 0.0.40
codegen_flags: <defaults>
</compile_context>

<pallas_src>
import functools

import jax
import jax.numpy as jnp
from jax.experimental import pallas as pl
from jax.experimental.pallas import tpu as pltpu


_FP8_MAX = {
    jnp.dtype(jnp.float8_e4m3fn): 448.0,
    jnp.dtype(jnp.float8_e5m2): 57344.0,
}


# ----------------------------------------------------------------------------
# TPU generation helpers (tile sizes / MXU dtype / VMEM budget)
# ----------------------------------------------------------------------------
def _tpu_generation():
    try:
        kind = jax.devices()[0].device_kind.lower()
    except Exception:
        return 6
    if "v7" in kind:
        return 7
    if "v6" in kind:
        return 6
    if "v5" in kind:
        return 5
    return 6


def _fit_tile(pref, dim, floor=128):
    """Largest tile <= pref that divides dim (falls back to the full dim)."""
    if dim <= pref:
        return dim
    t = pref
    while t >= floor:
        if dim % t == 0:
            return t
        t //= 2
    return dim


def _default_tiles(M, N, K):
    gen = _tpu_generation()
    if gen >= 7:
        # v7x: fp8 MXU, 3.2 TB/s HBM -> ~310 FLOP/byte threshold; 512x512 gives 512.
        tm_p, tn_p, tk_p = 512, 512, 2048
    elif gen == 6:
        # v6e: ~650 FLOP/byte threshold; 512x1024 gives ~683 (lane-dense N).
        tm_p, tn_p, tk_p = 512, 1024, 2048
    else:
        # v5e: ~240 FLOP/byte threshold; 256x256 gives 256.
        tm_p, tn_p, tk_p = 256, 256, 1024
    tm = _fit_tile(tm_p, M)
    tn = _fit_tile(tn_p, N)
    tk = _fit_tile(tk_p, K)
    if gen >= 7:
        # Ensure at least 2 output tiles so both TensorCores get work.
        while (M // tm) * (N // tn) < 2:
            if tn >= tm and tn > 128:
                tn //= 2
            elif tm > 128:
                tm //= 2
            else:
                break
    return tm, tn, tk


def _mxu_input_dtype(fp8_dtype):
    # v7x MXU natively supports fp8 (e4m3) -> feed fp8 directly.
    # v5e / v6e (and e5m2 everywhere) -> bf16, exact for fp8 values.
    fp8_dtype = jnp.dtype(fp8_dtype)
    if _tpu_generation() >= 7 and fp8_dtype == jnp.dtype(jnp.float8_e4m3fn):
        return fp8_dtype
    return jnp.dtype(jnp.bfloat16)


def _vmem_limit_bytes():
    # v7x has 64 MiB physical VMEM per TC; v5e/v6e have 128 MiB.
    return (40 << 20) if _tpu_generation() >= 7 else (64 << 20)


def _as_col_vec(s, n):
    """Scalar or [n] vector -> [n, 1] f32 column."""
    s = jnp.asarray(s, jnp.float32)
    if s.ndim == 0:
        s = jnp.broadcast_to(s, (n,))
    return s.reshape(n, 1)


def _as_row_vec(s, n):
    """Scalar or [n] vector -> [1, n] f32 row."""
    s = jnp.asarray(s, jnp.float32)
    if s.ndim == 0:
        s = jnp.broadcast_to(s, (n,))
    return s.reshape(1, n)


# ----------------------------------------------------------------------------
# Prologue: cast_to_fp8_v2  (quantize once, reuse for every repeat)
# ----------------------------------------------------------------------------
def _quantize_fp8_kernel(x_ref, s_ref, o_ref, *, fp8_dtype, fp8_max):
    x = x_ref[...].astype(jnp.float32) * s_ref[...]
    o_ref[...] = jnp.clip(x, -fp8_max, fp8_max).astype(fp8_dtype)


def _quantize_fp8_sr_kernel(seed_ref, x_ref, s_ref, o_ref, *, fp8_dtype, fp8_max):
    # Stochastic rounding via the hardware PRNG (per-tile distinct seed).
    pltpu.prng_seed(seed_ref[0] + pl.program_id(0) * pl.num_programs(1) + pl.program_id(1))
    x = jnp.clip(x_ref[...].astype(jnp.float32) * s_ref[...], -fp8_max, fp8_max)
    bits = pltpu.prng_random_bits(x.shape)
    o_ref[...] = pltpu.stochastic_round(x, bits, target_dtype=fp8_dtype)


def quantize_fp8(x, scale, fp8_dtype, *, scale_axis=0, use_sr=False, seed=0,
                 tr=512, tc=2048):
    """Pallas port of torch.ops.hpu.cast_to_fp8_v2: q = clip(x * scale) -> fp8.

    `scale` is a scalar or a vector broadcast along `scale_axis`
    (0: per-row, 1: per-column — the latter is used when the operand has been
    pre-transposed into the GEMM-friendly [K, N] layout).
    """
    fp8_dtype = jnp.dtype(fp8_dtype)
    fp8_max = _FP8_MAX[fp8_dtype]
    R, C = x.shape
    tr = _fit_tile(tr, R, floor=8)
    tc = _fit_tile(tc, C)
    grid = (R // tr, C // tc)

    if scale_axis == 0:
        s = _as_col_vec(scale, R)
        s_block = (tr, 1)
        s_map = lambda i, k: (i, 0)
        s_map_sr = lambda i, k, seed_ref: (i, 0)
    else:
        s = _as_row_vec(scale, C)
        s_block = (1, tc)
        s_map = lambda i, k: (0, k)
        s_map_sr = lambda i, k, seed_ref: (0, k)

    cp = pltpu.CompilerParams(dimension_semantics=("parallel", "parallel"),
                              vmem_limit_bytes=_vmem_limit_bytes())
    out_shape = jax.ShapeDtypeStruct((R, C), fp8_dtype)

    if not use_sr:
        kernel = functools.partial(_quantize_fp8_kernel,
                                   fp8_dtype=fp8_dtype, fp8_max=fp8_max)
        return pl.pallas_call(
            kernel, out_shape=out_shape,
            grid_spec=pltpu.PrefetchScalarGridSpec(
                num_scalar_prefetch=0, grid=grid,
                in_specs=[pl.BlockSpec((tr, tc), lambda i, k: (i, k)),
                          pl.BlockSpec(s_block, s_map)],
                out_specs=pl.BlockSpec((tr, tc), lambda i, k: (i, k))),
            compiler_params=cp,
        )(x, s)

    # TODO(synk): pltpu.stochastic_round with an fp8 target dtype is not verified
    #             on every TPU generation; if it fails to lower, use use_sr=False.
    seeds = jnp.asarray(seed, jnp.int32).reshape((1,))
    kernel = functools.partial(_quantize_fp8_sr_kernel,
                               fp8_dtype=fp8_dtype, fp8_max=fp8_max)
    return pl.pallas_call(
        kernel, out_shape=out_shape,
        grid_spec=pltpu.PrefetchScalarGridSpec(
            num_scalar_prefetch=1, grid=grid,
            in_specs=[pl.BlockSpec((tr, tc), lambda i, k, seed_ref: (i, k)),
                      pl.BlockSpec(s_block, s_map_sr)],
            out_specs=pl.BlockSpec((tr, tc), lambda i, k, seed_ref: (i, k))),
        compiler_params=cp,
    )(seeds, x, s)


# ----------------------------------------------------------------------------
# GEMM:  out = (A_q @ B_q) * scale_inv_A[:,None] * scale_inv_B[None,:]
#        A_q: [M, K] fp8,  B_q: [K, N] fp8 (already the trans_B=True layout)
# ----------------------------------------------------------------------------
def _fp8_gemm_kfull_kernel(a_ref, b_ref, si1_ref, si2_ref, o_ref, *, mxu_dtype):
    # Single MXU dot over the full K — no VMEM accumulator round-trip.
    a = a_ref[...].astype(mxu_dtype)                       # [tm, K]
    b = b_ref[...].astype(mxu_dtype)                       # [K, tn]
    acc = jnp.dot(a, b, preferred_element_type=jnp.float32)
    # Per-row scale_inv factors commute out of the K contraction -> exact.
    o_ref[...] = (acc * si1_ref[...] * si2_ref[...]).astype(jnp.bfloat16)


def _fp8_gemm_ksplit_kernel(a_ref, b_ref, si1_ref, si2_ref, o_ref, acc_ref, *,
                            mxu_dtype):
    @pl.when(pl.program_id(2) == 0)
    def _():
        acc_ref[...] = jnp.zeros_like(acc_ref)

    a = a_ref[...].astype(mxu_dtype)                       # [tm, tk]
    b = b_ref[...].astype(mxu_dtype)                       # [tk, tn]
    acc_ref[...] += jnp.dot(a, b, preferred_element_type=jnp.float32)

    @pl.when(pl.program_id(2) == pl.num_programs(2) - 1)
    def _():
        o_ref[...] = (acc_ref[...] * si1_ref[...] * si2_ref[...]).astype(jnp.bfloat16)


def fp8_gemm(a_fp8, b_fp8, scale_inv1, scale_inv2, *, tm=None, tn=None, tk=None):
    """JAX/Pallas equivalent of torch.ops.hpu.fp8_gemm_v2 (trans_A=False, trans_B=True),
    with B already stored as [K, N] (transposed)."""
    M, K = a_fp8.shape
    K2, N = b_fp8.shape
    assert K == K2, (a_fp8.shape, b_fp8.shape)

    d_tm, d_tn, d_tk = _default_tiles(M, N, K)
    tm = d_tm if tm is None else _fit_tile(tm, M)
    tn = d_tn if tn is None else _fit_tile(tn, N)
    explicit_tk = tk is not None
    tk = d_tk if tk is None else _fit_tile(tk, K)
    # Collapse the reduction (one dot per output tile) when the full-K fp8
    # slabs fit comfortably in VMEM; exploits MRB accumulation on v7x.
    if not explicit_tk and K * (tm + tn) <= (4 << 20):
        tk = K
    assert M % tm == 0 and N % tn == 0 and K % tk == 0, ((M, N, K), (tm, tn, tk))

    si1 = _as_col_vec(scale_inv1, M)   # [M, 1]
    si2 = _as_row_vec(scale_inv2, N)   # [1, N]  (lane-dense)
    mxu_dtype = _mxu_input_dtype(a_fp8.dtype)

    if tk == K:
        kernel = functools.partial(_fp8_gemm_kfull_kernel, mxu_dtype=mxu_dtype)
        return pl.pallas_call(
            kernel,
            out_shape=jax.ShapeDtypeStruct((M, N), jnp.bfloat16),
            grid_spec=pltpu.PrefetchScalarGridSpec(
                num_scalar_prefetch=0,
                grid=(M // tm, N // tn),
                in_specs=[
                    pl.BlockSpec((tm, K), lambda i, j: (i, 0)),   # A slab (fp8)
                    pl.BlockSpec((K, tn), lambda i, j: (0, j)),   # B slab (fp8)
                    pl.BlockSpec((tm, 1), lambda i, j: (i, 0)),   # scale_inv A
                    pl.BlockSpec((1, tn), lambda i, j: (0, j)),   # scale_inv B
                ],
                out_specs=pl.BlockSpec((tm, tn), lambda i, j: (i, j)),
            ),
            compiler_params=pltpu.CompilerParams(
                dimension_semantics=("parallel", "parallel"),
                vmem_limit_bytes=_vmem_limit_bytes()),
        )(a_fp8, b_fp8, si1, si2)

    kernel = functools.partial(_fp8_gemm_ksplit_kernel, mxu_dtype=mxu_dtype)
    return pl.pallas_call(
        kernel,
        out_shape=jax.ShapeDtypeStruct((M, N), jnp.bfloat16),
        grid_spec=pltpu.PrefetchScalarGridSpec(
            num_scalar_prefetch=0,
            grid=(M // tm, N // tn, K // tk),
            in_specs=[
                pl.BlockSpec((tm, tk), lambda i, j, k: (i, k)),   # A tile (fp8)
                pl.BlockSpec((tk, tn), lambda i, j, k: (k, j)),   # B tile (fp8)
                pl.BlockSpec((tm, 1), lambda i, j, k: (i, 0)),    # scale_inv A
                pl.BlockSpec((1, tn), lambda i, j, k: (0, j)),    # scale_inv B
            ],
            out_specs=pl.BlockSpec((tm, tn), lambda i, j, k: (i, j)),
            scratch_shapes=[pltpu.VMEM((tm, tn), jnp.float32)],
        ),
        compiler_params=pltpu.CompilerParams(
            dimension_semantics=("parallel", "parallel", "arbitrary"),
            vmem_limit_bytes=_vmem_limit_bytes()),
    )(a_fp8, b_fp8, si1, si2)


# ----------------------------------------------------------------------------
# Whole forward under one jit: quantize once, run `repeats` GEMMs.
# ----------------------------------------------------------------------------
@functools.partial(jax.jit, static_argnames=(
    "rowwise1", "do_cast1", "use_sr1", "rowwise2", "do_cast2", "use_sr2",
    "fp8_dtype", "repeats"))
def _fp8_gemms_pipeline(x1, x1_fp8, x2, x2_fp8, s1, s2, si1, si2, seed, *,
                        rowwise1, do_cast1, use_sr1, rowwise2, do_cast2, use_sr2,
                        fp8_dtype, repeats):
    # rowwise vs per-tensor scales are handled uniformly by broadcasting.
    del rowwise1, rowwise2
    fp8_dtype = jnp.dtype(fp8_dtype)

    if do_cast1:
        a_q = quantize_fp8(x1, s1, fp8_dtype, scale_axis=0, use_sr=use_sr1, seed=seed)
    else:
        a_q = x1_fp8                                         # [M, K] fp8

    if do_cast2:
        # Quantize B straight into the GEMM-friendly [K, N] layout: the bf16
        # transpose is a one-time XLA op; every repeated GEMM then contracts
        # [tm,tk] x [tk,tn] with no per-step transpose of a packed fp8 tile.
        b_q = quantize_fp8(jnp.swapaxes(x2, 0, 1), s2, fp8_dtype, scale_axis=1,
                           use_sr=use_sr2, seed=seed + 1)
    else:
        b_q = jnp.swapaxes(x2_fp8, 0, 1)                     # [K, N] fp8

    outs = []
    for _ in range(repeats):
        # Identical calls may be CSE'd by XLA — results are identical either way.
        outs.append(fp8_gemm(a_q, b_q, si1, si2))
    return tuple(outs)


# ----------------------------------------------------------------------------
# Module ports
# ----------------------------------------------------------------------------
class FP8GEMM:
    """JAX port of the PyTorch FP8GEMM module."""

    def __init__(self, s1, s2, si1, si2):
        self.scale1 = jnp.asarray(s1, jnp.float32)
        self.scale2 = jnp.asarray(s2, jnp.float32)
        self.scale_inv1 = jnp.asarray(si1, jnp.float32)
        self.scale_inv2 = jnp.asarray(si2, jnp.float32)

    def forward(self, x1, x1_fp8, rowwise1, do_cast1, use_sr1,
                x2, x2_fp8, rowwise2, do_cast2, use_sr2, fp8_dtype):
        outs = _fp8_gemms_pipeline(
            x1, x1_fp8, x2, x2_fp8,
            self.scale1, self.scale2, self.scale_inv1, self.scale_inv2, 0,
            rowwise1=bool(rowwise1), do_cast1=bool(do_cast1), use_sr1=bool(use_sr1),
            rowwise2=bool(rowwise2), do_cast2=bool(do_cast2), use_sr2=bool(use_sr2),
            fp8_dtype=jnp.dtype(fp8_dtype), repeats=1)
        return outs[0]


class FP8GEMMS:
    """JAX port of the PyTorch FP8GEMMS module (`repeats` identical fp8 GEMMs)."""

    def __init__(self, s1, s2, si1, si2, repeats, x1, x1_fp8, x2, x2_fp8):
        self.fp8_gemm = FP8GEMM(s1=s1, s2=s2, si1=si1, si2=si2)
        self.repeats = repeats
        self.x1s = None if x1 is None else [x1 for _ in range(repeats)]
        self.x2s = None if x2 is None else [x2 for _ in range(repeats)]
        self.x1_fp8s = None if x1_fp8 is None else [x1_fp8 for _ in range(repeats)]
        self.x2_fp8s = None if x2_fp8 is None else [x2_fp8 for _ in range(repeats)]

    def forward(self, rowwise1, do_cast1, use_sr1, rowwise2, do_cast2, use_sr2, fp8_dtype):
        x1 = self.x1s[0] if do_cast1 else None
        x2 = self.x2s[0] if do_cast2 else None
        x1_fp8 = None if do_cast1 else self.x1_fp8s[0]
        x2_fp8 = None if do_cast2 else self.x2_fp8s[0]
        outs = _fp8_gemms_pipeline(
            x1, x1_fp8, x2, x2_fp8,
            self.fp8_gemm.scale1, self.fp8_gemm.scale2,
            self.fp8_gemm.scale_inv1, self.fp8_gemm.scale_inv2, 0,
            rowwise1=bool(rowwise1), do_cast1=bool(do_cast1), use_sr1=bool(use_sr1),
            rowwise2=bool(rowwise2), do_cast2=bool(do_cast2), use_sr2=bool(use_sr2),
            fp8_dtype=jnp.dtype(fp8_dtype), repeats=self.repeats)
        return list(outs)


# ----------------------------------------------------------------------------
# Demo / self-check
# ----------------------------------------------------------------------------
if __name__ == "__main__":
    key = jax.random.PRNGKey(0)
    k1, k2 = jax.random.split(key, 2)

    # Small, MXU-aligned shapes:  A = [M, K],  B = [N, K]  ->  out = [M, N] bf16
    M, K, N = 256, 512, 256
    x1 = jax.random.normal(k1, (M, K), dtype=jnp.float32).astype(jnp.bfloat16)
    x2 = jax.random.normal(k2, (N, K), dtype=jnp.float32).astype(jnp.bfloat16)

    # Deterministic "parameters": rowwise scale for A, per-tensor scale for B.
    s1 = 1.0 + 0.25 * jnp.cos(jnp.arange(M, dtype=jnp.float32))   # [M] rowwise scale
    si1 = 1.0 / s1                                                # [M] rowwise scale_inv
    s2 = jnp.float32(2.0)                                         # per-tensor scale
    si2 = jnp.float32(0.5)                                        # per-tensor scale_inv
    fp8_dtype = jnp.float8_e4m3fn

    model = FP8GEMMS(s1=s1, s2=s2, si1=si1, si2=si2, repeats=3,
                     x1=x1, x1_fp8=None, x2=x2, x2_fp8=None)

    outs = model.forward(rowwise1=True, do_cast1=True, use_sr1=False,
                         rowwise2=False, do_cast2=True, use_sr2=False,
                         fp8_dtype=fp8_dtype)
    outs = [jax.block_until_ready(o) for o in outs]

    assert len(outs) == 3
    assert outs[0].shape == (M, N) and outs[0].dtype == jnp.bfloat16

    # Pure-JAX reference (quantize, fp8-value dot, scale_inv epilogue).
    a_q = jnp.clip(x1.astype(jnp.float32) * s1[:, None], -448.0, 448.0).astype(fp8_dtype)
    b_q_nk = jnp.clip(x2.astype(jnp.float32) * s2, -448.0, 448.0).astype(fp8_dtype)
    expected = (jnp.dot(a_q.astype(jnp.float32), b_q_nk.astype(jnp.float32).T,
                        precision=jax.lax.Precision.HIGHEST)
                * si1[:, None] * si2).astype(jnp.bfloat16)
    diff = float(jnp.max(jnp.abs(outs[0].astype(jnp.float32) - expected.astype(jnp.float32))))
    assert diff < 2.5, diff
    for o in outs[1:]:
        d = float(jnp.max(jnp.abs(o.astype(jnp.float32) - outs[0].astype(jnp.float32))))
        assert d == 0.0, d

    # Also exercise the K-tiled accumulator path (forced tk < K).
    b_q_kn = jnp.clip(x2.astype(jnp.float32).T * s2, -448.0, 448.0).astype(fp8_dtype)
    out_split = jax.block_until_ready(fp8_gemm(a_q, b_q_kn, si1, si2, tk=256))
    diff2 = float(jnp.max(jnp.abs(out_split.astype(jnp.float32) - expected.astype(jnp.float32))))
    assert diff2 < 2.5, diff2

    print("KERNEL_OK")
</pallas_src>

<mosaic_0001>
module attributes {stable_mosaic.version = 11 : i64} {
  func.func @_quantize_fp8_kernel(%arg0: i32, %arg1: i32, %arg2: memref<512x256xbf16, #tpu.memory_space<vmem>>, %arg3: memref<1x256xf32, #tpu.memory_space<vmem>>, %arg4: memref<512x256xf8E4M3FN, #tpu.memory_space<vmem>>) attributes {dimension_semantics = [#tpu.dimension_semantics<parallel>, #tpu.dimension_semantics<parallel>], iteration_bounds = array<i64: 1, 1>, scalar_prefetch = 0 : i64, scratch_operands = 0 : i64, tpu.core_type = #tpu.core_type<tc>, window_params = [{transform_indices = @transform_0, window_bounds = array<i64: 512, 256>}, {transform_indices = @transform_1, window_bounds = array<i64: 1, 256>}, {transform_indices = @transform_2, window_bounds = array<i64: 512, 256>}]} {
    %c0 = arith.constant 0 : index
    %c0_0 = arith.constant 0 : index
    %0 = vector.load %arg2[%c0, %c0_0] : memref<512x256xbf16, #tpu.memory_space<vmem>>, vector<512x256xbf16>
    %1 = arith.extf %0 : vector<512x256xbf16> to vector<512x256xf32>
    %c0_1 = arith.constant 0 : index
    %c0_2 = arith.constant 0 : index
    %2 = vector.load %arg3[%c0_1, %c0_2] : memref<1x256xf32, #tpu.memory_space<vmem>>, vector<1x256xf32>
    %3 = vector.broadcast %2 : vector<1x256xf32> to vector<512x256xf32>
    %4 = arith.mulf %1, %3 : vector<512x256xf32>
    %cst = arith.constant -4.480000e+02 : f32
    %cst_3 = arith.constant 4.480000e+02 : f32
    %5 = vector.broadcast %cst : f32 to vector<512x256xf32>
    %6 = arith.maximumf %5, %4 : vector<512x256xf32>
    %7 = vector.broadcast %cst_3 : f32 to vector<512x256xf32>
    %8 = arith.minimumf %7, %6 : vector<512x256xf32>
    %9 = arith.truncf %8 : vector<512x256xf32> to vector<512x256xf8E4M3FN>
    %c0_4 = arith.constant 0 : index
    %c0_5 = arith.constant 0 : index
    %10 = vector.load %arg4[%c0_4, %c0_5] : memref<512x256xf8E4M3FN, #tpu.memory_space<vmem>>, vector<512x256xf8E4M3FN>
    tpu.vector_store %arg4[%c0_4, %c0_5], %9 {strides = array<i32>} : memref<512x256xf8E4M3FN, #tpu.memory_space<vmem>>, vector<512x256xf8E4M3FN>,
    return
  }
  func.func @transform_0(%arg0: i32, %arg1: i32) -> (i32, i32) {
    %c0_i32 = arith.constant 0 : i32
    return %arg0, %arg1 : i32, i32
  }
  func.func @transform_1(%arg0: i32, %arg1: i32) -> (i32, i32) {
    %c0_i32 = arith.constant 0 : i32
    %c0_i32_0 = arith.constant 0 : i32
    return %c0_i32, %arg1 : i32, i32
  }
  func.func @transform_2(%arg0: i32, %arg1: i32) -> (i32, i32) {
    %c0_i32 = arith.constant 0 : i32
    return %arg0, %arg1 : i32, i32
  }
}

module attributes {stable_mosaic.version = 11 : i64} {
  func.func @_quantize_fp8_kernel(%arg0: i32, %arg1: i32, %arg2: memref<256x512xbf16, #tpu.memory_space<vmem>>, %arg3: memref<256x1xf32, #tpu.memory_space<vmem>>, %arg4: memref<256x512xf8E4M3FN, #tpu.memory_space<vmem>>) attributes {dimension_semantics = [#tpu.dimension_semantics<parallel>, #tpu.dimension_semantics<parallel>], iteration_bounds = array<i64: 1, 1>, scalar_prefetch = 0 : i64, scratch_operands = 0 : i64, tpu.core_type = #tpu.core_type<tc>, window_params = [{transform_indices = @transform_0, window_bounds = array<i64: 256, 512>}, {transform_indices = @transform_1, window_bounds = array<i64: 256, 1>}, {transform_indices = @transform_2, window_bounds = array<i64: 256, 512>}]} {
    %c0 = arith.constant 0 : index
    %c0_0 = arith.constant 0 : index
    %0 = vector.load %arg2[%c0, %c0_0] : memref<256x512xbf16, #tpu.memory_space<vmem>>, vector<256x512xbf16>
    %1 = arith.extf %0 : vector<256x512xbf16> to vector<256x512xf32>
    %c0_1 = arith.constant 0 : index
    %c0_2 = arith.constant 0 : index
    %2 = vector.load %arg3[%c0_1, %c0_2] : memref<256x1xf32, #tpu.memory_space<vmem>>, vector<256x1xf32>
    %3 = vector.broadcast %2 : vector<256x1xf32> to vector<256x512xf32>
    %4 = arith.mulf %1, %3 : vector<256x512xf32>
    %cst = arith.constant -4.480000e+02 : f32
    %cst_3 = arith.constant 4.480000e+02 : f32
    %5 = vector.broadcast %cst : f32 to vector<256x512xf32>
    %6 = arith.maximumf %5, %4 : vector<256x512xf32>
    %7 = vector.broadcast %cst_3 : f32 to vector<256x512xf32>
    %8 = arith.minimumf %7, %6 : vector<256x512xf32>
    %9 = arith.truncf %8 : vector<256x512xf32> to vector<256x512xf8E4M3FN>
    %c0_4 = arith.constant 0 : index
    %c0_5 = arith.constant 0 : index
    %10 = vector.load %arg4[%c0_4, %c0_5] : memref<256x512xf8E4M3FN, #tpu.memory_space<vmem>>, vector<256x512xf8E4M3FN>
    tpu.vector_store %arg4[%c0_4, %c0_5], %9 {strides = array<i32>} : memref<256x512xf8E4M3FN, #tpu.memory_space<vmem>>, vector<256x512xf8E4M3FN>,
    return
  }
  func.func @transform_0(%arg0: i32, %arg1: i32) -> (i32, i32) {
    %c0_i32 = arith.constant 0 : i32
    return %arg0, %arg1 : i32, i32
  }
  func.func @transform_1(%arg0: i32, %arg1: i32) -> (i32, i32) {
    %c0_i32 = arith.constant 0 : i32
    %c0_i32_0 = arith.constant 0 : i32
    return %arg0, %c0_i32 : i32, i32
  }
  func.func @transform_2(%arg0: i32, %arg1: i32) -> (i32, i32) {
    %c0_i32 = arith.constant 0 : i32
    return %arg0, %arg1 : i32, i32
  }
}

module attributes {stable_mosaic.version = 11 : i64} {
  func.func @_fp8_gemm_kfull_kernel(%arg0: i32, %arg1: i32, %arg2: memref<256x512xf8E4M3FN, #tpu.memory_space<vmem>>, %arg3: memref<512x256xf8E4M3FN, #tpu.memory_space<vmem>>, %arg4: memref<256x1xf32, #tpu.memory_space<vmem>>, %arg5: memref<1x256xf32, #tpu.memory_space<vmem>>, %arg6: memref<256x256xbf16, #tpu.memory_space<vmem>>) attributes {dimension_semantics = [#tpu.dimension_semantics<parallel>, #tpu.dimension_semantics<parallel>], iteration_bounds = array<i64: 1, 1>, scalar_prefetch = 0 : i64, scratch_operands = 0 : i64, tpu.core_type = #tpu.core_type<tc>, window_params = [{transform_indices = @transform_0, window_bounds = array<i64: 256, 512>}, {transform_indices = @transform_1, window_bounds = array<i64: 512, 256>}, {transform_indices = @transform_2, window_bounds = array<i64: 256, 1>}, {transform_indices = @transform_3, window_bounds = array<i64: 1, 256>}, {transform_indices = @transform_4, window_bounds = array<i64: 256, 256>}]} {
    %c0 = arith.constant 0 : index
    %c0_0 = arith.constant 0 : index
    %0 = vector.load %arg2[%c0, %c0_0] : memref<256x512xf8E4M3FN, #tpu.memory_space<vmem>>, vector<256x512xf8E4M3FN>
    %1 = arith.extf %0 : vector<256x512xf8E4M3FN> to vector<256x512xbf16>
    %c0_1 = arith.constant 0 : index
    %c0_2 = arith.constant 0 : index
    %2 = vector.load %arg3[%c0_1, %c0_2] : memref<512x256xf8E4M3FN, #tpu.memory_space<vmem>>, vector<512x256xf8E4M3FN>
    %3 = arith.extf %2 : vector<512x256xf8E4M3FN> to vector<512x256xbf16>
    %cst = arith.constant dense<0.000000e+00> : vector<256x256xf32>
    %4 = tpu.matmul %1, %3, %cst {dimension_numbers = #tpu.dot_dimension_numbers<[1], [0], [0], [1], [0, 0, 1, 1], [], []>} : vector<256x512xbf16>, vector<512x256xbf16>, vector<256x256xf32> -> vector<256x256xf32>
    %c0_3 = arith.constant 0 : index
    %c0_4 = arith.constant 0 : index
    %5 = vector.load %arg4[%c0_3, %c0_4] : memref<256x1xf32, #tpu.memory_space<vmem>>, vector<256x1xf32>
    %6 = vector.broadcast %5 : vector<256x1xf32> to vector<256x256xf32>
    %7 = arith.mulf %4, %6 : vector<256x256xf32>
    %c0_5 = arith.constant 0 : index
    %c0_6 = arith.constant 0 : index
    %8 = vector.load %arg5[%c0_5, %c0_6] : memref<1x256xf32, #tpu.memory_space<vmem>>, vector<1x256xf32>
    %9 = vector.broadcast %8 : vector<1x256xf32> to vector<256x256xf32>
    %10 = arith.mulf %7, %9 : vector<256x256xf32>
    %11 = arith.truncf %10 : vector<256x256xf32> to vector<256x256xbf16>
    %c0_7 = arith.constant 0 : index
    %c0_8 = arith.constant 0 : index
    %12 = vector.load %arg6[%c0_7, %c0_8] : memref<256x256xbf16, #tpu.memory_space<vmem>>, vector<256x256xbf16>
    tpu.vector_store %arg6[%c0_7, %c0_8], %11 {strides = array<i32>} : memref<256x256xbf16, #tpu.memory_space<vmem>>, vector<256x256xbf16>,
    return
  }
  func.func @transform_0(%arg0: i32, %arg1: i32) -> (i32, i32) {
    %c0_i32 = arith.constant 0 : i32
    %c0_i32_0 = arith.constant 0 : i32
    return %arg0, %c0_i32 : i32, i32
  }
  func.func @transform_1(%arg0: i32, %arg1: i32) -> (i32, i32) {
    %c0_i32 = arith.constant 0 : i32
    %c0_i32_0 = arith.constant 0 : i32
    return %c0_i32, %arg1 : i32, i32
  }
  func.func @transform_2(%arg0: i32, %arg1: i32) -> (i32, i32) {
    %c0_i32 = arith.constant 0 : i32
    %c0_i32_0 = arith.constant 0 : i32
    return %arg0, %c0_i32 : i32, i32
  }
  func.func @transform_3(%arg0: i32, %arg1: i32) -> (i32, i32) {
    %c0_i32 = arith.constant 0 : i32
    %c0_i32_0 = arith.constant 0 : i32
    return %c0_i32, %arg1 : i32, i32
  }
  func.func @transform_4(%arg0: i32, %arg1: i32) -> (i32, i32) {
    %c0_i32 = arith.constant 0 : i32
    return %arg0, %arg1 : i32, i32
  }
}

</mosaic_0001>

<bundles_post_ra>
// kernel: _fp8_gemms_pipeline.6
= control target key start
LH: loop header
LB: loop body
LE: loop exit
PB: predicated region body
PF: predicated region fallthrough
CT: control target
= control target key end

     0   :  { %7 = vsyncpa [#allocation3], 0  ;;  %s1393_s0 = inlined_call_operand.hbm [shape: bf16[512,256], index: 0, kind: input, shape index: {}]   ;;  %s1394_s1 = inlined_call_operand.hbm [shape: f32[1,256], index: 1, kind: input, shape index: {}]   ;;  %s1395_s2 = inlined_call_operand.hbm [shape: f8e4m3fn[512,256], index: 2, kind: output, shape index: {}]  }
   0x1   :  { %8 = vsyncpa [#allocation6], 0 }
   0x2   :  { %9 = vsyncpa [#allocation4], 0  ;;  %s1203_s9 = smov [#allocation2]   ;;  %s1131_s13 = scalar_lea.hbm %s1393_s0, 8192 }
   0x3   :  { %s15_s10 = sshll.u32 %s1203_s9, 4  ;;  %p1132_p0 = scmp.ne.s32.totalorder %s1393_s0, %s1131_s13  ;;  %s16_s10 = int_to_ptr.vmem [resolvable:$true] %s15_s10 }
   0x4   :  { %p1135_p1 = scmp.lt.u32.totalorder %s1131_s13, %s1393_s0 }
   0x6   :  { %p1137_p2 = pnand %p1135_p1, %p1132_p0 }
   0x8   :  { %1140 = shalt.err (!%p1137_p2)
}
   0x9   :  { %s1141_s18 = scalar_lea.vmem %s16_s10, 8192  ;;  %p1146_p4 = scmp.lt.s32.totalorder %s16_s10, %s16_s10 }
   0xa   :  { %p1142_p3 = scmp.ne.s32.totalorder %s16_s10, %s1141_s18  ;;  %p1147_p5 = scmp.lt.s32.totalorder %s1141_s18, %s1141_s18 }
   0xc   :  { %p1148_p6 = por %p1147_p5, %p1146_p4 }
   0xe   :  { %p1149_p7 = pnand %p1148_p6, %p1142_p3 }
  0x10   :  { %1152 = shalt.err (!%p1149_p7)
}
  0x11   :  { %s1204_s19 = smov 128   ;;  %s1205_s20 = smov 8  }
  0x12   :  { %21 = dma.hbm_to_vmem [thread:$0]  %s1393_s0, 8192, %s16_s10, [#allocation3], %s1204_s19, %s1204_s19, %s1205_s20  }
  0x13   :  { %s1206_s23 = smov [#allocation5]   ;;  %s1153_s27 = scalar_lea.hbm %s1394_s1, 32 }
  0x14   :  { %s28_s24 = sshll.u32 %s1206_s23, 4  ;;  %p1154_p8 = scmp.ne.s32.totalorder %s1394_s1, %s1153_s27  ;;  %s29_s24 = int_to_ptr.vmem [resolvable:$true] %s28_s24 }
  0x15   :  { %p1157_p9 = scmp.lt.u32.totalorder %s1153_s27, %s1394_s1 }
  0x17   :  { %p1159_p10 = pnand %p1157_p9, %p1154_p8 }
  0x19   :  { %1162 = shalt.err (!%p1159_p10)
}
  0x1a   :  { %s1163_s4 = scalar_lea.vmem %s29_s24, 32  ;;  %p1168_p12 = scmp.lt.s32.totalorder %s29_s24, %s29_s24 }
  0x1b   :  { %p1164_p11 = scmp.ne.s32.totalorder %s29_s24, %s1163_s4  ;;  %p1169_p13 = scmp.lt.s32.totalorder %s1163_s4, %s1163_s4 }
  0x1d   :  { %p1170_p0 = por %p1169_p13, %p1168_p12 }
  0x1f   :  { %p1171_p1 = pnand %p1170_p0, %p1164_p11 }
  0x21   :  { %1174 = shalt.err (!%p1171_p1)
}
  0x22   :  { %31 = dma.hbm_to_vmem [thread:$0]  %s1394_s1, 32, %s29_s24, [#allocation6]  }
  0x23   :  { %1197 = dma.done.wait [#allocation3], 8192  }
  0x24   :  { %1198 = vsyncadd [#allocation3], 4294959104 }
  0x25   :  { %1199 = dma.done.wait [#allocation6], 32  }
  0x26   :  { %1200 = vsyncadd [#allocation6], 4294967264  ;;  %v232_v0 = vlaneseq  ;;  %v38_v4 = vld [vmem:[#allocation2] sm:$0xff]  ;;  %v39_v5 = vld [vmem:[#allocation2 + $0x8] sm:$0xff]  ;;  %s1207_s1 = smov [#allocation7]  }
  0x27   :  { %v40_v6 = vld [vmem:[#allocation2 + $0x10] sm:$0xff]  ;;  %v41_v7 = vld [vmem:[#allocation2 + $0x18] sm:$0xff]  ;;  %v102_v8 = vunpack.c.l.bf16 %v38_v4  ;;  %v104_v9 = vunpack.c.l.bf16 %v39_v5  ;;  %v230_v11 = vld [vmem:[#allocation5] sm:$0x3]  ;;  %v103_v12 = vunpack.c.h.bf16 %v38_v4  ;;  %v105_v16 = vunpack.c.h.bf16 %v39_v5  ;;  %s983_s6 = sshll.u32 %s1207_s1, 4  ;;  %s984_s6 = int_to_ptr.vmem [resolvable:$true] %s983_s6 }
  0x28   :  { %v233_v1 = vshrl.u32 %v232_v0, 7  ;;  %v106_v10 = vunpack.c.l.bf16 %v40_v6  ;;  %v42_v13 = vld [vmem:[#allocation2 + $0x20] sm:$0xff]  ;;  %v108_v14 = vunpack.c.l.bf16 %v41_v7  ;;  %v107_v17 = vunpack.c.h.bf16 %v40_v6  ;;  %v43_v18 = vld [vmem:[#allocation2 + $0x28] sm:$0xff]  ;;  %v44_v31 = vld [vmem:[#allocation2 + $0x30] sm:$0xff]  ;;  %s1175_s7 = scalar_lea.vmem %s984_s6, 4096  ;;  %p1180_p3 = scmp.lt.s32.totalorder %s984_s6, %s984_s6 }
  0x29   :  { %v109_v19 = vunpack.c.h.bf16 %v41_v7  ;;  %v110_v21 = vunpack.c.l.bf16 %v42_v13  ;;  %v112_v22 = vunpack.c.l.bf16 %v43_v18  ;;  %v45_v32 = vld [vmem:[#allocation2 + $0x38] sm:$0xff]  ;;  %v114_v43 = vunpack.c.l.bf16 %v44_v31  ;;  %v46_v53 = vld [vmem:[#allocation2 + $0x40] sm:$0xff]  ;;  %v47_v58 = vld [vmem:[#allocation2 + $0x48] sm:$0xff]  ;;  %p1176_p2 = scmp.ne.s32.totalorder %s984_s6, %s1175_s7  ;;  %p1181_p4 = scmp.lt.s32.totalorder %s1175_s7, %s1175_s7 }
  0x2a   :  { %v234_v2 = vsub.s32 0, %v233_v1  ;;  %v238_v3 = vsub.s32 1, %v233_v1  ;;  %v116_v44 = vunpack.c.l.bf16 %v45_v32  ;;  %v111_v52 = vunpack.c.h.bf16 %v42_v13  ;;  %v48_v63 = vld [vmem:[#allocation2 + $0x50] sm:$0xff]  ;;  %v49_v0 = vld [vmem:[#allocation2 + $0x58] sm:$0xff] }
  0x2b   :  { %v113_v57 = vunpack.c.h.bf16 %v43_v18  ;;  %v115_v61 = vunpack.c.h.bf16 %v44_v31  ;;  %v117_v62 = vunpack.c.h.bf16 %v45_v32  ;;  %v118_v4 = vunpack.c.l.bf16 %v46_v53  ;;  %v51_v32 = vld [vmem:[#allocation2 + $0x68] sm:$0xff]  ;;  %p1182_p5 = por %p1181_p4, %p1180_p3 }
  0x2c   :  { %v1249_v15 = vrot.slane %v230_v11, %v234_v2  ;;  %v1251_v20 = vrot.slane %v230_v11, %v238_v3  ;;  %v122_v11 = vunpack.c.l.bf16 %v48_v63  ;;  %v123_v31 = vunpack.c.h.bf16 %v48_v63  ;;  %v54_v63 = vld [vmem:[#allocation2 + $0x80] sm:$0xff] }
  0x2d   :  { %p1183_p6 = pnand %p1182_p5, %p1176_p2 }
  0x2e   :  { %v242_v23 = vmul.f32 %v1249_v15, %v102_v8  ;;  %v244_v24 = vmul.f32 %v1249_v15, %v104_v9  ;;  %v246_v25 = vmul.f32 %v1249_v15, %v106_v10  ;;  %v248_v26 = vmul.f32 %v1249_v15, %v108_v14 }
  0x2f   :  { %v243_v27 = vmul.f32 %v1251_v20, %v103_v12  ;;  %v245_v28 = vmul.f32 %v1251_v20, %v105_v16  ;;  %v247_v29 = vmul.f32 %v1251_v20, %v107_v17  ;;  %v249_v30 = vmul.f32 %v1251_v20, %v109_v19 }
  0x30   :  { %v996_v33 = vclamps-f32 %v242_v23, 448.0  ;;  %v998_v34 = vclamps-f32 %v244_v24, 448.0  ;;  %v1000_v35 = vclamps-f32 %v246_v25, 448.0  ;;  %v1002_v36 = vclamps-f32 %v248_v26, 448.0 }
  0x31   :  { %v997_v37 = vclamps-f32 %v243_v27, 448.0  ;;  %v999_v38 = vclamps-f32 %v245_v28, 448.0  ;;  %v1001_v39 = vclamps-f32 %v247_v29, 448.0  ;;  %v1003_v40 = vclamps-f32 %v249_v30, 448.0  ;;  %v50_v27 = vld [vmem:[#allocation2 + $0x60] sm:$0xff] }
  0x32   :  { %v626_v41 = vpack.c.f32.eXmY %v996_v33, %v998_v34, 61788  ;;  %v630_v42 = vpack.c.f32.eXmY %v1000_v35, %v1002_v36, 61788  ;;  %v250_v47 = vmul.f32 %v1249_v15, %v110_v21  ;;  %v252_v48 = vmul.f32 %v1249_v15, %v112_v22 }
  0x33   :  { %v636_v45 = vpack.c.f32.eXmY %v997_v37, %v999_v38, 61788  ;;  %v640_v46 = vpack.c.f32.eXmY %v1001_v39, %v1003_v40, 61788  ;;  %v254_v50 = vmul.f32 %v1249_v15, %v114_v43  ;;  %v256_v51 = vmul.f32 %v1249_v15, %v116_v44  ;;  %v52_v37 = vld [vmem:[#allocation2 + $0x70] sm:$0xff]  ;;  %v53_v38 = vld [vmem:[#allocation2 + $0x78] sm:$0xff] }
  0x34   :  { %v634_v49 = vpack.c.b8 %v630_v42, %v626_v41  ;;  %v1004_v55 = vclamps-f32 %v250_v47, 448.0  ;;  %v1006_v56 = vclamps-f32 %v252_v48, 448.0  ;;  %v251_v2 = vmul.f32 %v1251_v20, %v111_v52 }
  0x35   :  { %v644_v54 = vpack.c.b8 %v640_v46, %v636_v45  ;;  %v1008_v59 = vclamps-f32 %v254_v50, 448.0  ;;  %v1010_v60 = vclamps-f32 %v256_v51, 448.0  ;;  %v253_v3 = vmul.f32 %v1251_v20, %v113_v57 }
  0x36   :  { %946 = vst [vmem:[#allocation7] sm:$0xff] %v634_v49  ;;  %v646_v1 = vpack.c.f32.eXmY %v1004_v55, %v1006_v56, 61788  ;;  %v255_v6 = vmul.f32 %v1251_v20, %v115_v61  ;;  %v257_v7 = vmul.f32 %v1251_v20, %v117_v62  ;;  %v120_v8 = vunpack.c.l.bf16 %v47_v58 }
  0x37   :  { %947 = vst [vmem:[#allocation7 + $0x8] sm:$0xff] %v644_v54  ;;  %v650_v5 = vpack.c.f32.eXmY %v1008_v59, %v1010_v60, 61788  ;;  %v1005_v9 = vclamps-f32 %v251_v2, 448.0  ;;  %v1007_v10 = vclamps-f32 %v253_v3, 448.0  ;;  %v124_v12 = vunpack.c.l.bf16 %v49_v0 }
  0x38   :  { %v1009_v14 = vclamps-f32 %v255_v6, 448.0  ;;  %v1011_v16 = vclamps-f32 %v257_v7, 448.0  ;;  %v258_v17 = vmul.f32 %v1249_v15, %v118_v4  ;;  %v260_v19 = vmul.f32 %v1249_v15, %v120_v8  ;;  %v55_v4 = vld [vmem:[#allocation2 + $0x88] sm:$0xff] }
  0x39   :  { %v654_v13 = vpack.c.b8 %v650_v5, %v646_v1  ;;  %v656_v18 = vpack.c.f32.eXmY %v1005_v9, %v1007_v10, 61788  ;;  %v262_v21 = vmul.f32 %v1249_v15, %v122_v11  ;;  %v264_v22 = vmul.f32 %v1249_v15, %v124_v12  ;;  %v56_v5 = vld [vmem:[#allocation2 + $0x90] sm:$0xff]  ;;  %v57_v10 = vld [vmem:[#allocation2 + $0x98] sm:$0xff] }
  0x3a   :  { %v660_v23 = vpack.c.f32.eXmY %v1009_v14, %v1011_v16, 61788  ;;  %v1012_v24 = vclamps-f32 %v258_v17, 448.0  ;;  %v119_v25 = vunpack.c.h.bf16 %v46_v53  ;;  %v121_v26 = vunpack.c.h.bf16 %v47_v58 }
  0x3b   :  { %948 = vst [vmem:[#allocation7 + $0x10] sm:$0xff] %v654_v13  ;;  %v1014_v28 = vclamps-f32 %v260_v19, 448.0  ;;  %v1016_v29 = vclamps-f32 %v262_v21, 448.0  ;;  %v1018_v30 = vclamps-f32 %v264_v22, 448.0  ;;  %v125_v34 = vunpack.c.h.bf16 %v49_v0 }
  0x3c   :  { %v664_v33 = vpack.c.b8 %v660_v23, %v656_v18  ;;  %v259_v35 = vmul.f32 %v1251_v20, %v119_v25  ;;  %v261_v36 = vmul.f32 %v1251_v20, %v121_v26  ;;  %v263_v41 = vmul.f32 %v1251_v20, %v123_v31 }
  0x3d   :  { %v666_v39 = vpack.c.f32.eXmY %v1012_v24, %v1014_v28, 61788  ;;  %v670_v40 = vpack.c.f32.eXmY %v1016_v29, %v1018_v30, 61788  ;;  %v126_v42 = vunpack.c.l.bf16 %v50_v27  ;;  %v265_v43 = vmul.f32 %v1251_v20, %v125_v34 }
  0x3e   :  { %949 = vst [vmem:[#allocation7 + $0x18] sm:$0xff] %v664_v33  ;;  %v1013_v44 = vclamps-f32 %v259_v35, 448.0  ;;  %v1015_v45 = vclamps-f32 %v261_v36, 448.0  ;;  %v128_v46 = vunpack.c.l.bf16 %v51_v32  ;;  %v1017_v48 = vclamps-f32 %v263_v41, 448.0  ;;  %v58_v33 = vld [vmem:[#allocation2 + $0xa0] sm:$0xff] }
  0x3f   :  { %v674_v47 = vpack.c.b8 %v670_v40, %v666_v39  ;;  %v130_v49 = vunpack.c.l.bf16 %v52_v37  ;;  %v132_v50 = vunpack.c.l.bf16 %v53_v38  ;;  %v1019_v51 = vclamps-f32 %v265_v43, 448.0  ;;  %v60_v43 = vld [vmem:[#allocation2 + $0xb0] sm:$0xff] }
  0x40   :  { %v676_v52 = vpack.c.f32.eXmY %v1013_v44, %v1015_v45, 61788  ;;  %v266_v53 = vmul.f32 %v1249_v15, %v126_v42  ;;  %v268_v54 = vmul.f32 %v1249_v15, %v128_v46  ;;  %v127_v57 = vunpack.c.h.bf16 %v50_v27  ;;  %v61_v44 = vld [vmem:[#allocation2 + $0xb8] sm:$0xff] }
  0x41   :  { %950 = vst [vmem:[#allocation7 + $0x20] sm:$0xff] %v674_v47  ;;  %v270_v55 = vmul.f32 %v1249_v15, %v130_v49  ;;  %v272_v56 = vmul.f32 %v1249_v15, %v132_v50  ;;  %v129_v58 = vunpack.c.h.bf16 %v51_v32  ;;  %v680_v59 = vpack.c.f32.eXmY %v1017_v48, %v1019_v51, 61788 }
  0x42   :  { %v1020_v60 = vclamps-f32 %v266_v53, 448.0  ;;  %v1022_v61 = vclamps-f32 %v268_v54, 448.0  ;;  %v131_v62 = vunpack.c.h.bf16 %v52_v37  ;;  %v133_v2 = vunpack.c.h.bf16 %v53_v38  ;;  %v59_v38 = vld [vmem:[#allocation2 + $0xa8] sm:$0xff] }
  0x43   :  { %v1024_v0 = vclamps-f32 %v270_v55, 448.0  ;;  %v1026_v1 = vclamps-f32 %v272_v56, 448.0  ;;  %v267_v3 = vmul.f32 %v1251_v20, %v127_v57  ;;  %v684_v6 = vpack.c.b8 %v680_v59, %v676_v52 }
  0x44   :  { %v686_v7 = vpack.c.f32.eXmY %v1020_v60, %v1022_v61, 61788  ;;  %v269_v8 = vmul.f32 %v1251_v20, %v129_v58  ;;  %v271_v9 = vmul.f32 %v1251_v20, %v131_v62  ;;  %v273_v12 = vmul.f32 %v1251_v20, %v133_v2 }
  0x45   :  { %v690_v11 = vpack.c.f32.eXmY %v1024_v0, %v1026_v1, 61788  ;;  %v1021_v13 = vclamps-f32 %v267_v3, 448.0  ;;  %v134_v14 = vunpack.c.l.bf16 %v54_v63  ;;  %951 = vst [vmem:[#allocation7 + $0x28] sm:$0xff] %v684_v6  ;;  %v136_v18 = vunpack.c.l.bf16 %v55_v4  ;;  %v63_v6 = vld [vmem:[#allocation2 + $0xc8] sm:$0xff] }
  0x46   :  { %v1023_v16 = vclamps-f32 %v269_v8, 448.0  ;;  %v1025_v17 = vclamps-f32 %v271_v9, 448.0  ;;  %v138_v19 = vunpack.c.l.bf16 %v56_v5  ;;  %v1027_v22 = vclamps-f32 %v273_v12, 448.0 }
  0x47   :  { %v694_v21 = vpack.c.b8 %v690_v11, %v686_v7  ;;  %v140_v23 = vunpack.c.l.bf16 %v57_v10  ;;  %v274_v24 = vmul.f32 %v1249_v15, %v134_v14  ;;  %v276_v26 = vmul.f32 %v1249_v15, %v136_v18  ;;  %v64_v11 = vld [vmem:[#allocation2 + $0xd0] sm:$0xff] }
  0x48   :  { %v696_v25 = vpack.c.f32.eXmY %v1021_v13, %v1023_v16, 61788  ;;  %v278_v27 = vmul.f32 %v1249_v15, %v138_v19  ;;  %v135_v28 = vunpack.c.h.bf16 %v54_v63  ;;  %v700_v29 = vpack.c.f32.eXmY %v1025_v17, %v1027_v22, 61788  ;;  %v65_v17 = vld [vmem:[#allocation2 + $0xd8] sm:$0xff] }
  0x49   :  { %952 = vst [vmem:[#allocation7 + $0x30] sm:$0xff] %v694_v21  ;;  %v280_v30 = vmul.f32 %v1249_v15, %v140_v23  ;;  %v1028_v31 = vclamps-f32 %v274_v24, 448.0  ;;  %v137_v32 = vunpack.c.h.bf16 %v55_v4  ;;  %v1030_v34 = vclamps-f32 %v276_v26, 448.0 }
  0x4a   :  { %v1032_v35 = vclamps-f32 %v278_v27, 448.0  ;;  %v139_v36 = vunpack.c.h.bf16 %v56_v5  ;;  %v141_v37 = vunpack.c.h.bf16 %v57_v10  ;;  %v704_v39 = vpack.c.b8 %v700_v29, %v696_v25  ;;  %v62_v5 = vld [vmem:[#allocation2 + $0xc0] sm:$0xff] }
  0x4b   :  { %v1034_v40 = vclamps-f32 %v280_v30, 448.0  ;;  %v275_v41 = vmul.f32 %v1251_v20, %v135_v28  ;;  %v277_v42 = vmul.f32 %v1251_v20, %v137_v32  ;;  %v706_v45 = vpack.c.f32.eXmY %v1028_v31, %v1030_v34, 61788 }
  0x4c   :  { %v279_v46 = vmul.f32 %v1251_v20, %v139_v36  ;;  %v281_v47 = vmul.f32 %v1251_v20, %v141_v37  ;;  %v142_v48 = vunpack.c.l.bf16 %v58_v33  ;;  %953 = vst [vmem:[#allocation7 + $0x38] sm:$0xff] %v704_v39  ;;  %v144_v52 = vunpack.c.l.bf16 %v59_v38  ;;  %v66_v39 = vld [vmem:[#allocation2 + $0xe0] sm:$0xff] }
  0x4d   :  { %v710_v49 = vpack.c.f32.eXmY %v1032_v35, %v1034_v40, 61788  ;;  %v1029_v50 = vclamps-f32 %v275_v41, 448.0  ;;  %v1031_v51 = vclamps-f32 %v277_v42, 448.0  ;;  %v146_v55 = vunpack.c.l.bf16 %v60_v43 }
  0x4e   :  { %v1033_v53 = vclamps-f32 %v279_v46, 448.0  ;;  %v1035_v54 = vclamps-f32 %v281_v47, 448.0  ;;  %v148_v56 = vunpack.c.l.bf16 %v61_v44  ;;  %v282_v59 = vmul.f32 %v1249_v15, %v142_v48 }
  0x4f   :  { %v714_v57 = vpack.c.b8 %v710_v49, %v706_v45  ;;  %v716_v58 = vpack.c.f32.eXmY %v1029_v50, %v1031_v51, 61788  ;;  %v284_v60 = vmul.f32 %v1249_v15, %v144_v52  ;;  %v286_v62 = vmul.f32 %v1249_v15, %v146_v55  ;;  %v68_v49 = vld [vmem:[#allocation2 + $0xf0] sm:$0xff]  ;;  %v69_v50 = vld [vmem:[#allocation2 + $0xf8] sm:$0xff] }
  0x50   :  { %v720_v61 = vpack.c.f32.eXmY %v1033_v53, %v1035_v54, 61788  ;;  %v288_v63 = vmul.f32 %v1249_v15, %v148_v56  ;;  %v143_v0 = vunpack.c.h.bf16 %v58_v33  ;;  %v1036_v1 = vclamps-f32 %v282_v59, 448.0 }
  0x51   :  { %954 = vst [vmem:[#allocation7 + $0x40] sm:$0xff] %v714_v57  ;;  %v1038_v2 = vclamps-f32 %v284_v60, 448.0  ;;  %v145_v3 = vunpack.c.h.bf16 %v59_v38  ;;  %v147_v4 = vunpack.c.h.bf16 %v60_v43  ;;  %v1040_v8 = vclamps-f32 %v286_v62, 448.0 }
  0x52   :  { %v724_v7 = vpack.c.b8 %v720_v61, %v716_v58  ;;  %v1042_v9 = vclamps-f32 %v288_v63, 448.0  ;;  %v149_v10 = vunpack.c.h.bf16 %v61_v44  ;;  %v283_v13 = vmul.f32 %v1251_v20, %v143_v0  ;;  %v67_v44 = vld [vmem:[#allocation2 + $0xe8] sm:$0xff] }
  0x53   :  { %v726_v12 = vpack.c.f32.eXmY %v1036_v1, %v1038_v2, 61788  ;;  %v285_v14 = vmul.f32 %v1251_v20, %v145_v3  ;;  %v287_v16 = vmul.f32 %v1251_v20, %v147_v4  ;;  %v150_v21 = vunpack.c.l.bf16 %v62_v5 }
  0x54   :  { %955 = vst [vmem:[#allocation7 + $0x48] sm:$0xff] %v724_v7  ;;  %v730_v18 = vpack.c.f32.eXmY %v1040_v8, %v1042_v9, 61788  ;;  %v289_v19 = vmul.f32 %v1251_v20, %v149_v10  ;;  %v152_v22 = vunpack.c.l.bf16 %v63_v6  ;;  %v1037_v23 = vclamps-f32 %v283_v13, 448.0 }
  0x55   :  { %v1039_v24 = vclamps-f32 %v285_v14, 448.0  ;;  %v1041_v25 = vclamps-f32 %v287_v16, 448.0  ;;  %v154_v26 = vunpack.c.l.bf16 %v64_v11  ;;  %v156_v29 = vunpack.c.l.bf16 %v65_v17 }
  0x56   :  { %v734_v27 = vpack.c.b8 %v730_v18, %v726_v12  ;;  %v1043_v28 = vclamps-f32 %v289_v19, 448.0  ;;  %v290_v30 = vmul.f32 %v1249_v15, %v150_v21  ;;  %v292_v32 = vmul.f32 %v1249_v15, %v152_v22  ;;  %v71_v12 = vld [vmem:[#allocation2 + $0x108] sm:$0xff]  ;;  %v72_v18 = vld [vmem:[#allocation2 + $0x110] sm:$0xff] }
  0x57   :  { %v736_v31 = vpack.c.f32.eXmY %v1037_v23, %v1039_v24, 61788  ;;  %v294_v33 = vmul.f32 %v1249_v15, %v154_v26  ;;  %v151_v34 = vunpack.c.h.bf16 %v62_v5  ;;  %v296_v36 = vmul.f32 %v1249_v15, %v156_v29  ;;  %v73_v24 = vld [vmem:[#allocation2 + $0x118] sm:$0xff] }
  0x58   :  { %956 = vst [vmem:[#allocation7 + $0x50] sm:$0xff] %v734_v27  ;;  %v740_v35 = vpack.c.f32.eXmY %v1041_v25, %v1043_v28, 61788  ;;  %v1044_v37 = vclamps-f32 %v290_v30, 448.0  ;;  %v153_v38 = vunpack.c.h.bf16 %v63_v6  ;;  %v1046_v40 = vclamps-f32 %v292_v32, 448.0 }
  0x59   :  { %v1048_v41 = vclamps-f32 %v294_v33, 448.0  ;;  %v155_v42 = vunpack.c.h.bf16 %v64_v11  ;;  %v157_v43 = vunpack.c.h.bf16 %v65_v17  ;;  %v1050_v46 = vclamps-f32 %v296_v36, 448.0  ;;  %v70_v11 = vld [vmem:[#allocation2 + $0x100] sm:$0xff] }
  0x5a   :  { %v744_v45 = vpack.c.b8 %v740_v35, %v736_v31  ;;  %v291_v47 = vmul.f32 %v1251_v20, %v151_v34  ;;  %v293_v48 = vmul.f32 %v1251_v20, %v153_v38  ;;  %v746_v51 = vpack.c.f32.eXmY %v1044_v37, %v1046_v40, 61788 }
  0x5b   :  { %v295_v52 = vmul.f32 %v1251_v20, %v155_v42  ;;  %v297_v53 = vmul.f32 %v1251_v20, %v157_v43  ;;  %v158_v54 = vunpack.c.l.bf16 %v66_v39  ;;  %v750_v55 = vpack.c.f32.eXmY %v1048_v41, %v1050_v46, 61788 }
  0x5c   :  { %957 = vst [vmem:[#allocation7 + $0x58] sm:$0xff] %v744_v45  ;;  %v1045_v56 = vclamps-f32 %v291_v47, 448.0  ;;  %v1047_v57 = vclamps-f32 %v293_v48, 448.0  ;;  %v160_v58 = vunpack.c.l.bf16 %v67_v44  ;;  %v162_v61 = vunpack.c.l.bf16 %v68_v49  ;;  %v74_v45 = vld [vmem:[#allocation2 + $0x120] sm:$0xff] }
  0x5d   :  { %v1049_v59 = vclamps-f32 %v295_v52, 448.0  ;;  %v1051_v60 = vclamps-f32 %v297_v53, 448.0  ;;  %v164_v62 = vunpack.c.l.bf16 %v69_v50  ;;  %v754_v63 = vpack.c.b8 %v750_v55, %v746_v51  ;;  %v76_v55 = vld [vmem:[#allocation2 + $0x130] sm:$0xff] }
  0x5e   :  { %v756_v0 = vpack.c.f32.eXmY %v1045_v56, %v1047_v57, 61788  ;;  %v298_v1 = vmul.f32 %v1249_v15, %v158_v54  ;;  %v300_v2 = vmul.f32 %v1249_v15, %v160_v58  ;;  %v302_v4 = vmul.f32 %v1249_v15, %v162_v61  ;;  %v77_v56 = vld [vmem:[#allocation2 + $0x138] sm:$0xff] }
  0x5f   :  { %v760_v3 = vpack.c.f32.eXmY %v1049_v59, %v1051_v60, 61788  ;;  %v304_v5 = vmul.f32 %v1249_v15, %v164_v62  ;;  %v159_v6 = vunpack.c.h.bf16 %v66_v39  ;;  %958 = vst [vmem:[#allocation7 + $0x60] sm:$0xff] %v754_v63  ;;  %v161_v9 = vunpack.c.h.bf16 %v67_v44 }
  0x60   :  { %v1052_v7 = vclamps-f32 %v298_v1, 448.0  ;;  %v1054_v8 = vclamps-f32 %v300_v2, 448.0  ;;  %v163_v10 = vunpack.c.h.bf16 %v68_v49  ;;  %v1056_v14 = vclamps-f32 %v302_v4, 448.0 }
  0x61   :  { %v764_v13 = vpack.c.b8 %v760_v3, %v756_v0  ;;  %v1058_v16 = vclamps-f32 %v304_v5, 448.0  ;;  %v165_v17 = vunpack.c.h.bf16 %v69_v50  ;;  %v299_v21 = vmul.f32 %v1251_v20, %v159_v6  ;;  %v75_v50 = vld [vmem:[#allocation2 + $0x128] sm:$0xff] }
  0x62   :  { %v766_v19 = vpack.c.f32.eXmY %v1052_v7, %v1054_v8, 61788  ;;  %v301_v22 = vmul.f32 %v1251_v20, %v161_v9  ;;  %v303_v23 = vmul.f32 %v1251_v20, %v163_v10  ;;  %v166_v27 = vunpack.c.l.bf16 %v70_v11 }
  0x63   :  { %959 = vst [vmem:[#allocation7 + $0x68] sm:$0xff] %v764_v13  ;;  %v770_v25 = vpack.c.f32.eXmY %v1056_v14, %v1058_v16, 61788  ;;  %v305_v26 = vmul.f32 %v1251_v20, %v165_v17  ;;  %v168_v28 = vunpack.c.l.bf16 %v71_v12  ;;  %v1053_v29 = vclamps-f32 %v299_v21, 448.0 }
  0x64   :  { %v1055_v30 = vclamps-f32 %v301_v22, 448.0  ;;  %v1057_v31 = vclamps-f32 %v303_v23, 448.0  ;;  %v170_v32 = vunpack.c.l.bf16 %v72_v18  ;;  %v172_v35 = vunpack.c.l.bf16 %v73_v24 }
  0x65   :  { %v774_v33 = vpack.c.b8 %v770_v25, %v766_v19  ;;  %v1059_v34 = vclamps-f32 %v305_v26, 448.0  ;;  %v306_v36 = vmul.f32 %v1249_v15, %v166_v27  ;;  %v308_v38 = vmul.f32 %v1249_v15, %v168_v28  ;;  %v79_v19 = vld [vmem:[#allocation2 + $0x148] sm:$0xff]  ;;  %v80_v25 = vld [vmem:[#allocation2 + $0x150] sm:$0xff] }
  0x66   :  { %v776_v37 = vpack.c.f32.eXmY %v1053_v29, %v1055_v30, 61788  ;;  %v310_v39 = vmul.f32 %v1249_v15, %v170_v32  ;;  %v167_v40 = vunpack.c.h.bf16 %v70_v11  ;;  %v312_v42 = vmul.f32 %v1249_v15, %v172_v35  ;;  %v81_v30 = vld [vmem:[#allocation2 + $0x158] sm:$0xff] }
  0x67   :  { %960 = vst [vmem:[#allocation7 + $0x70] sm:$0xff] %v774_v33  ;;  %v780_v41 = vpack.c.f32.eXmY %v1057_v31, %v1059_v34, 61788  ;;  %v1060_v43 = vclamps-f32 %v306_v36, 448.0  ;;  %v169_v44 = vunpack.c.h.bf16 %v71_v12  ;;  %v1062_v46 = vclamps-f32 %v308_v38, 448.0 }
  0x68   :  { %v1064_v47 = vclamps-f32 %v310_v39, 448.0  ;;  %v171_v48 = vunpack.c.h.bf16 %v72_v18  ;;  %v173_v49 = vunpack.c.h.bf16 %v73_v24  ;;  %v1066_v52 = vclamps-f32 %v312_v42, 448.0  ;;  %v78_v18 = vld [vmem:[#allocation2 + $0x140] sm:$0xff] }
  0x69   :  { %v784_v51 = vpack.c.b8 %v780_v41, %v776_v37  ;;  %v307_v53 = vmul.f32 %v1251_v20, %v167_v40  ;;  %v309_v54 = vmul.f32 %v1251_v20, %v169_v44  ;;  %v786_v57 = vpack.c.f32.eXmY %v1060_v43, %v1062_v46, 61788 }
  0x6a   :  { %v311_v58 = vmul.f32 %v1251_v20, %v171_v48  ;;  %v313_v59 = vmul.f32 %v1251_v20, %v173_v49  ;;  %v174_v60 = vunpack.c.l.bf16 %v74_v45  ;;  %v790_v61 = vpack.c.f32.eXmY %v1064_v47, %v1066_v52, 61788 }
  0x6b   :  { %961 = vst [vmem:[#allocation7 + $0x78] sm:$0xff] %v784_v51  ;;  %v1061_v62 = vclamps-f32 %v307_v53, 448.0  ;;  %v1063_v63 = vclamps-f32 %v309_v54, 448.0  ;;  %v176_v0 = vunpack.c.l.bf16 %v75_v50  ;;  %v178_v3 = vunpack.c.l.bf16 %v76_v55  ;;  %v82_v51 = vld [vmem:[#allocation2 + $0x160] sm:$0xff] }
  0x6c   :  { %v1065_v1 = vclamps-f32 %v311_v58, 448.0  ;;  %v1067_v2 = vclamps-f32 %v313_v59, 448.0  ;;  %v180_v4 = vunpack.c.l.bf16 %v77_v56  ;;  %v794_v5 = vpack.c.b8 %v790_v61, %v786_v57  ;;  %v84_v61 = vld [vmem:[#allocation2 + $0x170] sm:$0xff] }
  0x6d   :  { %v796_v6 = vpack.c.f32.eXmY %v1061_v62, %v1063_v63, 61788  ;;  %v314_v7 = vmul.f32 %v1249_v15, %v174_v60  ;;  %v316_v8 = vmul.f32 %v1249_v15, %v176_v0  ;;  %v318_v10 = vmul.f32 %v1249_v15, %v178_v3  ;;  %v85_v62 = vld [vmem:[#allocation2 + $0x178] sm:$0xff] }
  0x6e   :  { %v800_v9 = vpack.c.f32.eXmY %v1065_v1, %v1067_v2, 61788  ;;  %v320_v11 = vmul.f32 %v1249_v15, %v180_v4  ;;  %v175_v12 = vunpack.c.h.bf16 %v74_v45  ;;  %962 = vst [vmem:[#allocation7 + $0x80] sm:$0xff] %v794_v5  ;;  %v177_v16 = vunpack.c.h.bf16 %v75_v50 }
  0x6f   :  { %v1068_v13 = vclamps-f32 %v314_v7, 448.0  ;;  %v1070_v14 = vclamps-f32 %v316_v8, 448.0  ;;  %v179_v17 = vunpack.c.h.bf16 %v76_v55  ;;  %v1072_v22 = vclamps-f32 %v318_v10, 448.0 }
  0x70   :  { %v804_v21 = vpack.c.b8 %v800_v9, %v796_v6  ;;  %v1074_v23 = vclamps-f32 %v320_v11, 448.0  ;;  %v181_v24 = vunpack.c.h.bf16 %v77_v56  ;;  %v315_v27 = vmul.f32 %v1251_v20, %v175_v12  ;;  %v83_v56 = vld [vmem:[#allocation2 + $0x168] sm:$0xff] }
  0x71   :  { %v806_v26 = vpack.c.f32.eXmY %v1068_v13, %v1070_v14, 61788  ;;  %v317_v28 = vmul.f32 %v1251_v20, %v177_v16  ;;  %v319_v29 = vmul.f32 %v1251_v20, %v179_v17  ;;  %v182_v33 = vunpack.c.l.bf16 %v78_v18 }
  0x72   :  { %963 = vst [vmem:[#allocation7 + $0x88] sm:$0xff] %v804_v21  ;;  %v810_v31 = vpack.c.f32.eXmY %v1072_v22, %v1074_v23, 61788  ;;  %v321_v32 = vmul.f32 %v1251_v20, %v181_v24  ;;  %v184_v34 = vunpack.c.l.bf16 %v79_v19  ;;  %v1069_v35 = vclamps-f32 %v315_v27, 448.0 }
  0x73   :  { %v1071_v36 = vclamps-f32 %v317_v28, 448.0  ;;  %v1073_v37 = vclamps-f32 %v319_v29, 448.0  ;;  %v186_v38 = vunpack.c.l.bf16 %v80_v25  ;;  %v188_v41 = vunpack.c.l.bf16 %v81_v30 }
  0x74   :  { %v814_v39 = vpack.c.b8 %v810_v31, %v806_v26  ;;  %v1075_v40 = vclamps-f32 %v321_v32, 448.0  ;;  %v322_v42 = vmul.f32 %v1249_v15, %v182_v33  ;;  %v324_v44 = vmul.f32 %v1249_v15, %v184_v34  ;;  %v87_v26 = vld [vmem:[#allocation2 + $0x188] sm:$0xff]  ;;  %v88_v31 = vld [vmem:[#allocation2 + $0x190] sm:$0xff] }
  0x75   :  { %v816_v43 = vpack.c.f32.eXmY %v1069_v35, %v1071_v36, 61788  ;;  %v326_v45 = vmul.f32 %v1249_v15, %v186_v38  ;;  %v183_v46 = vunpack.c.h.bf16 %v78_v18  ;;  %v328_v48 = vmul.f32 %v1249_v15, %v188_v41  ;;  %v89_v36 = vld [vmem:[#allocation2 + $0x198] sm:$0xff] }
  0x76   :  { %964 = vst [vmem:[#allocation7 + $0x90] sm:$0xff] %v814_v39  ;;  %v820_v47 = vpack.c.f32.eXmY %v1073_v37, %v1075_v40, 61788  ;;  %v1076_v49 = vclamps-f32 %v322_v42, 448.0  ;;  %v185_v50 = vunpack.c.h.bf16 %v79_v19  ;;  %v1078_v52 = vclamps-f32 %v324_v44, 448.0 }
  0x77   :  { %v1080_v53 = vclamps-f32 %v326_v45, 448.0  ;;  %v187_v54 = vunpack.c.h.bf16 %v80_v25  ;;  %v189_v55 = vunpack.c.h.bf16 %v81_v30  ;;  %v1082_v58 = vclamps-f32 %v328_v48, 448.0  ;;  %v86_v25 = vld [vmem:[#allocation2 + $0x180] sm:$0xff] }
  0x78   :  { %v824_v57 = vpack.c.b8 %v820_v47, %v816_v43  ;;  %v323_v59 = vmul.f32 %v1251_v20, %v183_v46  ;;  %v325_v60 = vmul.f32 %v1251_v20, %v185_v50  ;;  %v826_v63 = vpack.c.f32.eXmY %v1076_v49, %v1078_v52, 61788 }
  0x79   :  { %v327_v0 = vmul.f32 %v1251_v20, %v187_v54  ;;  %v329_v1 = vmul.f32 %v1251_v20, %v189_v55  ;;  %v190_v2 = vunpack.c.l.bf16 %v82_v51  ;;  %v830_v3 = vpack.c.f32.eXmY %v1080_v53, %v1082_v58, 61788 }
  0x7a   :  { %965 = vst [vmem:[#allocation7 + $0x98] sm:$0xff] %v824_v57  ;;  %v1077_v4 = vclamps-f32 %v323_v59, 448.0  ;;  %v1079_v5 = vclamps-f32 %v325_v60, 448.0  ;;  %v192_v6 = vunpack.c.l.bf16 %v83_v56  ;;  %v194_v9 = vunpack.c.l.bf16 %v84_v61  ;;  %v90_v57 = vld [vmem:[#allocation2 + $0x1a0] sm:$0xff] }
  0x7b   :  { %v1081_v7 = vclamps-f32 %v327_v0, 448.0  ;;  %v1083_v8 = vclamps-f32 %v329_v1, 448.0  ;;  %v196_v10 = vunpack.c.l.bf16 %v85_v62  ;;  %v834_v11 = vpack.c.b8 %v830_v3, %v826_v63  ;;  %v92_v3 = vld [vmem:[#allocation2 + $0x1b0] sm:$0xff] }
  0x7c   :  { %v836_v12 = vpack.c.f32.eXmY %v1077_v4, %v1079_v5, 61788  ;;  %v330_v13 = vmul.f32 %v1249_v15, %v190_v2  ;;  %v332_v14 = vmul.f32 %v1249_v15, %v192_v6  ;;  %v334_v17 = vmul.f32 %v1249_v15, %v194_v9  ;;  %v93_v4 = vld [vmem:[#allocation2 + $0x1b8] sm:$0xff] }
  0x7d   :  { %v840_v16 = vpack.c.f32.eXmY %v1081_v7, %v1083_v8, 61788  ;;  %v336_v18 = vmul.f32 %v1249_v15, %v196_v10  ;;  %v191_v19 = vunpack.c.h.bf16 %v82_v51  ;;  %966 = vst [vmem:[#allocation7 + $0xa0] sm:$0xff] %v834_v11  ;;  %v193_v23 = vunpack.c.h.bf16 %v83_v56 }
  0x7e   :  { %v1084_v21 = vclamps-f32 %v330_v13, 448.0  ;;  %v1086_v22 = vclamps-f32 %v332_v14, 448.0  ;;  %v195_v24 = vunpack.c.h.bf16 %v84_v61  ;;  %v1088_v28 = vclamps-f32 %v334_v17, 448.0 }
  0x7f   :  { %v844_v27 = vpack.c.b8 %v840_v16, %v836_v12  ;;  %v1090_v29 = vclamps-f32 %v336_v18, 448.0  ;;  %v197_v30 = vunpack.c.h.bf16 %v85_v62  ;;  %v331_v33 = vmul.f32 %v1251_v20, %v191_v19  ;;  %v91_v62 = vld [vmem:[#allocation2 + $0x1a8] sm:$0xff] }
  0x80   :  { %v846_v32 = vpack.c.f32.eXmY %v1084_v21, %v1086_v22, 61788  ;;  %v333_v34 = vmul.f32 %v1251_v20, %v193_v23  ;;  %v335_v35 = vmul.f32 %v1251_v20, %v195_v24  ;;  %v198_v39 = vunpack.c.l.bf16 %v86_v25 }
  0x81   :  { %967 = vst [vmem:[#allocation7 + $0xa8] sm:$0xff] %v844_v27  ;;  %v850_v37 = vpack.c.f32.eXmY %v1088_v28, %v1090_v29, 61788  ;;  %v337_v38 = vmul.f32 %v1251_v20, %v197_v30  ;;  %v200_v40 = vunpack.c.l.bf16 %v87_v26  ;;  %v1085_v41 = vclamps-f32 %v331_v33, 448.0 }
  0x82   :  { %v1087_v42 = vclamps-f32 %v333_v34, 448.0  ;;  %v1089_v43 = vclamps-f32 %v335_v35, 448.0  ;;  %v202_v44 = vunpack.c.l.bf16 %v88_v31  ;;  %v204_v47 = vunpack.c.l.bf16 %v89_v36 }
  0x83   :  { %v854_v45 = vpack.c.b8 %v850_v37, %v846_v32  ;;  %v1091_v46 = vclamps-f32 %v337_v38, 448.0  ;;  %v338_v48 = vmul.f32 %v1249_v15, %v198_v39  ;;  %v340_v50 = vmul.f32 %v1249_v15, %v200_v40  ;;  %v95_v32 = vld [vmem:[#allocation2 + $0x1c8] sm:$0xff]  ;;  %v96_v37 = vld [vmem:[#allocation2 + $0x1d0] sm:$0xff] }
  0x84   :  { %v856_v49 = vpack.c.f32.eXmY %v1085_v41, %v1087_v42, 61788  ;;  %v342_v51 = vmul.f32 %v1249_v15, %v202_v44  ;;  %v199_v52 = vunpack.c.h.bf16 %v86_v25  ;;  %v344_v54 = vmul.f32 %v1249_v15, %v204_v47  ;;  %v97_v42 = vld [vmem:[#allocation2 + $0x1d8] sm:$0xff] }
  0x85   :  { %968 = vst [vmem:[#allocation7 + $0xb0] sm:$0xff] %v854_v45  ;;  %v860_v53 = vpack.c.f32.eXmY %v1089_v43, %v1091_v46, 61788  ;;  %v1092_v55 = vclamps-f32 %v338_v48, 448.0  ;;  %v201_v56 = vunpack.c.h.bf16 %v87_v26  ;;  %v1094_v58 = vclamps-f32 %v340_v50, 448.0 }
  0x86   :  { %v1096_v59 = vclamps-f32 %v342_v51, 448.0  ;;  %v203_v60 = vunpack.c.h.bf16 %v88_v31  ;;  %v205_v61 = vunpack.c.h.bf16 %v89_v36  ;;  %v1098_v0 = vclamps-f32 %v344_v54, 448.0  ;;  %v94_v31 = vld [vmem:[#allocation2 + $0x1c0] sm:$0xff] }
  0x87   :  { %v864_v63 = vpack.c.b8 %v860_v53, %v856_v49  ;;  %v339_v1 = vmul.f32 %v1251_v20, %v199_v52  ;;  %v341_v2 = vmul.f32 %v1251_v20, %v201_v56  ;;  %v866_v5 = vpack.c.f32.eXmY %v1092_v55, %v1094_v58, 61788 }
  0x88   :  { %v343_v6 = vmul.f32 %v1251_v20, %v203_v60  ;;  %v345_v7 = vmul.f32 %v1251_v20, %v205_v61  ;;  %v206_v8 = vunpack.c.l.bf16 %v90_v57  ;;  %v870_v9 = vpack.c.f32.eXmY %v1096_v59, %v1098_v0, 61788 }
  0x89   :  { %969 = vst [vmem:[#allocation7 + $0xb8] sm:$0xff] %v864_v63  ;;  %v1093_v10 = vclamps-f32 %v339_v1, 448.0  ;;  %v1095_v11 = vclamps-f32 %v341_v2, 448.0  ;;  %v208_v12 = vunpack.c.l.bf16 %v91_v62  ;;  %v210_v16 = vunpack.c.l.bf16 %v92_v3  ;;  %v98_v63 = vld [vmem:[#allocation2 + $0x1e0] sm:$0xff] }
  0x8a   :  { %v1097_v13 = vclamps-f32 %v343_v6, 448.0  ;;  %v1099_v14 = vclamps-f32 %v345_v7, 448.0  ;;  %v212_v17 = vunpack.c.l.bf16 %v93_v4  ;;  %v874_v18 = vpack.c.b8 %v870_v9, %v866_v5  ;;  %v100_v9 = vld [vmem:[#allocation2 + $0x1f0] sm:$0xff] }
  0x8b   :  { %v876_v19 = vpack.c.f32.eXmY %v1093_v10, %v1095_v11, 61788  ;;  %v346_v21 = vmul.f32 %v1249_v15, %v206_v8  ;;  %v348_v22 = vmul.f32 %v1249_v15, %v208_v12  ;;  %v350_v24 = vmul.f32 %v1249_v15, %v210_v16  ;;  %v101_v10 = vld [vmem:[#allocation2 + $0x1f8] sm:$0xff] }
  0x8c   :  { %v880_v23 = vpack.c.f32.eXmY %v1097_v13, %v1099_v14, 61788  ;;  %v352_v25 = vmul.f32 %v1249_v15, %v212_v17  ;;  %v207_v26 = vunpack.c.h.bf16 %v90_v57  ;;  %970 = vst [vmem:[#allocation7 + $0xc0] sm:$0xff] %v874_v18  ;;  %v209_v29 = vunpack.c.h.bf16 %v91_v62 }
  0x8d   :  { %v1100_v27 = vclamps-f32 %v346_v21, 448.0  ;;  %v1102_v28 = vclamps-f32 %v348_v22, 448.0  ;;  %v211_v30 = vunpack.c.h.bf16 %v92_v3  ;;  %v1104_v34 = vclamps-f32 %v350_v24, 448.0 }
  0x8e   :  { %v884_v33 = vpack.c.b8 %v880_v23, %v876_v19  ;;  %v1106_v35 = vclamps-f32 %v352_v25, 448.0  ;;  %v213_v36 = vunpack.c.h.bf16 %v93_v4  ;;  %v347_v39 = vmul.f32 %v1251_v20, %v207_v26  ;;  %v99_v4 = vld [vmem:[#allocation2 + $0x1e8] sm:$0xff] }
  0x8f   :  { %v886_v38 = vpack.c.f32.eXmY %v1100_v27, %v1102_v28, 61788  ;;  %v349_v40 = vmul.f32 %v1251_v20, %v209_v29  ;;  %v351_v41 = vmul.f32 %v1251_v20, %v211_v30  ;;  %v214_v45 = vunpack.c.l.bf16 %v94_v31 }
  0x90   :  { %971 = vst [vmem:[#allocation7 + $0xc8] sm:$0xff] %v884_v33  ;;  %v890_v43 = vpack.c.f32.eXmY %v1104_v34, %v1106_v35, 61788  ;;  %v353_v44 = vmul.f32 %v1251_v20, %v213_v36  ;;  %v216_v46 = vunpack.c.l.bf16 %v95_v32  ;;  %v1101_v47 = vclamps-f32 %v347_v39, 448.0 }
  0x91   :  { %v1103_v48 = vclamps-f32 %v349_v40, 448.0  ;;  %v1105_v49 = vclamps-f32 %v351_v41, 448.0  ;;  %v218_v50 = vunpack.c.l.bf16 %v96_v37  ;;  %v220_v53 = vunpack.c.l.bf16 %v97_v42 }
  0x92   :  { %v894_v51 = vpack.c.b8 %v890_v43, %v886_v38  ;;  %v1107_v52 = vclamps-f32 %v353_v44, 448.0  ;;  %v354_v54 = vmul.f32 %v1249_v15, %v214_v45  ;;  %v356_v56 = vmul.f32 %v1249_v15, %v216_v46 }
  0x93   :  { %v896_v55 = vpack.c.f32.eXmY %v1101_v47, %v1103_v48, 61788  ;;  %v358_v57 = vmul.f32 %v1249_v15, %v218_v50  ;;  %v215_v58 = vunpack.c.h.bf16 %v94_v31  ;;  %v360_v60 = vmul.f32 %v1249_v15, %v220_v53 }
  0x94   :  { %972 = vst [vmem:[#allocation7 + $0xd0] sm:$0xff] %v894_v51  ;;  %v900_v59 = vpack.c.f32.eXmY %v1105_v49, %v1107_v52, 61788  ;;  %v1108_v61 = vclamps-f32 %v354_v54, 448.0  ;;  %v217_v62 = vunpack.c.h.bf16 %v95_v32  ;;  %v1110_v0 = vclamps-f32 %v356_v56, 448.0 }
  0x95   :  { %v1112_v1 = vclamps-f32 %v358_v57, 448.0  ;;  %v219_v2 = vunpack.c.h.bf16 %v96_v37  ;;  %v221_v3 = vunpack.c.h.bf16 %v97_v42  ;;  %v1114_v6 = vclamps-f32 %v360_v60, 448.0 }
  0x96   :  { %v904_v5 = vpack.c.b8 %v900_v59, %v896_v55  ;;  %v355_v7 = vmul.f32 %v1251_v20, %v215_v58  ;;  %v357_v8 = vmul.f32 %v1251_v20, %v217_v62  ;;  %v906_v11 = vpack.c.f32.eXmY %v1108_v61, %v1110_v0, 61788 }
  0x97   :  { %v359_v12 = vmul.f32 %v1251_v20, %v219_v2  ;;  %v361_v13 = vmul.f32 %v1251_v20, %v221_v3  ;;  %v222_v14 = vunpack.c.l.bf16 %v98_v63  ;;  %v910_v16 = vpack.c.f32.eXmY %v1112_v1, %v1114_v6, 61788 }
  0x98   :  { %973 = vst [vmem:[#allocation7 + $0xd8] sm:$0xff] %v904_v5  ;;  %v1109_v17 = vclamps-f32 %v355_v7, 448.0  ;;  %v1111_v18 = vclamps-f32 %v357_v8, 448.0  ;;  %v224_v19 = vunpack.c.l.bf16 %v99_v4  ;;  %v226_v23 = vunpack.c.l.bf16 %v100_v9 }
  0x99   :  { %v1113_v21 = vclamps-f32 %v359_v12, 448.0  ;;  %v1115_v22 = vclamps-f32 %v361_v13, 448.0  ;;  %v228_v24 = vunpack.c.l.bf16 %v101_v10  ;;  %v914_v25 = vpack.c.b8 %v910_v16, %v906_v11 }
  0x9a   :  { %v916_v26 = vpack.c.f32.eXmY %v1109_v17, %v1111_v18, 61788  ;;  %v362_v27 = vmul.f32 %v1249_v15, %v222_v14  ;;  %v364_v28 = vmul.f32 %v1249_v15, %v224_v19  ;;  %v366_v30 = vmul.f32 %v1249_v15, %v226_v23 }
  0x9b   :  { %v920_v29 = vpack.c.f32.eXmY %v1113_v21, %v1115_v22, 61788  ;;  %v368_v31 = vmul.f32 %v1249_v15, %v228_v24  ;;  %v223_v32 = vunpack.c.h.bf16 %v98_v63  ;;  %974 = vst [vmem:[#allocation7 + $0xe0] sm:$0xff] %v914_v25  ;;  %v225_v35 = vunpack.c.h.bf16 %v99_v4 }
  0x9c   :  { %v1116_v33 = vclamps-f32 %v362_v27, 448.0  ;;  %v1118_v34 = vclamps-f32 %v364_v28, 448.0  ;;  %v227_v36 = vunpack.c.h.bf16 %v100_v9  ;;  %v1120_v38 = vclamps-f32 %v366_v30, 448.0 }
  0x9d   :  { %v924_v37 = vpack.c.b8 %v920_v29, %v916_v26  ;;  %v1122_v39 = vclamps-f32 %v368_v31, 448.0  ;;  %v229_v40 = vunpack.c.h.bf16 %v101_v10  ;;  %v363_v42 = vmul.f32 %v1251_v20, %v223_v32 }
  0x9e   :  { %v926_v41 = vpack.c.f32.eXmY %v1116_v33, %v1118_v34, 61788  ;;  %v365_v43 = vmul.f32 %v1251_v20, %v225_v35  ;;  %v367_v44 = vmul.f32 %v1251_v20, %v227_v36 }
  0x9f   :  { %975 = vst [vmem:[#allocation7 + $0xe8] sm:$0xff] %v924_v37  ;;  %v930_v45 = vpack.c.f32.eXmY %v1120_v38, %v1122_v39, 61788  ;;  %v369_v15 = vmul.f32 %v1251_v20, %v229_v40  ;;  %v1117_v46 = vclamps-f32 %v363_v42, 448.0 }
  0xa0   :  { %v1119_v47 = vclamps-f32 %v365_v43, 448.0  ;;  %v1121_v48 = vclamps-f32 %v367_v44, 448.0 }
  0xa1   :  { %v934_v49 = vpack.c.b8 %v930_v45, %v926_v41  ;;  %v1123_v50 = vclamps-f32 %v369_v15, 448.0 }
  0xa2   :  { %v936_v51 = vpack.c.f32.eXmY %v1117_v46, %v1119_v47, 61788 }
  0xa3   :  { %976 = vst [vmem:[#allocation7 + $0xf0] sm:$0xff] %v934_v49  ;;  %v940_v52 = vpack.c.f32.eXmY %v1121_v48, %v1123_v50, 61788 }
  0xa5   :  { %v944_v53 = vpack.c.b8 %v940_v52, %v936_v51 }
  0xa7   :  { %977 = vst [vmem:[#allocation7 + $0xf8] sm:$0xff] %v944_v53 }
  0xa8   :  { %1186 = shalt.err (!%p1183_p6)
}
  0xa9   :  { %s1187_s10 = scalar_lea.hbm %s1395_s2, 4096 }
  0xaa   :  { %p1188_p7 = scmp.ne.s32.totalorder %s1395_s2, %s1187_s10  ;;  %p1191_p8 = scmp.lt.u32.totalorder %s1187_s10, %s1395_s2 }
  0xac   :  { %p1193_p9 = pnand %p1191_p8, %p1188_p7 }
  0xae   :  { %1196 = shalt.err (!%p1193_p9)
}
  0xaf   :  { %s1208_s15 = smov 256   ;;  %s1209_s16 = smov 16  }
  0xb0   :  { %989 = dma.vmem_to_hbm [thread:$0]  %s984_s6, 4096, %s1395_s2, [#allocation4], %s1208_s15, %s1208_s15, %s1209_s16  }
  0xb1   :  { %1201 = dma.done.wait [#allocation4], 4096  }
  0xb2   :  { %1202 = vsyncadd [#allocation4], 4294963200 }
  0xb3   :  { %993 = vsyncpa [#allocation3], 1 }
  0xb4   :  { %994 = vsyncpa [#allocation6], 1 }
  0xb5   :  { %995 = vsyncpa [#allocation4], 1 }

// kernel: _fp8_gemms_pipeline.5
= control target key start
LH: loop header
LB: loop body
LE: loop exit
PB: predicated region body
PF: predicated region fallthrough
CT: control target
= control target key end

     0   :  { %7 = vsyncpa [#allocation3], 0  ;;  %s1963_s0 = inlined_call_operand.hbm [shape: bf16[256,512], index: 0, kind: input, shape index: {}]   ;;  %s1964_s1 = inlined_call_operand.hbm [shape: f32[256,1], index: 1, kind: input, shape index: {}]   ;;  %s1965_s2 = inlined_call_operand.hbm [shape: f8e4m3fn[256,512], index: 2, kind: output, shape index: {}]  }
   0x1   :  { %8 = vsyncpa [#allocation6], 0 }
   0x2   :  { %9 = vsyncpa [#allocation4], 0  ;;  %s1390_s9 = smov [#allocation2]   ;;  %s1318_s13 = scalar_lea.hbm %s1963_s0, 8192 }
   0x3   :  { %s15_s10 = sshll.u32 %s1390_s9, 4  ;;  %p1319_p0 = scmp.ne.s32.totalorder %s1963_s0, %s1318_s13  ;;  %s16_s10 = int_to_ptr.vmem [resolvable:$true] %s15_s10 }
   0x4   :  { %p1322_p1 = scmp.lt.u32.totalorder %s1318_s13, %s1963_s0 }
   0x6   :  { %p1324_p2 = pnand %p1322_p1, %p1319_p0 }
   0x8   :  { %1327 = shalt.err (!%p1324_p2)
}
   0x9   :  { %s1328_s18 = scalar_lea.vmem %s16_s10, 8192  ;;  %p1333_p4 = scmp.lt.s32.totalorder %s16_s10, %s16_s10 }
   0xa   :  { %p1329_p3 = scmp.ne.s32.totalorder %s16_s10, %s1328_s18  ;;  %p1334_p5 = scmp.lt.s32.totalorder %s1328_s18, %s1328_s18 }
   0xc   :  { %p1335_p6 = por %p1334_p5, %p1333_p4 }
   0xe   :  { %p1336_p7 = pnand %p1335_p6, %p1329_p3 }
  0x10   :  { %1339 = shalt.err (!%p1336_p7)
}
  0x11   :  { %s1391_s19 = smov 256   ;;  %s1392_s20 = smov 16  }
  0x12   :  { %21 = dma.hbm_to_vmem [thread:$0]  %s1963_s0, 8192, %s16_s10, [#allocation3], %s1391_s19, %s1391_s19, %s1392_s20  }
  0x13   :  { %s1393_s23 = smov [#allocation5]   ;;  %s1340_s27 = scalar_lea.hbm %s1964_s1, 4096 }
  0x14   :  { %s27_s24 = sshll.u32 %s1393_s23, 4  ;;  %p1341_p8 = scmp.ne.s32.totalorder %s1964_s1, %s1340_s27  ;;  %s28_s24 = int_to_ptr.vmem [resolvable:$true] %s27_s24 }
  0x15   :  { %p1344_p9 = scmp.lt.u32.totalorder %s1340_s27, %s1964_s1 }
  0x17   :  { %p1346_p10 = pnand %p1344_p9, %p1341_p8 }
  0x19   :  { %1349 = shalt.err (!%p1346_p10)
}
  0x1a   :  { %s1350_s4 = scalar_lea.vmem %s28_s24, 4096  ;;  %p1355_p12 = scmp.lt.s32.totalorder %s28_s24, %s28_s24 }
  0x1b   :  { %p1351_p11 = scmp.ne.s32.totalorder %s28_s24, %s1350_s4  ;;  %p1356_p13 = scmp.lt.s32.totalorder %s1350_s4, %s1350_s4 }
  0x1d   :  { %p1357_p0 = por %p1356_p13, %p1355_p12 }
  0x1f   :  { %p1358_p1 = pnand %p1357_p0, %p1351_p11 }
  0x21   :  { %1361 = shalt.err (!%p1358_p1)
}
  0x22   :  { %s1394_s0 = smov 128   ;;  %s1395_s5 = smov 8  }
  0x23   :  { %33 = dma.hbm_to_vmem [thread:$0]  %s1964_s1, 4096, %s28_s24, [#allocation6], %s1394_s0, %s1394_s0, %s1395_s5  }
  0x24   :  { %1384 = dma.done.wait [#allocation3], 8192  }
  0x25   :  { %1385 = vsyncadd [#allocation3], 4294959104 }
  0x26   :  { %1386 = dma.done.wait [#allocation6], 4096  }
  0x27   :  { %1387 = vsyncadd [#allocation6], 4294963200  ;;  %v1396_v0 = vmov 0   ;;  %v234_v1 = vld [vmem:[#allocation5 + $0x10] sm:$0xff]  ;;  %v232_v2 = vld [vmem:[#allocation5] sm:$0xff]  ;;  %s1397_s1 = smov [#allocation7]  }
  0x28   :  { %1317 = vset.pattern.permute.xlu1 %v1396_v0  ;;  %1316 = vset.pattern.permute.xlu0 %v1396_v0  ;;  %v235_v3 = vld [vmem:[#allocation5 + $0x18] sm:$0xff]  ;;  %v233_v4 = vld [vmem:[#allocation5 + $0x8] sm:$0xff]  ;;  %v236_v6 = vld [vmem:[#allocation5 + $0x20] sm:$0xff]  ;;  %s1165_s8 = sshll.u32 %s1397_s1, 4  ;;  %s1166_s8 = int_to_ptr.vmem [resolvable:$true] %s1165_s8 }
  0x29   :  { %276 = vperm.xlu1 %1317, %v234_v1   ;;  %266 = vperm.xlu0 %1316, %v232_v2   ;;  %v237_v5 = vld [vmem:[#allocation5 + $0x28] sm:$0xff]  ;;  %v239_v7 = vld [vmem:[#allocation5 + $0x38] sm:$0xff]  ;;  %v238_v8 = vld [vmem:[#allocation5 + $0x30] sm:$0xff]  ;;  %s1362_s9 = scalar_lea.vmem %s1166_s8, 4096  ;;  %p1367_p3 = scmp.lt.s32.totalorder %s1166_s8, %s1166_s8 }
  0x2a   :  { %v241_v9 = vld [vmem:[#allocation5 + $0x48] sm:$0xff]  ;;  %v240_v10 = vld [vmem:[#allocation5 + $0x40] sm:$0xff]  ;;  %v243_v11 = vld [vmem:[#allocation5 + $0x58] sm:$0xff]  ;;  %p1363_p2 = scmp.ne.s32.totalorder %s1166_s8, %s1362_s9  ;;  %p1368_p4 = scmp.lt.s32.totalorder %s1362_s9, %s1362_s9 }
  0x2b   :  { %v242_v12 = vld [vmem:[#allocation5 + $0x50] sm:$0xff]  ;;  %v245_v13 = vld [vmem:[#allocation5 + $0x68] sm:$0xff]  ;;  %v244_v14 = vld [vmem:[#allocation5 + $0x60] sm:$0xff] }
  0x2c   :  { %v247_v15 = vld [vmem:[#allocation5 + $0x78] sm:$0xff]  ;;  %v246_v16 = vld [vmem:[#allocation5 + $0x70] sm:$0xff]  ;;  %v249_v17 = vld [vmem:[#allocation5 + $0x88] sm:$0xff]  ;;  %p1369_p5 = por %p1368_p4, %p1367_p3 }
  0x2d   :  { %281 = vperm.xlu1 %1317, %v235_v3   ;;  %271 = vperm.xlu0 %1316, %v233_v4   ;;  %v248_v18 = vld [vmem:[#allocation5 + $0x80] sm:$0xff]  ;;  %v251_v19 = vld [vmem:[#allocation5 + $0x98] sm:$0xff]  ;;  %v250_v20 = vld [vmem:[#allocation5 + $0x90] sm:$0xff] }
  0x2e   :  { %v253_v21 = vld [vmem:[#allocation5 + $0xa8] sm:$0xff]  ;;  %v252_v22 = vld [vmem:[#allocation5 + $0xa0] sm:$0xff]  ;;  %v255_v23 = vld [vmem:[#allocation5 + $0xb8] sm:$0xff]  ;;  %p1370_p6 = pnand %p1369_p5, %p1363_p2 }
  0x2f   :  { %v254_v24 = vld [vmem:[#allocation5 + $0xb0] sm:$0xff]  ;;  %v257_v25 = vld [vmem:[#allocation5 + $0xc8] sm:$0xff]  ;;  %v256_v26 = vld [vmem:[#allocation5 + $0xc0] sm:$0xff] }
  0x30   :  { %v259_v27 = vld [vmem:[#allocation5 + $0xd8] sm:$0xff]  ;;  %v258_v28 = vld [vmem:[#allocation5 + $0xd0] sm:$0xff]  ;;  %v261_v29 = vld [vmem:[#allocation5 + $0xe8] sm:$0xff] }
  0x31   :  { %291 = vperm.xlu1 %1317, %v237_v5   ;;  %286 = vperm.xlu0 %1316, %v236_v6   ;;  %v260_v30 = vld [vmem:[#allocation5 + $0xe0] sm:$0xff]  ;;  %v263_v31 = vld [vmem:[#allocation5 + $0xf8] sm:$0xff]  ;;  %v262_v32 = vld [vmem:[#allocation5 + $0xf0] sm:$0xff] }
  0x32   :  { %v1439_v33 = vld [vmem:[#allocation2 + $0x20] sm:$0xff]  ;;  %v1441_v34 = vld [vmem:[#allocation2 + $0x28] sm:$0xff]  ;;  %v1447_v37 = vld [vmem:[#allocation2 + $0x30] sm:$0xff] }
  0x33   :  { %v1443_v35 = vld [vmem:[#allocation2] sm:$0xff]  ;;  %v1445_v36 = vld [vmem:[#allocation2 + $0x8] sm:$0xff]  ;;  %v1449_v38 = vld [vmem:[#allocation2 + $0x38] sm:$0xff]  ;;  %v2042_v51 = vunpack.c.h.bf16 %v1439_v33  ;;  %v2043_v45 = vunpack.c.l.bf16 %v1441_v34 }
  0x34   :  { %v1455_v43 = vld [vmem:[#allocation2 + $0x10] sm:$0xff]  ;;  %v1457_v44 = vld [vmem:[#allocation2 + $0x18] sm:$0xff]  ;;  %v1471_v55 = vld [vmem:[#allocation2 + $0x40] sm:$0xff]  ;;  %v2046_v47 = vunpack.c.h.bf16 %v1443_v35  ;;  %v2047_v41 = vunpack.c.l.bf16 %v1445_v36 }
  0x35   :  { %301 = vperm.xlu1 %1317, %v239_v7   ;;  %296 = vperm.xlu0 %1316, %v238_v8   ;;  %v1463_v49 = vld [vmem:[#allocation2 + $0x50] sm:$0xff]  ;;  %v1465_v50 = vld [vmem:[#allocation2 + $0x58] sm:$0xff]  ;;  %v1473_v56 = vld [vmem:[#allocation2 + $0x48] sm:$0xff] }
  0x36   :  { %v1479_v61 = vld [vmem:[#allocation2 + $0x70] sm:$0xff]  ;;  %v1481_v62 = vld [vmem:[#allocation2 + $0x78] sm:$0xff]  ;;  %v1487_v3 = vld [vmem:[#allocation2 + $0x60] sm:$0xff] }
  0x37   :  { %v1489_v4 = vld [vmem:[#allocation2 + $0x68] sm:$0xff]  ;;  %v1559_v8 = vld [vmem:[#allocation2 + $0x110] sm:$0xff]  ;;  %v1567_v6 = vld [vmem:[#allocation2 + $0x100] sm:$0xff] }
  0x38   :  { %v1575_v2 = vld [vmem:[#allocation2 + $0x130] sm:$0xff]  ;;  %v1583_v0 = vld [vmem:[#allocation2 + $0x120] sm:$0xff]  ;;  %v1625_v7 = vld [vmem:[#allocation2 + $0x198] sm:$0xff] }
  0x39   :  { %311 = vperm.xlu1 %1317, %v241_v9   ;;  %306 = vperm.xlu0 %1316, %v240_v10   ;;  %v1495_v9 = vld [vmem:[#allocation2 + $0x90] sm:$0xff]  ;;  %v1497_v10 = vld [vmem:[#allocation2 + $0x98] sm:$0xff]  ;;  %2017 = vst [vmem:[#allocation12_spill] sm:$0xff] %v1583_v0  ;;  %v1599_v58 = vld [vmem:[#allocation2 + $0x140] sm:$0xff] }
  0x3a   :  { %v1591_v60 = vld [vmem:[#allocation2 + $0x150] sm:$0xff]  ;;  %2021 = vst [vmem:[#allocation16_spill] sm:$0xff] %v1599_v58  ;;  %v1615_v52 = vld [vmem:[#allocation2 + $0x160] sm:$0xff]  ;;  %2028 = vst [vmem:[#allocation23_spill] sm:$0xff] %v1625_v7 }
  0x3b   :  { %2019 = vst [vmem:[#allocation14_spill] sm:$0xff] %v1591_v60  ;;  %v1607_v54 = vld [vmem:[#allocation2 + $0x170] sm:$0xff]  ;;  %2025 = vst [vmem:[#allocation20_spill] sm:$0xff] %v1615_v52  ;;  %v1631_v46 = vld [vmem:[#allocation2 + $0x180] sm:$0xff] }
  0x3c   :  { %2023 = vst [vmem:[#allocation18_spill] sm:$0xff] %v1607_v54  ;;  %v1623_v48 = vld [vmem:[#allocation2 + $0x190] sm:$0xff]  ;;  %2029 = vst [vmem:[#allocation24_spill] sm:$0xff] %v1631_v46  ;;  %v1633_v5 = vld [vmem:[#allocation2 + $0x188] sm:$0xff] }
  0x3d   :  { %321 = vperm.xlu1 %1317, %v243_v11   ;;  %316 = vperm.xlu0 %1316, %v242_v12   ;;  %v1551_v12 = vld [vmem:[#allocation2 + $0xe0] sm:$0xff]  ;;  %v1617_v11 = vld [vmem:[#allocation2 + $0x168] sm:$0xff]  ;;  %2027 = vst [vmem:[#allocation22_spill] sm:$0xff] %v1623_v48  ;;  %2030 = vst [vmem:[#allocation25_spill] sm:$0xff] %v1633_v5  ;;  %v2044_v5 = vunpack.c.h.bf16 %v1441_v34 }
  0x3e   :  { %2026 = vst [vmem:[#allocation21_spill] sm:$0xff] %v1617_v11  ;;  %v1639_v42 = vld [vmem:[#allocation2 + $0x1b0] sm:$0xff]  ;;  %v1641_v1 = vld [vmem:[#allocation2 + $0x1b8] sm:$0xff]  ;;  %v1647_v40 = vld [vmem:[#allocation2 + $0x1a0] sm:$0xff] }
  0x3f   :  { %2031 = vst [vmem:[#allocation26_spill] sm:$0xff] %v1639_v42  ;;  %2032 = vst [vmem:[#allocation27_spill] sm:$0xff] %v1641_v1  ;;  %v1649_v63 = vld [vmem:[#allocation2 + $0x1a8] sm:$0xff]  ;;  %v1655_v11 = vld [vmem:[#allocation2 + $0x1d0] sm:$0xff]  ;;  %v2041_v1 = vunpack.c.l.bf16 %v1439_v33  ;;  %v2045_v42 = vunpack.c.l.bf16 %v1443_v35 }
  0x40   :  { %2033 = vst [vmem:[#allocation28_spill] sm:$0xff] %v1647_v40  ;;  %2034 = vst [vmem:[#allocation29_spill] sm:$0xff] %v1649_v63  ;;  %v1657_v59 = vld [vmem:[#allocation2 + $0x1d8] sm:$0xff]  ;;  %v1663_v48 = vld [vmem:[#allocation2 + $0x1c0] sm:$0xff] }
  0x41   :  { %331 = vperm.xlu1 %1317, %v245_v13   ;;  %326 = vperm.xlu0 %1316, %v244_v14   ;;  %v1543_v14 = vld [vmem:[#allocation2 + $0xf0] sm:$0xff]  ;;  %v1609_v13 = vld [vmem:[#allocation2 + $0x178] sm:$0xff]  ;;  %2035 = vst [vmem:[#allocation30_spill] sm:$0xff] %v1655_v11  ;;  %2036 = vst [vmem:[#allocation31_spill] sm:$0xff] %v1657_v59 }
  0x42   :  { %2024 = vst [vmem:[#allocation19_spill] sm:$0xff] %v1609_v13  ;;  %2037 = vst [vmem:[#allocation32_spill] sm:$0xff] %v1663_v48  ;;  %v1665_v57 = vld [vmem:[#allocation2 + $0x1c8] sm:$0xff]  ;;  %v1671_v46 = vld [vmem:[#allocation2 + $0x1f0] sm:$0xff] }
  0x43   :  { %2038 = vst [vmem:[#allocation33_spill] sm:$0xff] %v1665_v57  ;;  %2039 = vst [vmem:[#allocation34_spill] sm:$0xff] %v1671_v46  ;;  %v1673_v53 = vld [vmem:[#allocation2 + $0x1f8] sm:$0xff] }
  0x44   :  { %2040 = vst [vmem:[#allocation35_spill] sm:$0xff] %v1673_v53 }
  0x45   :  { %341 = vperm.xlu1 %1317, %v247_v15   ;;  %336 = vperm.xlu0 %1316, %v246_v16   ;;  %v1503_v15 = vld [vmem:[#allocation2 + $0x80] sm:$0xff]  ;;  %v1505_v16 = vld [vmem:[#allocation2 + $0x88] sm:$0xff] }
  0x49   :  { %351 = vperm.xlu1 %1317, %v249_v17   ;;  %346 = vperm.xlu0 %1316, %v248_v18   ;;  %v1535_v18 = vld [vmem:[#allocation2 + $0xc0] sm:$0xff]  ;;  %v1601_v17 = vld [vmem:[#allocation2 + $0x148] sm:$0xff] }
  0x4a   :  { %2022 = vst [vmem:[#allocation17_spill] sm:$0xff] %v1601_v17 }
  0x4d   :  { %361 = vperm.xlu1 %1317, %v251_v19   ;;  %356 = vperm.xlu0 %1316, %v250_v20   ;;  %v1527_v20 = vld [vmem:[#allocation2 + $0xd0] sm:$0xff]  ;;  %v1593_v19 = vld [vmem:[#allocation2 + $0x158] sm:$0xff] }
  0x4e   :  { %2020 = vst [vmem:[#allocation15_spill] sm:$0xff] %v1593_v19 }
  0x51   :  { %371 = vperm.xlu1 %1317, %v253_v21   ;;  %366 = vperm.xlu0 %1316, %v252_v22   ;;  %v1511_v21 = vld [vmem:[#allocation2 + $0xb0] sm:$0xff]  ;;  %v1513_v22 = vld [vmem:[#allocation2 + $0xb8] sm:$0xff] }
  0x55   :  { %381 = vperm.xlu1 %1317, %v255_v23   ;;  %376 = vperm.xlu0 %1316, %v254_v24   ;;  %v1529_v23 = vld [vmem:[#allocation2 + $0xd8] sm:$0xff] }
  0x56   :  { %v1561_v24 = vld [vmem:[#allocation2 + $0x118] sm:$0xff] }
  0x59   :  { %391 = vperm.xlu1 %1317, %v257_v25   ;;  %386 = vperm.xlu0 %1316, %v256_v26   ;;  %v1545_v25 = vld [vmem:[#allocation2 + $0xf8] sm:$0xff] }
  0x5a   :  { %v1577_v26 = vld [vmem:[#allocation2 + $0x138] sm:$0xff] }
  0x5b   :  { %2016 = vst [vmem:[#allocation11_spill] sm:$0xff] %v1577_v26 }
  0x5d   :  { %401 = vperm.xlu1 %1317, %v259_v27   ;;  %396 = vperm.xlu0 %1316, %v258_v28   ;;  %v1519_v27 = vld [vmem:[#allocation2 + $0xa0] sm:$0xff]  ;;  %v1521_v28 = vld [vmem:[#allocation2 + $0xa8] sm:$0xff] }
  0x61   :  { %411 = vperm.xlu1 %1317, %v261_v29   ;;  %406 = vperm.xlu0 %1316, %v260_v30   ;;  %v1537_v29 = vld [vmem:[#allocation2 + $0xc8] sm:$0xff] }
  0x62   :  { %v1569_v30 = vld [vmem:[#allocation2 + $0x108] sm:$0xff] }
  0x65   :  { %421 = vperm.xlu1 %1317, %v263_v31   ;;  %416 = vperm.xlu0 %1316, %v262_v32   ;;  %v1553_v31 = vld [vmem:[#allocation2 + $0xe8] sm:$0xff] }
  0x66   :  { %v1585_v32 = vld [vmem:[#allocation2 + $0x128] sm:$0xff] }
  0x67   :  { %2018 = vst [vmem:[#allocation13_spill] sm:$0xff] %v1585_v32 }
  0xa8   :  { %v277_v63 = vpop.permute.xlu1 %276  ;;  %v267_v40 = vpop.permute.xlu0 %266 }
  0xa9   :  { %v432_v59 = vmul.f32 %v277_v63, %v2041_v1  ;;  %v433_v39 = vmul.f32 %v277_v63, %v2042_v51  ;;  %v434_v48 = vmul.f32 %v277_v63, %v2043_v45  ;;  %v435_v57 = vmul.f32 %v277_v63, %v2044_v5 }
  0xaa   :  { %v424_v11 = vmul.f32 %v267_v40, %v2045_v42  ;;  %v425_v7 = vmul.f32 %v267_v40, %v2046_v47  ;;  %v426_v53 = vmul.f32 %v267_v40, %v2047_v41  ;;  %v2048_v1 = vunpack.c.h.bf16 %v1445_v36 }
  0xab   :  { %v1186_v33 = vclamps-f32 %v432_v59, 448.0  ;;  %v1187_v51 = vclamps-f32 %v433_v39, 448.0  ;;  %v1188_v52 = vclamps-f32 %v434_v48, 448.0  ;;  %v1189_v13 = vclamps-f32 %v435_v57, 448.0 }
  0xac   :  { %v427_v46 = vmul.f32 %v267_v40, %v2048_v1  ;;  %v1178_v45 = vclamps-f32 %v424_v11, 448.0  ;;  %v1179_v54 = vclamps-f32 %v425_v7, 448.0  ;;  %v1180_v34 = vclamps-f32 %v426_v53, 448.0  ;;  %v282_v5 = vpop.permute.xlu1 %281  ;;  %v272_v17 = vpop.permute.xlu0 %271 }
  0xad   :  { %v2049_v42 = vunpack.c.l.bf16 %v1447_v37  ;;  %v2050_v47 = vunpack.c.h.bf16 %v1447_v37  ;;  %v2051_v41 = vunpack.c.l.bf16 %v1449_v38  ;;  %v2052_v40 = vunpack.c.h.bf16 %v1449_v38 }
  0xae   :  { %v1181_v63 = vclamps-f32 %v427_v46, 448.0  ;;  %v2053_v48 = vunpack.c.l.bf16 %v1455_v43  ;;  %v2054_v53 = vunpack.c.h.bf16 %v1455_v43  ;;  %v2055_v59 = vunpack.c.l.bf16 %v1457_v44 }
  0xaf   :  { %v436_v35 = vmul.f32 %v282_v5, %v2049_v42  ;;  %v437_v58 = vmul.f32 %v282_v5, %v2050_v47  ;;  %v438_v36 = vmul.f32 %v282_v5, %v2051_v41  ;;  %v439_v39 = vmul.f32 %v282_v5, %v2052_v40 }
  0xb0   :  { %v428_v57 = vmul.f32 %v272_v17, %v2053_v48  ;;  %v429_v46 = vmul.f32 %v272_v17, %v2054_v53  ;;  %v430_v7 = vmul.f32 %v272_v17, %v2055_v59  ;;  %v2056_v11 = vunpack.c.h.bf16 %v1457_v44  ;;  %v292_v40 = vpop.permute.xlu1 %291  ;;  %v287_v32 = vpop.permute.xlu0 %286 }
  0xb1   :  { %v1190_v37 = vclamps-f32 %v436_v35, 448.0  ;;  %v1191_v42 = vclamps-f32 %v437_v58, 448.0  ;;  %v1192_v47 = vclamps-f32 %v438_v36, 448.0  ;;  %v1193_v19 = vclamps-f32 %v439_v39, 448.0 }
  0xb2   :  { %v431_v1 = vmul.f32 %v272_v17, %v2056_v11  ;;  %v1182_v41 = vclamps-f32 %v428_v57, 448.0  ;;  %v1183_v60 = vclamps-f32 %v429_v46, 448.0  ;;  %v1184_v38 = vclamps-f32 %v430_v7, 448.0 }
  0xb3   :  { %v812_v48 = vpack.c.f32.eXmY %v1186_v33, %v1190_v37, 61788  ;;  %v822_v0 = vpack.c.f32.eXmY %v1187_v51, %v1191_v42, 61788  ;;  %v2057_v43 = vunpack.c.l.bf16 %v1463_v49  ;;  %v2058_v59 = vunpack.c.h.bf16 %v1463_v49 }
  0xb4   :  { %v1185_v5 = vclamps-f32 %v431_v1, 448.0  ;;  %v832_v44 = vpack.c.f32.eXmY %v1188_v52, %v1192_v47, 61788  ;;  %v842_v17 = vpack.c.f32.eXmY %v1189_v13, %v1193_v19, 61788  ;;  %v2059_v58 = vunpack.c.l.bf16 %v1465_v50  ;;  %v302_v42 = vpop.permute.xlu1 %301 }
  0xb5   :  { %v444_v53 = vmul.f32 %v292_v40, %v2057_v43  ;;  %v445_v26 = vmul.f32 %v292_v40, %v2058_v59  ;;  %v2060_v36 = vunpack.c.h.bf16 %v1465_v50  ;;  %v808_v57 = vpack.c.f32.eXmY %v1178_v45, %v1182_v41, 61788  ;;  %v297_v43 = vpop.permute.xlu0 %296 }
  0xb6   :  { %v446_v35 = vmul.f32 %v292_v40, %v2059_v58  ;;  %v818_v46 = vpack.c.f32.eXmY %v1179_v54, %v1183_v60, 61788  ;;  %v828_v33 = vpack.c.f32.eXmY %v1180_v34, %v1184_v38, 61788  ;;  %v2061_v52 = vunpack.c.l.bf16 %v1471_v55 }
  0xb7   :  { %v447_v39 = vmul.f32 %v292_v40, %v2060_v36  ;;  %v1198_v7 = vclamps-f32 %v444_v53, 448.0  ;;  %v1199_v11 = vclamps-f32 %v445_v26, 448.0  ;;  %v838_v51 = vpack.c.f32.eXmY %v1181_v63, %v1185_v5, 61788 }
  0xb8   :  { %v1200_v1 = vclamps-f32 %v446_v35, 448.0  ;;  %v816_v49 = vpack.c.b8 %v812_v48, %v808_v57  ;;  %v826_v59 = vpack.c.b8 %v822_v0, %v818_v46  ;;  %v440_v13 = vmul.f32 %v287_v32, %v2061_v52 }
  0xb9   :  { %v1201_v37 = vclamps-f32 %v447_v39, 448.0  ;;  %v2062_v19 = vunpack.c.h.bf16 %v1471_v55  ;;  %v836_v50 = vpack.c.b8 %v832_v44, %v828_v33  ;;  %v846_v40 = vpack.c.b8 %v842_v17, %v838_v51  ;;  %v312_v17 = vpop.permute.xlu1 %311  ;;  %v307_v58 = vpop.permute.xlu0 %306 }
  0xba   :  { %v2063_v54 = vunpack.c.l.bf16 %v1473_v56  ;;  %v2064_v26 = vunpack.c.h.bf16 %v1473_v56  ;;  %1128 = vst [vmem:[#allocation7] sm:$0xff] %v816_v49  ;;  %1129 = vst [vmem:[#allocation7 + $0x8] sm:$0xff] %v826_v59  ;;  %v1194_v34 = vclamps-f32 %v440_v13, 448.0  ;;  %v2065_v0 = vunpack.c.l.bf16 %v1479_v61 }
  0xbb   :  { %v441_v47 = vmul.f32 %v287_v32, %v2062_v19  ;;  %v2066_v38 = vunpack.c.h.bf16 %v1479_v61  ;;  %1130 = vst [vmem:[#allocation7 + $0x10] sm:$0xff] %v836_v50  ;;  %1131 = vst [vmem:[#allocation7 + $0x18] sm:$0xff] %v846_v40  ;;  %v2067_v53 = vunpack.c.l.bf16 %v1481_v62  ;;  %v2068_v56 = vunpack.c.h.bf16 %v1481_v62 }
  0xbc   :  { %v442_v60 = vmul.f32 %v287_v32, %v2063_v54  ;;  %v443_v45 = vmul.f32 %v287_v32, %v2064_v26  ;;  %v452_v41 = vmul.f32 %v302_v42, %v2065_v0  ;;  %v848_v35 = vpack.c.f32.eXmY %v1194_v34, %v1198_v7, 61788 }
  0xbd   :  { %v1195_v63 = vclamps-f32 %v441_v47, 448.0  ;;  %v453_v5 = vmul.f32 %v302_v42, %v2066_v38  ;;  %v454_v44 = vmul.f32 %v302_v42, %v2067_v53  ;;  %v455_v32 = vmul.f32 %v302_v42, %v2068_v56  ;;  %v317_v38 = vpop.permute.xlu0 %316 }
  0xbe   :  { %v1196_v55 = vclamps-f32 %v442_v60, 448.0  ;;  %v1197_v48 = vclamps-f32 %v443_v45, 448.0  ;;  %v1206_v39 = vclamps-f32 %v452_v41, 448.0  ;;  %v2069_v49 = vunpack.c.l.bf16 %v1487_v3 }
  0xbf   :  { %v858_v36 = vpack.c.f32.eXmY %v1195_v63, %v1199_v11, 61788  ;;  %v1207_v57 = vclamps-f32 %v453_v5, 448.0  ;;  %v1208_v61 = vclamps-f32 %v454_v44, 448.0  ;;  %v1209_v51 = vclamps-f32 %v455_v32, 448.0 }
  0xc0   :  { %v868_v46 = vpack.c.f32.eXmY %v1196_v55, %v1200_v1, 61788  ;;  %v878_v33 = vpack.c.f32.eXmY %v1197_v48, %v1201_v37, 61788  ;;  %v448_v59 = vmul.f32 %v297_v43, %v2069_v49  ;;  %v2070_v52 = vunpack.c.h.bf16 %v1487_v3  ;;  %v322_v3 = vpop.permute.xlu1 %321 }
  0xc1   :  { %v2071_v19 = vunpack.c.l.bf16 %v1489_v4  ;;  %v2072_v42 = vunpack.c.h.bf16 %v1489_v4  ;;  %v2073_v7 = vunpack.c.l.bf16 %v1495_v9  ;;  %v2074_v1 = vunpack.c.h.bf16 %v1495_v9 }
  0xc2   :  { %v449_v13 = vmul.f32 %v297_v43, %v2070_v52  ;;  %v2075_v50 = vunpack.c.l.bf16 %v1497_v10  ;;  %v2076_v54 = vunpack.c.h.bf16 %v1497_v10  ;;  %v1202_v26 = vclamps-f32 %v448_v59, 448.0 }
  0xc3   :  { %v450_v62 = vmul.f32 %v297_v43, %v2071_v19  ;;  %v451_v47 = vmul.f32 %v297_v43, %v2072_v42  ;;  %v460_v11 = vmul.f32 %v312_v17, %v2073_v7  ;;  %v461_v37 = vmul.f32 %v312_v17, %v2074_v1 }
  0xc4   :  { %v462_v40 = vmul.f32 %v312_v17, %v2075_v50  ;;  %v463_v60 = vmul.f32 %v312_v17, %v2076_v54  ;;  %v1203_v45 = vclamps-f32 %v449_v13, 448.0  ;;  %v852_v5 = vpack.c.f32.eXmY %v1202_v26, %v1206_v39, 61788  ;;  %v332_v52 = vpop.permute.xlu1 %331  ;;  %v327_v50 = vpop.permute.xlu0 %326 }
  0xc5   :  { %v1204_v34 = vclamps-f32 %v450_v62, 448.0  ;;  %v1205_v63 = vclamps-f32 %v451_v47, 448.0  ;;  %v1214_v0 = vclamps-f32 %v460_v11, 448.0  ;;  %v1215_v4 = vclamps-f32 %v461_v37, 448.0 }
  0xc6   :  { %v1216_v43 = vclamps-f32 %v462_v40, 448.0  ;;  %v1217_v41 = vclamps-f32 %v463_v60, 448.0  ;;  %v862_v55 = vpack.c.f32.eXmY %v1203_v45, %v1207_v57, 61788  ;;  %v2077_v9 = vunpack.c.l.bf16 %v1503_v15 }
  0xc7   :  { %v2078_v53 = vunpack.c.h.bf16 %v1503_v15  ;;  %v872_v10 = vpack.c.f32.eXmY %v1204_v34, %v1208_v61, 61788  ;;  %v882_v56 = vpack.c.f32.eXmY %v1205_v63, %v1209_v51, 61788  ;;  %v2079_v32 = vunpack.c.l.bf16 %v1505_v16 }
  0xc8   :  { %v456_v48 = vmul.f32 %v307_v58, %v2077_v9  ;;  %v2080_v49 = vunpack.c.h.bf16 %v1505_v16  ;;  %v856_v13 = vpack.c.b8 %v852_v5, %v848_v35  ;;  %v866_v19 = vpack.c.b8 %v862_v55, %v858_v36  ;;  %v342_v5 = vpop.permute.xlu1 %341 }
  0xc9   :  { %v457_v44 = vmul.f32 %v307_v58, %v2078_v53  ;;  %v458_v17 = vmul.f32 %v307_v58, %v2079_v32  ;;  %v876_v57 = vpack.c.b8 %v872_v10, %v868_v46  ;;  %v886_v42 = vpack.c.b8 %v882_v56, %v878_v33 }
  0xca   :  { %v459_v59 = vmul.f32 %v307_v58, %v2080_v49  ;;  %v1210_v62 = vclamps-f32 %v456_v48, 448.0  ;;  %1132 = vst [vmem:[#allocation7 + $0x20] sm:$0xff] %v856_v13  ;;  %1133 = vst [vmem:[#allocation7 + $0x28] sm:$0xff] %v866_v19  ;;  %v2081_v51 = vunpack.c.l.bf16 %v1511_v21  ;;  %v2082_v1 = vunpack.c.h.bf16 %v1511_v21 }
  0xcb   :  { %v1211_v39 = vclamps-f32 %v457_v44, 448.0  ;;  %v1212_v47 = vclamps-f32 %v458_v17, 448.0  ;;  %1134 = vst [vmem:[#allocation7 + $0x30] sm:$0xff] %v876_v57  ;;  %1135 = vst [vmem:[#allocation7 + $0x38] sm:$0xff] %v886_v42  ;;  %v2083_v36 = vunpack.c.l.bf16 %v1513_v22  ;;  %v2084_v33 = vunpack.c.h.bf16 %v1513_v22  ;;  %v337_v57 = vpop.permute.xlu0 %336 }
  0xcc   :  { %v1213_v7 = vclamps-f32 %v459_v59, 448.0  ;;  %v888_v15 = vpack.c.f32.eXmY %v1210_v62, %v1214_v0, 61788  ;;  %v468_v11 = vmul.f32 %v322_v3, %v2081_v51  ;;  %v469_v16 = vmul.f32 %v322_v3, %v2082_v1 }
  0xcd   :  { %v898_v61 = vpack.c.f32.eXmY %v1211_v39, %v1215_v4, 61788  ;;  %v908_v58 = vpack.c.f32.eXmY %v1212_v47, %v1216_v43, 61788  ;;  %v470_v46 = vmul.f32 %v322_v3, %v2083_v36  ;;  %v471_v37 = vmul.f32 %v322_v3, %v2084_v33  ;;  %v352_v33 = vpop.permute.xlu1 %351 }
  0xce   :  { %v918_v35 = vpack.c.f32.eXmY %v1213_v7, %v1217_v41, 61788  ;;  %v1222_v40 = vclamps-f32 %v468_v11, 448.0  ;;  %v1223_v54 = vclamps-f32 %v469_v16, 448.0  ;;  %v2085_v60 = vunpack.c.l.bf16 %v1519_v27 }
  0xcf   :  { %v2086_v45 = vunpack.c.h.bf16 %v1519_v27  ;;  %v1224_v34 = vclamps-f32 %v470_v46, 448.0  ;;  %v1225_v63 = vclamps-f32 %v471_v37, 448.0  ;;  %v2087_v0 = vunpack.c.l.bf16 %v1521_v28  ;;  %v1799_v37 = vld [vmem:[#allocation2 + $0x1e0] sm:$0xff] }
  0xd0   :  { %v464_v26 = vmul.f32 %v317_v38, %v2085_v60  ;;  %v2088_v43 = vunpack.c.h.bf16 %v1521_v28  ;;  %v2089_v55 = vunpack.c.l.bf16 %v1527_v20  ;;  %v2090_v48 = vunpack.c.h.bf16 %v1527_v20 }
  0xd1   :  { %v465_v21 = vmul.f32 %v317_v38, %v2086_v45  ;;  %v466_v4 = vmul.f32 %v317_v38, %v2087_v0  ;;  %v2091_v10 = vunpack.c.l.bf16 %v1529_v23  ;;  %v2092_v32 = vunpack.c.h.bf16 %v1529_v23 }
  0xd2   :  { %v467_v41 = vmul.f32 %v317_v38, %v2088_v43  ;;  %v1218_v22 = vclamps-f32 %v464_v26, 448.0  ;;  %v476_v9 = vmul.f32 %v332_v52, %v2089_v55  ;;  %v477_v53 = vmul.f32 %v332_v52, %v2090_v48 }
  0xd3   :  { %v1219_v3 = vclamps-f32 %v465_v21, 448.0  ;;  %v1220_v44 = vclamps-f32 %v466_v4, 448.0  ;;  %v478_v56 = vmul.f32 %v332_v52, %v2091_v10  ;;  %v479_v17 = vmul.f32 %v332_v52, %v2092_v32 }
  0xd4   :  { %v1221_v27 = vclamps-f32 %v467_v41, 448.0  ;;  %v892_v49 = vpack.c.f32.eXmY %v1218_v22, %v1222_v40, 61788  ;;  %v1230_v38 = vclamps-f32 %v476_v9, 448.0  ;;  %v1231_v59 = vclamps-f32 %v477_v53, 448.0  ;;  %v347_v22 = vpop.permute.xlu0 %346 }
  0xd5   :  { %v902_v28 = vpack.c.f32.eXmY %v1219_v3, %v1223_v54, 61788  ;;  %v912_v13 = vpack.c.f32.eXmY %v1220_v44, %v1224_v34, 61788  ;;  %v1232_v62 = vclamps-f32 %v478_v56, 448.0  ;;  %v1233_v39 = vclamps-f32 %v479_v17, 448.0 }
  0xd6   :  { %v922_v19 = vpack.c.f32.eXmY %v1221_v27, %v1225_v63, 61788  ;;  %v896_v42 = vpack.c.b8 %v892_v49, %v888_v15  ;;  %v2093_v47 = vunpack.c.l.bf16 %v1535_v18  ;;  %v2094_v51 = vunpack.c.h.bf16 %v1535_v18 }
  0xd7   :  { %v906_v20 = vpack.c.b8 %v902_v28, %v898_v61  ;;  %v916_v1 = vpack.c.b8 %v912_v13, %v908_v58  ;;  %v2095_v52 = vunpack.c.l.bf16 %v1537_v29  ;;  %v2096_v36 = vunpack.c.h.bf16 %v1537_v29  ;;  %v362_v28 = vpop.permute.xlu1 %361 }
  0xd8   :  { %v472_v7 = vmul.f32 %v327_v50, %v2093_v47  ;;  %v473_v11 = vmul.f32 %v327_v50, %v2094_v51  ;;  %v926_v23 = vpack.c.b8 %v922_v19, %v918_v35  ;;  %1136 = vst [vmem:[#allocation7 + $0x40] sm:$0xff] %v896_v42  ;;  %v2097_v40 = vunpack.c.l.bf16 %v1543_v14 }
  0xd9   :  { %v474_v16 = vmul.f32 %v327_v50, %v2095_v52  ;;  %v475_v46 = vmul.f32 %v327_v50, %v2096_v36  ;;  %1137 = vst [vmem:[#allocation7 + $0x48] sm:$0xff] %v906_v20  ;;  %v2098_v18 = vunpack.c.h.bf16 %v1543_v14  ;;  %1138 = vst [vmem:[#allocation7 + $0x50] sm:$0xff] %v916_v1  ;;  %v2099_v29 = vunpack.c.l.bf16 %v1545_v25 }
  0xda   :  { %v1226_v15 = vclamps-f32 %v472_v7, 448.0  ;;  %v1227_v61 = vclamps-f32 %v473_v11, 448.0  ;;  %v484_v54 = vmul.f32 %v342_v5, %v2097_v40  ;;  %1139 = vst [vmem:[#allocation7 + $0x58] sm:$0xff] %v926_v23  ;;  %v2100_v26 = vunpack.c.h.bf16 %v1545_v25 }
  0xdb   :  { %v485_v58 = vmul.f32 %v342_v5, %v2098_v18  ;;  %v1228_v35 = vclamps-f32 %v474_v16, 448.0  ;;  %v1229_v60 = vclamps-f32 %v475_v46, 448.0  ;;  %v486_v50 = vmul.f32 %v342_v5, %v2099_v29 }
  0xdc   :  { %v487_v45 = vmul.f32 %v342_v5, %v2100_v26  ;;  %v928_v21 = vpack.c.f32.eXmY %v1226_v15, %v1230_v38, 61788  ;;  %v938_v34 = vpack.c.f32.eXmY %v1227_v61, %v1231_v59, 61788  ;;  %v224_v63 = vunpack.c.l.bf16 %v1799_v37 }
  0xdd   :  { %v225_v0 = vunpack.c.h.bf16 %v1799_v37  ;;  %v948_v4 = vpack.c.f32.eXmY %v1228_v35, %v1232_v62, 61788  ;;  %v958_v43 = vpack.c.f32.eXmY %v1229_v60, %v1233_v39, 61788  ;;  %v1238_v14 = vclamps-f32 %v484_v54, 448.0  ;;  %v372_v60 = vpop.permute.xlu1 %371 }
  0xde   :  { %v1239_v41 = vclamps-f32 %v485_v58, 448.0  ;;  %v2101_v3 = vunpack.c.l.bf16 %v1551_v12  ;;  %v2102_v9 = vunpack.c.h.bf16 %v1551_v12  ;;  %v2103_v25 = vunpack.c.l.bf16 %v1553_v31 }
  0xdf   :  { %v2104_v53 = vunpack.c.h.bf16 %v1553_v31  ;;  %v1240_v27 = vclamps-f32 %v486_v50, 448.0  ;;  %v1241_v10 = vclamps-f32 %v487_v45, 448.0  ;;  %v2105_v56 = vunpack.c.l.bf16 %v1559_v8 }
  0xe0   :  { %v480_v55 = vmul.f32 %v337_v57, %v2101_v3  ;;  %v481_v48 = vmul.f32 %v337_v57, %v2102_v9  ;;  %v482_v5 = vmul.f32 %v337_v57, %v2103_v25  ;;  %v2106_v17 = vunpack.c.h.bf16 %v1559_v8  ;;  %v2118_v9 = vld [vmem:[#allocation12_spill] sm:$0xff] }
  0xe1   :  { %v483_v44 = vmul.f32 %v337_v57, %v2104_v53  ;;  %v492_v32 = vmul.f32 %v352_v33, %v2105_v56  ;;  %v2107_v19 = vunpack.c.l.bf16 %v1561_v24  ;;  %v2108_v39 = vunpack.c.h.bf16 %v1561_v24  ;;  %v357_v24 = vpop.permute.xlu0 %356 }
  0xe2   :  { %v493_v49 = vmul.f32 %v352_v33, %v2106_v17  ;;  %v1234_v38 = vclamps-f32 %v480_v55, 448.0  ;;  %v1235_v59 = vclamps-f32 %v481_v48, 448.0  ;;  %v1236_v13 = vclamps-f32 %v482_v5, 448.0 }
  0xe3   :  { %v1237_v12 = vclamps-f32 %v483_v44, 448.0  ;;  %v494_v62 = vmul.f32 %v352_v33, %v2107_v19  ;;  %v495_v31 = vmul.f32 %v352_v33, %v2108_v39  ;;  %v1246_v57 = vclamps-f32 %v492_v32, 448.0 }
  0xe4   :  { %v1247_v42 = vclamps-f32 %v493_v49, 448.0  ;;  %v932_v20 = vpack.c.f32.eXmY %v1234_v38, %v1238_v14, 61788  ;;  %v942_v47 = vpack.c.f32.eXmY %v1235_v59, %v1239_v41, 61788  ;;  %v2109_v7 = vunpack.c.l.bf16 %v1567_v6  ;;  %v2115_v14 = vld [vmem:[#allocation11_spill] sm:$0xff] }
  0xe5   :  { %v2110_v8 = vunpack.c.h.bf16 %v1567_v6  ;;  %v952_v1 = vpack.c.f32.eXmY %v1236_v13, %v1240_v27, 61788  ;;  %v962_v23 = vpack.c.f32.eXmY %v1237_v12, %v1241_v10, 61788  ;;  %v2111_v52 = vunpack.c.l.bf16 %v1569_v30  ;;  %v2121_v27 = vld [vmem:[#allocation13_spill] sm:$0xff]  ;;  %v367_v49 = vpop.permute.xlu0 %366 }
  0xe6   :  { %v488_v51 = vmul.f32 %v347_v22, %v2109_v7  ;;  %v2112_v36 = vunpack.c.h.bf16 %v1569_v30  ;;  %v936_v33 = vpack.c.b8 %v932_v20, %v928_v21  ;;  %v946_v15 = vpack.c.b8 %v942_v47, %v938_v34  ;;  %v382_v20 = vpop.permute.xlu1 %381 }
  0xe7   :  { %v489_v11 = vmul.f32 %v347_v22, %v2110_v8  ;;  %v490_v16 = vmul.f32 %v347_v22, %v2111_v52  ;;  %v956_v54 = vpack.c.b8 %v952_v1, %v948_v4  ;;  %v966_v18 = vpack.c.b8 %v962_v23, %v958_v43 }
  0xe8   :  { %v491_v46 = vmul.f32 %v347_v22, %v2112_v36  ;;  %v1242_v61 = vclamps-f32 %v488_v51, 448.0  ;;  %v1248_v58 = vclamps-f32 %v494_v62, 448.0  ;;  %v1249_v35 = vclamps-f32 %v495_v31, 448.0  ;;  %1140 = vst [vmem:[#allocation7 + $0x60] sm:$0xff] %v936_v33  ;;  %1141 = vst [vmem:[#allocation7 + $0x68] sm:$0xff] %v946_v15  ;;  %v2127_v51 = vld [vmem:[#allocation15_spill] sm:$0xff] }
  0xe9   :  { %v1243_v40 = vclamps-f32 %v489_v11, 448.0  ;;  %v1244_v6 = vclamps-f32 %v490_v16, 448.0  ;;  %v2113_v50 = vunpack.c.l.bf16 %v1575_v2  ;;  %v2114_v30 = vunpack.c.h.bf16 %v1575_v2  ;;  %1142 = vst [vmem:[#allocation7 + $0x70] sm:$0xff] %v956_v54  ;;  %1143 = vst [vmem:[#allocation7 + $0x78] sm:$0xff] %v966_v18  ;;  %v2130_v15 = vld [vmem:[#allocation16_spill] sm:$0xff] }
  0xea   :  { %v1245_v29 = vclamps-f32 %v491_v46, 448.0  ;;  %v968_v21 = vpack.c.f32.eXmY %v1242_v61, %v1246_v57, 61788  ;;  %v2116_v4 = vunpack.c.l.bf16 %v2115_v14  ;;  %v2117_v41 = vunpack.c.h.bf16 %v2115_v14  ;;  %v2136_v14 = vld [vmem:[#allocation18_spill] sm:$0xff] }
  0xeb   :  { %v500_v26 = vmul.f32 %v362_v28, %v2113_v50  ;;  %v501_v45 = vmul.f32 %v362_v28, %v2114_v30  ;;  %v978_v34 = vpack.c.f32.eXmY %v1243_v40, %v1247_v42, 61788  ;;  %v2119_v48 = vunpack.c.l.bf16 %v2118_v9 }
  0xec   :  { %v502_v43 = vmul.f32 %v362_v28, %v2116_v4  ;;  %v503_v22 = vmul.f32 %v362_v28, %v2117_v41  ;;  %v2120_v5 = vunpack.c.h.bf16 %v2118_v9  ;;  %v2122_v10 = vunpack.c.l.bf16 %v2121_v27  ;;  %v2124_v28 = vld [vmem:[#allocation14_spill] sm:$0xff] }
  0xed   :  { %v1254_v3 = vclamps-f32 %v500_v26, 448.0  ;;  %v1255_v55 = vclamps-f32 %v501_v45, 448.0  ;;  %v496_v25 = vmul.f32 %v357_v24, %v2119_v48  ;;  %v2123_v32 = vunpack.c.h.bf16 %v2121_v27  ;;  %v377_v45 = vpop.permute.xlu0 %376 }
  0xee   :  { %v497_v53 = vmul.f32 %v357_v24, %v2120_v5  ;;  %v1256_v2 = vclamps-f32 %v502_v43, 448.0  ;;  %v1257_v44 = vclamps-f32 %v503_v22, 448.0  ;;  %v498_v56 = vmul.f32 %v357_v24, %v2122_v10  ;;  %v392_v5 = vpop.permute.xlu1 %391 }
  0xef   :  { %v499_v17 = vmul.f32 %v357_v24, %v2123_v32  ;;  %v1250_v38 = vclamps-f32 %v496_v25, 448.0  ;;  %v2125_v13 = vunpack.c.l.bf16 %v2124_v28  ;;  %v2126_v19 = vunpack.c.h.bf16 %v2124_v28 }
  0xf0   :  { %v1251_v59 = vclamps-f32 %v497_v53, 448.0  ;;  %v988_v39 = vpack.c.f32.eXmY %v1244_v6, %v1248_v58, 61788  ;;  %v998_v31 = vpack.c.f32.eXmY %v1245_v29, %v1249_v35, 61788  ;;  %v1252_v57 = vclamps-f32 %v498_v56, 448.0  ;;  %v1863_v58 = vld [vmem:[#allocation2 + $0x1e8] sm:$0xff]  ;;  %v2133_v29 = vld [vmem:[#allocation17_spill] sm:$0xff] }
  0xf1   :  { %v508_v12 = vmul.f32 %v372_v60, %v2125_v13  ;;  %v509_v62 = vmul.f32 %v372_v60, %v2126_v19  ;;  %v1253_v42 = vclamps-f32 %v499_v17, 448.0  ;;  %v972_v47 = vpack.c.f32.eXmY %v1250_v38, %v1254_v3, 61788  ;;  %v2139_v3 = vld [vmem:[#allocation19_spill] sm:$0xff] }
  0xf2   :  { %v982_v7 = vpack.c.f32.eXmY %v1251_v59, %v1255_v55, 61788  ;;  %v2128_v8 = vunpack.c.l.bf16 %v2127_v51  ;;  %v2129_v1 = vunpack.c.h.bf16 %v2127_v51  ;;  %v992_v52 = vpack.c.f32.eXmY %v1252_v57, %v1256_v2, 61788  ;;  %v2142_v59 = vld [vmem:[#allocation20_spill] sm:$0xff] }
  0xf3   :  { %v1002_v16 = vpack.c.f32.eXmY %v1253_v42, %v1257_v44, 61788  ;;  %v1262_v36 = vclamps-f32 %v508_v12, 448.0  ;;  %v1263_v46 = vclamps-f32 %v509_v62, 448.0  ;;  %v976_v24 = vpack.c.b8 %v972_v47, %v968_v21  ;;  %v2145_v62 = vld [vmem:[#allocation21_spill] sm:$0xff] }
  0xf4   :  { %v510_v11 = vmul.f32 %v372_v60, %v2128_v8  ;;  %v511_v23 = vmul.f32 %v372_v60, %v2129_v1  ;;  %v986_v33 = vpack.c.b8 %v982_v7, %v978_v34  ;;  %v2131_v61 = vunpack.c.l.bf16 %v2130_v15  ;;  %v2148_v7 = vld [vmem:[#allocation22_spill] sm:$0xff] }
  0xf5   :  { %v2132_v54 = vunpack.c.h.bf16 %v2130_v15  ;;  %v996_v35 = vpack.c.b8 %v992_v52, %v988_v39  ;;  %v1006_v6 = vpack.c.b8 %v1002_v16, %v998_v31  ;;  %v2134_v50 = vunpack.c.l.bf16 %v2133_v29  ;;  %1144 = vst [vmem:[#allocation7 + $0x80] sm:$0xff] %v976_v24  ;;  %v2151_v15 = vld [vmem:[#allocation23_spill] sm:$0xff] }
  0xf6   :  { %v504_v40 = vmul.f32 %v367_v49, %v2131_v61  ;;  %v2135_v60 = vunpack.c.h.bf16 %v2133_v29  ;;  %1145 = vst [vmem:[#allocation7 + $0x88] sm:$0xff] %v986_v33  ;;  %v2137_v4 = vunpack.c.l.bf16 %v2136_v14  ;;  %v2138_v41 = vunpack.c.h.bf16 %v2136_v14  ;;  %v2157_v14 = vld [vmem:[#allocation25_spill] sm:$0xff] }
  0xf7   :  { %v505_v18 = vmul.f32 %v367_v49, %v2132_v54  ;;  %v506_v26 = vmul.f32 %v367_v49, %v2134_v50  ;;  %1146 = vst [vmem:[#allocation7 + $0x90] sm:$0xff] %v996_v35  ;;  %1147 = vst [vmem:[#allocation7 + $0x98] sm:$0xff] %v1006_v6  ;;  %v2140_v55 = vunpack.c.l.bf16 %v2139_v3  ;;  %v2141_v48 = vunpack.c.h.bf16 %v2139_v3  ;;  %v402_v35 = vpop.permute.xlu1 %401  ;;  %v2154_v50 = vld [vmem:[#allocation24_spill] sm:$0xff] }
  0xf8   :  { %v507_v30 = vmul.f32 %v367_v49, %v2135_v60  ;;  %v1258_v21 = vclamps-f32 %v504_v40, 448.0  ;;  %v516_v43 = vmul.f32 %v382_v20, %v2137_v4  ;;  %v517_v22 = vmul.f32 %v382_v20, %v2138_v41 }
  0xf9   :  { %v1259_v34 = vclamps-f32 %v505_v18, 448.0  ;;  %v518_v9 = vmul.f32 %v382_v20, %v2140_v55  ;;  %v519_v25 = vmul.f32 %v382_v20, %v2141_v48  ;;  %v226_v53 = vunpack.c.l.bf16 %v1863_v58 }
  0xfa   :  { %v227_v2 = vunpack.c.h.bf16 %v1863_v58  ;;  %v1264_v44 = vclamps-f32 %v510_v11, 448.0  ;;  %v1265_v27 = vclamps-f32 %v511_v23, 448.0  ;;  %v1260_v10 = vclamps-f32 %v506_v26, 448.0  ;;  %v387_v23 = vpop.permute.xlu0 %386 }
  0xfb   :  { %v1261_v56 = vclamps-f32 %v507_v30, 448.0  ;;  %v1008_v32 = vpack.c.f32.eXmY %v1258_v21, %v1262_v36, 61788  ;;  %v1018_v17 = vpack.c.f32.eXmY %v1259_v34, %v1263_v46, 61788  ;;  %v1270_v49 = vclamps-f32 %v516_v43, 448.0 }
  0xfc   :  { %v1271_v38 = vclamps-f32 %v517_v22, 448.0  ;;  %v2143_v28 = vunpack.c.l.bf16 %v2142_v59  ;;  %v2144_v12 = vunpack.c.h.bf16 %v2142_v59  ;;  %v2146_v39 = vunpack.c.l.bf16 %v2145_v62 }
  0xfd   :  { %v2147_v57 = vunpack.c.h.bf16 %v2145_v62  ;;  %v1272_v20 = vclamps-f32 %v518_v9, 448.0  ;;  %v1273_v47 = vclamps-f32 %v519_v25, 448.0  ;;  %v2149_v51 = vunpack.c.l.bf16 %v2148_v7 }
  0xfe   :  { %v512_v13 = vmul.f32 %v377_v45, %v2143_v28  ;;  %v513_v19 = vmul.f32 %v377_v45, %v2144_v12  ;;  %v514_v31 = vmul.f32 %v377_v45, %v2146_v39  ;;  %v2150_v11 = vunpack.c.h.bf16 %v2148_v7  ;;  %v2166_v7 = vld [vmem:[#allocation28_spill] sm:$0xff] }
  0xff   :  { %v515_v42 = vmul.f32 %v377_v45, %v2147_v57  ;;  %v524_v8 = vmul.f32 %v392_v5, %v2149_v51  ;;  %v1028_v24 = vpack.c.f32.eXmY %v1260_v10, %v1264_v44, 61788  ;;  %v1038_v33 = vpack.c.f32.eXmY %v1261_v56, %v1265_v27, 61788  ;;  %v397_v10 = vpop.permute.xlu0 %396 }
 0x100   :  { %v525_v1 = vmul.f32 %v392_v5, %v2150_v11  ;;  %v1266_v52 = vclamps-f32 %v512_v13, 448.0  ;;  %v1267_v16 = vclamps-f32 %v513_v19, 448.0  ;;  %v1268_v36 = vclamps-f32 %v514_v31, 448.0  ;;  %v2163_v19 = vld [vmem:[#allocation27_spill] sm:$0xff] }
 0x101   :  { %v1269_v46 = vclamps-f32 %v515_v42, 448.0  ;;  %v2152_v61 = vunpack.c.l.bf16 %v2151_v15  ;;  %v2153_v54 = vunpack.c.h.bf16 %v2151_v15  ;;  %v2155_v26 = vunpack.c.l.bf16 %v2154_v50  ;;  %v412_v42 = vpop.permute.xlu1 %411 }
 0x102   :  { %v1012_v6 = vpack.c.f32.eXmY %v1266_v52, %v1270_v49, 61788  ;;  %v1022_v29 = vpack.c.f32.eXmY %v1267_v16, %v1271_v38, 61788  ;;  %v2156_v30 = vunpack.c.h.bf16 %v2154_v50  ;;  %v2158_v4 = vunpack.c.l.bf16 %v2157_v14  ;;  %v2160_v38 = vld [vmem:[#allocation26_spill] sm:$0xff]  ;;  %v2169_v16 = vld [vmem:[#allocation29_spill] sm:$0xff] }
 0x103   :  { %v526_v40 = vmul.f32 %v392_v5, %v2152_v61  ;;  %v527_v18 = vmul.f32 %v392_v5, %v2153_v54  ;;  %v520_v60 = vmul.f32 %v387_v23, %v2155_v26  ;;  %v1032_v21 = vpack.c.f32.eXmY %v1268_v36, %v1272_v20, 61788  ;;  %v407_v50 = vpop.permute.xlu0 %406 }
 0x104   :  { %v521_v45 = vmul.f32 %v387_v23, %v2156_v30  ;;  %v1042_v34 = vpack.c.f32.eXmY %v1269_v46, %v1273_v47, 61788  ;;  %v522_v43 = vmul.f32 %v387_v23, %v2158_v4  ;;  %v2159_v41 = vunpack.c.h.bf16 %v2157_v14  ;;  %v2172_v30 = vld [vmem:[#allocation30_spill] sm:$0xff] }
 0x105   :  { %v1016_v3 = vpack.c.b8 %v1012_v6, %v1008_v32  ;;  %v1026_v55 = vpack.c.b8 %v1022_v29, %v1018_v17  ;;  %v1278_v9 = vclamps-f32 %v524_v8, 448.0  ;;  %v1279_v48 = vclamps-f32 %v525_v1, 448.0 }
 0x106   :  { %v523_v22 = vmul.f32 %v387_v23, %v2159_v41  ;;  %v1036_v25 = vpack.c.b8 %v1032_v21, %v1028_v24  ;;  %v1046_v5 = vpack.c.b8 %v1042_v34, %v1038_v33  ;;  %v1280_v44 = vclamps-f32 %v526_v40, 448.0  ;;  %v2175_v41 = vld [vmem:[#allocation31_spill] sm:$0xff] }
 0x107   :  { %v1281_v27 = vclamps-f32 %v527_v18, 448.0  ;;  %1148 = vst [vmem:[#allocation7 + $0xa0] sm:$0xff] %v1016_v3  ;;  %1149 = vst [vmem:[#allocation7 + $0xa8] sm:$0xff] %v1026_v55  ;;  %v1274_v56 = vclamps-f32 %v520_v60, 448.0  ;;  %v1275_v49 = vclamps-f32 %v521_v45, 448.0  ;;  %v2161_v59 = vunpack.c.l.bf16 %v2160_v38 }
 0x108   :  { %v2162_v13 = vunpack.c.h.bf16 %v2160_v38  ;;  %1150 = vst [vmem:[#allocation7 + $0xb0] sm:$0xff] %v1036_v25  ;;  %1151 = vst [vmem:[#allocation7 + $0xb8] sm:$0xff] %v1046_v5  ;;  %v1276_v32 = vclamps-f32 %v522_v43, 448.0  ;;  %v1277_v17 = vclamps-f32 %v523_v22, 448.0  ;;  %v2164_v62 = vunpack.c.l.bf16 %v2163_v19 }
 0x109   :  { %v532_v28 = vmul.f32 %v402_v35, %v2161_v59  ;;  %v2165_v31 = vunpack.c.h.bf16 %v2163_v19  ;;  %v2167_v51 = vunpack.c.l.bf16 %v2166_v7  ;;  %v2168_v11 = vunpack.c.h.bf16 %v2166_v7 }
 0x10a   :  { %v533_v12 = vmul.f32 %v402_v35, %v2162_v13  ;;  %v534_v39 = vmul.f32 %v402_v35, %v2164_v62  ;;  %v2170_v36 = vunpack.c.l.bf16 %v2169_v16  ;;  %v2171_v24 = vunpack.c.h.bf16 %v2169_v16 }
 0x10b   :  { %v535_v57 = vmul.f32 %v402_v35, %v2165_v31  ;;  %v1286_v20 = vclamps-f32 %v532_v28, 448.0  ;;  %v528_v8 = vmul.f32 %v397_v10, %v2167_v51  ;;  %v529_v1 = vmul.f32 %v397_v10, %v2168_v11  ;;  %v2181_v28 = vld [vmem:[#allocation33_spill] sm:$0xff]  ;;  %v2187_v51 = vld [vmem:[#allocation35_spill] sm:$0xff] }
 0x10c   :  { %v1287_v47 = vclamps-f32 %v533_v12, 448.0  ;;  %v1288_v23 = vclamps-f32 %v534_v39, 448.0  ;;  %v530_v46 = vmul.f32 %v397_v10, %v2170_v36  ;;  %v531_v33 = vmul.f32 %v397_v10, %v2171_v24  ;;  %v2184_v39 = vld [vmem:[#allocation34_spill] sm:$0xff] }
 0x10d   :  { %v1289_v52 = vclamps-f32 %v535_v57, 448.0  ;;  %v1048_v15 = vpack.c.f32.eXmY %v1274_v56, %v1278_v9, 61788  ;;  %v1058_v61 = vpack.c.f32.eXmY %v1275_v49, %v1279_v48, 61788  ;;  %v1282_v40 = vclamps-f32 %v528_v8, 448.0  ;;  %v422_v48 = vpop.permute.xlu1 %421 }
 0x10e   :  { %v1283_v54 = vclamps-f32 %v529_v1, 448.0  ;;  %v1068_v18 = vpack.c.f32.eXmY %v1276_v32, %v1280_v44, 61788  ;;  %v1078_v35 = vpack.c.f32.eXmY %v1277_v17, %v1281_v27, 61788  ;;  %v1284_v6 = vclamps-f32 %v530_v46, 448.0  ;;  %v2178_v44 = vld [vmem:[#allocation32_spill] sm:$0xff] }
 0x10f   :  { %v1285_v29 = vclamps-f32 %v531_v33, 448.0  ;;  %v1052_v26 = vpack.c.f32.eXmY %v1282_v40, %v1286_v20, 61788  ;;  %v2173_v45 = vunpack.c.l.bf16 %v2172_v30  ;;  %v2174_v34 = vunpack.c.h.bf16 %v2172_v30 }
 0x110   :  { %v1062_v60 = vpack.c.f32.eXmY %v1283_v54, %v1287_v47, 61788  ;;  %v1072_v4 = vpack.c.f32.eXmY %v1284_v6, %v1288_v23, 61788  ;;  %v2176_v22 = vunpack.c.l.bf16 %v2175_v41  ;;  %v2177_v55 = vunpack.c.h.bf16 %v2175_v41 }
 0x111   :  { %v540_v21 = vmul.f32 %v412_v42, %v2173_v45  ;;  %v541_v14 = vmul.f32 %v412_v42, %v2174_v34  ;;  %v1082_v43 = vpack.c.f32.eXmY %v1285_v29, %v1289_v52, 61788  ;;  %v1056_v25 = vpack.c.b8 %v1052_v26, %v1048_v15  ;;  %v417_v52 = vpop.permute.xlu0 %416 }
 0x112   :  { %v542_v3 = vmul.f32 %v412_v42, %v2176_v22  ;;  %v543_v9 = vmul.f32 %v412_v42, %v2177_v55  ;;  %v1066_v5 = vpack.c.b8 %v1062_v60, %v1058_v61  ;;  %v2179_v27 = vunpack.c.l.bf16 %v2178_v44 }
 0x113   :  { %v2180_v56 = vunpack.c.h.bf16 %v2178_v44  ;;  %v1076_v38 = vpack.c.b8 %v1072_v4, %v1068_v18  ;;  %v1086_v59 = vpack.c.b8 %v1082_v43, %v1078_v35  ;;  %v2182_v13 = vunpack.c.l.bf16 %v2181_v28  ;;  %1152 = vst [vmem:[#allocation7 + $0xc0] sm:$0xff] %v1056_v25 }
 0x114   :  { %v536_v10 = vmul.f32 %v407_v50, %v2179_v27  ;;  %v2183_v32 = vunpack.c.h.bf16 %v2181_v28  ;;  %1153 = vst [vmem:[#allocation7 + $0xc8] sm:$0xff] %v1066_v5  ;;  %v1294_v19 = vclamps-f32 %v540_v21, 448.0  ;;  %v1295_v62 = vclamps-f32 %v541_v14, 448.0 }
 0x115   :  { %v537_v49 = vmul.f32 %v407_v50, %v2180_v56  ;;  %v538_v12 = vmul.f32 %v407_v50, %v2182_v13  ;;  %v2185_v31 = vunpack.c.l.bf16 %v2184_v39  ;;  %v2186_v42 = vunpack.c.h.bf16 %v2184_v39  ;;  %1154 = vst [vmem:[#allocation7 + $0xd0] sm:$0xff] %v1076_v38  ;;  %1155 = vst [vmem:[#allocation7 + $0xd8] sm:$0xff] %v1086_v59 }
 0x116   :  { %v539_v17 = vmul.f32 %v407_v50, %v2183_v32  ;;  %v1290_v47 = vclamps-f32 %v536_v10, 448.0  ;;  %v2188_v8 = vunpack.c.l.bf16 %v2187_v51  ;;  %v2189_v1 = vunpack.c.h.bf16 %v2187_v51 }
 0x117   :  { %v548_v57 = vmul.f32 %v422_v48, %v2185_v31  ;;  %v549_v20 = vmul.f32 %v422_v48, %v2186_v42  ;;  %v1291_v7 = vclamps-f32 %v537_v49, 448.0  ;;  %v1296_v16 = vclamps-f32 %v542_v3, 448.0 }
 0x118   :  { %v550_v11 = vmul.f32 %v422_v48, %v2188_v8  ;;  %v551_v23 = vmul.f32 %v422_v48, %v2189_v1  ;;  %v1297_v36 = vclamps-f32 %v543_v9, 448.0  ;;  %v1292_v46 = vclamps-f32 %v538_v12, 448.0 }
 0x119   :  { %v1293_v24 = vclamps-f32 %v539_v17, 448.0  ;;  %v1302_v33 = vclamps-f32 %v548_v57, 448.0  ;;  %v1303_v15 = vclamps-f32 %v549_v20, 448.0  ;;  %v544_v61 = vmul.f32 %v417_v52, %v224_v63 }
 0x11a   :  { %v545_v40 = vmul.f32 %v417_v52, %v225_v0  ;;  %v546_v54 = vmul.f32 %v417_v52, %v226_v53  ;;  %v547_v18 = vmul.f32 %v417_v52, %v227_v2  ;;  %v1088_v35 = vpack.c.f32.eXmY %v1290_v47, %v1294_v19, 61788 }
 0x11b   :  { %v1098_v6 = vpack.c.f32.eXmY %v1291_v7, %v1295_v62, 61788  ;;  %v1304_v29 = vclamps-f32 %v550_v11, 448.0  ;;  %v1305_v50 = vclamps-f32 %v551_v23, 448.0  ;;  %v1298_v26 = vclamps-f32 %v544_v61, 448.0 }
 0x11c   :  { %v1299_v60 = vclamps-f32 %v545_v40, 448.0  ;;  %v1300_v30 = vclamps-f32 %v546_v54, 448.0  ;;  %v1301_v45 = vclamps-f32 %v547_v18, 448.0  ;;  %v1108_v21 = vpack.c.f32.eXmY %v1292_v46, %v1296_v16, 61788 }
 0x11d   :  { %v1118_v34 = vpack.c.f32.eXmY %v1293_v24, %v1297_v36, 61788  ;;  %v1092_v37 = vpack.c.f32.eXmY %v1298_v26, %v1302_v33, 61788 }
 0x11e   :  { %v1102_v63 = vpack.c.f32.eXmY %v1299_v60, %v1303_v15, 61788  ;;  %v1112_v0 = vpack.c.f32.eXmY %v1300_v30, %v1304_v29, 61788 }
 0x11f   :  { %v1122_v14 = vpack.c.f32.eXmY %v1301_v45, %v1305_v50, 61788  ;;  %v1096_v53 = vpack.c.b8 %v1092_v37, %v1088_v35 }
 0x120   :  { %v1106_v4 = vpack.c.b8 %v1102_v63, %v1098_v6  ;;  %v1116_v58 = vpack.c.b8 %v1112_v0, %v1108_v21 }
 0x121   :  { %v1126_v2 = vpack.c.b8 %v1122_v14, %v1118_v34  ;;  %1156 = vst [vmem:[#allocation7 + $0xe0] sm:$0xff] %v1096_v53 }
 0x122   :  { %1157 = vst [vmem:[#allocation7 + $0xe8] sm:$0xff] %v1106_v4  ;;  %1158 = vst [vmem:[#allocation7 + $0xf0] sm:$0xff] %v1116_v58 }
 0x123   :  { %1159 = vst [vmem:[#allocation7 + $0xf8] sm:$0xff] %v1126_v2 }
 0x124   :  { %1373 = shalt.err (!%p1370_p6)
}
 0x125   :  { %s1374_s12 = scalar_lea.hbm %s1965_s2, 4096 }
 0x126   :  { %p1375_p7 = scmp.ne.s32.totalorder %s1965_s2, %s1374_s12  ;;  %p1378_p8 = scmp.lt.u32.totalorder %s1374_s12, %s1965_s2 }
 0x128   :  { %p1380_p9 = pnand %p1378_p8, %p1375_p7 }
 0x12a   :  { %1383 = shalt.err (!%p1380_p9)
}
 0x12b   :  { %s1398_s17 = smov 512   ;;  %s1399_s18 = smov 32  }
 0x12c   :  { %1171 = dma.vmem_to_hbm [thread:$0]  %s1166_s8, 4096, %s1965_s2, [#allocation4], %s1398_s17, %s1398_s17, %s1399_s18  }
 0x12d   :  { %1388 = dma.done.wait [#allocation4], 4096  }
 0x12e   :  { %1389 = vsyncadd [#allocation4], 4294963200 }
 0x12f   :  { %1175 = vsyncpa [#allocation3], 1 }
 0x130   :  { %1176 = vsyncpa [#allocation6], 1 }
 0x131   :  { %1177 = vsyncpa [#allocation4], 1 }

// kernel: _fp8_gemms_pipeline.7
= control target key start
LH: loop header
LB: loop body
LE: loop exit
PB: predicated region body
PF: predicated region fallthrough
CT: control target
= control target key end

     0   :  { %9 = vsyncpa [#allocation3], 0  ;;  %s1663_s0 = inlined_call_operand.hbm [shape: f8e4m3fn[256,512], index: 0, kind: input, shape index: {}]   ;;  %s1664_s1 = inlined_call_operand.hbm [shape: f8e4m3fn[512,256], index: 1, kind: input, shape index: {}]   ;;  %s1665_s2 = inlined_call_operand.hbm [shape: f32[256,1], index: 2, kind: input, shape index: {}]   ;;  %s1666_s3 = inlined_call_operand.hbm [shape: f32[1,256], index: 3, kind: input, shape index: {}]   ;;  %s1667_s4 = inlined_call_operand.hbm [shape: bf16[256,256], index: 4, kind: output, shape index: {}]  }
   0x1   :  { %10 = vsyncpa [#allocation6], 0 }
   0x2   :  { %11 = vsyncpa [#allocation9], 0 }
   0x3   :  { %12 = vsyncpa [#allocation4], 0  ;;  %s1484_s15 = smov [#allocation5]   ;;  %s1366_s19 = scalar_lea.hbm %s1664_s1, 4096 }
   0x4   :  { %s30_s16 = sshll.u32 %s1484_s15, 4  ;;  %p1367_p0 = scmp.ne.s32.totalorder %s1664_s1, %s1366_s19  ;;  %s31_s16 = int_to_ptr.vmem [resolvable:$true] %s30_s16 }
   0x5   :  { %p1370_p1 = scmp.lt.u32.totalorder %s1366_s19, %s1664_s1 }
   0x7   :  { %p1372_p2 = pnand %p1370_p1, %p1367_p0 }
   0x9   :  { %1375 = shalt.err (!%p1372_p2)
}
   0xa   :  { %s1376_s24 = scalar_lea.vmem %s31_s16, 4096  ;;  %p1381_p4 = scmp.lt.s32.totalorder %s31_s16, %s31_s16 }
   0xb   :  { %p1377_p3 = scmp.ne.s32.totalorder %s31_s16, %s1376_s24  ;;  %p1382_p5 = scmp.lt.s32.totalorder %s1376_s24, %s1376_s24 }
   0xd   :  { %p1383_p6 = por %p1382_p5, %p1381_p4 }
   0xf   :  { %p1384_p7 = pnand %p1383_p6, %p1377_p3 }
  0x11   :  { %1387 = shalt.err (!%p1384_p7)
}
  0x12   :  { %s1485_s25 = smov 256   ;;  %s1486_s26 = smov 16  }
  0x13   :  { %36 = dma.hbm_to_vmem [thread:$0]  %s1664_s1, 4096, %s31_s16, [#allocation6], %s1485_s25, %s1485_s25, %s1486_s26  }
  0x14   :  { %s1487_s29 = smov [#allocation2]   ;;  %s1388_s7 = scalar_lea.hbm %s1663_s0, 4096 }
  0x15   :  { %s18_s30 = sshll.u32 %s1487_s29, 4  ;;  %p1389_p8 = scmp.ne.s32.totalorder %s1663_s0, %s1388_s7  ;;  %s19_s30 = int_to_ptr.vmem [resolvable:$true] %s18_s30 }
  0x16   :  { %p1392_p9 = scmp.lt.u32.totalorder %s1388_s7, %s1663_s0 }
  0x18   :  { %p1394_p10 = pnand %p1392_p9, %p1389_p8 }
  0x1a   :  { %1397 = shalt.err (!%p1394_p10)
}
  0x1b   :  { %s1398_s12 = scalar_lea.vmem %s19_s30, 4096  ;;  %p1403_p12 = scmp.lt.s32.totalorder %s19_s30, %s19_s30 }
  0x1c   :  { %p1399_p11 = scmp.ne.s32.totalorder %s19_s30, %s1398_s12  ;;  %p1404_p13 = scmp.lt.s32.totalorder %s1398_s12, %s1398_s12 }
  0x1e   :  { %p1405_p0 = por %p1404_p13, %p1403_p12 }
  0x20   :  { %p1406_p1 = pnand %p1405_p0, %p1399_p11 }
  0x22   :  { %1409 = shalt.err (!%p1406_p1)
}
  0x23   :  { %s1488_s1 = smov 512   ;;  %s1489_s13 = smov 32  }
  0x24   :  { %24 = dma.hbm_to_vmem [thread:$0]  %s1663_s0, 4096, %s19_s30, [#allocation3], %s1488_s1, %s1488_s1, %s1489_s13  }
  0x25   :  { %s1490_s16 = smov [#allocation7]   ;;  %s1410_s20 = scalar_lea.hbm %s1665_s2, 4096 }
  0x26   :  { %s42_s17 = sshll.u32 %s1490_s16, 4  ;;  %p1411_p2 = scmp.ne.s32.totalorder %s1665_s2, %s1410_s20  ;;  %s43_s17 = int_to_ptr.vmem [resolvable:$true] %s42_s17 }
  0x27   :  { %p1414_p3 = scmp.lt.u32.totalorder %s1410_s20, %s1665_s2 }
  0x29   :  { %p1416_p4 = pnand %p1414_p3, %p1411_p2 }
  0x2b   :  { %1419 = shalt.err (!%p1416_p4)
}
  0x2c   :  { %s1420_s25 = scalar_lea.vmem %s43_s17, 4096  ;;  %p1425_p6 = scmp.lt.s32.totalorder %s43_s17, %s43_s17 }
  0x2d   :  { %p1421_p5 = scmp.ne.s32.totalorder %s43_s17, %s1420_s25  ;;  %p1426_p7 = scmp.lt.s32.totalorder %s1420_s25, %s1420_s25 }
  0x2f   :  { %p1427_p8 = por %p1426_p7, %p1425_p6 }
  0x31   :  { %p1428_p9 = pnand %p1427_p8, %p1421_p5 }
  0x33   :  { %1431 = shalt.err (!%p1428_p9)
}
  0x34   :  { %s1491_s0 = smov 128   ;;  %s1492_s26 = smov 8  }
  0x35   :  { %48 = dma.hbm_to_vmem [thread:$0]  %s1665_s2, 4096, %s43_s17, [#allocation6], %s1491_s0, %s1491_s0, %s1492_s26  }
  0x36   :  { %s1493_s29 = smov [#allocation8]   ;;  %s1432_s7 = scalar_lea.hbm %s1666_s3, 32 }
  0x37   :  { %s55_s30 = sshll.u32 %s1493_s29, 4  ;;  %p1433_p10 = scmp.ne.s32.totalorder %s1666_s3, %s1432_s7  ;;  %s56_s30 = int_to_ptr.vmem [resolvable:$true] %s55_s30 }
  0x38   :  { %p1436_p11 = scmp.lt.u32.totalorder %s1432_s7, %s1666_s3 }
  0x3a   :  { %p1438_p12 = pnand %p1436_p11, %p1433_p10 }
  0x3c   :  { %1441 = shalt.err (!%p1438_p12)
}
  0x3d   :  { %s1442_s12 = scalar_lea.vmem %s56_s30, 32  ;;  %p1447_p0 = scmp.lt.s32.totalorder %s56_s30, %s56_s30 }
  0x3e   :  { %p1443_p13 = scmp.ne.s32.totalorder %s56_s30, %s1442_s12  ;;  %p1448_p1 = scmp.lt.s32.totalorder %s1442_s12, %s1442_s12 }
  0x40   :  { %p1449_p2 = por %p1448_p1, %p1447_p0 }
  0x42   :  { %p1450_p3 = pnand %p1449_p2, %p1443_p13 }
  0x44   :  { %1453 = shalt.err (!%p1450_p3)
}
  0x45   :  { %58 = dma.hbm_to_vmem [thread:$0]  %s1666_s3, 32, %s56_s30, [#allocation9]  }
  0x46   :  { %1476 = dma.done.wait [#allocation3], 4096  }
  0x47   :  { %1477 = vsyncadd [#allocation3], 4294963200 }
  0x48   :  { %1478 = dma.done.wait [#allocation6], 8192  }
  0x49   :  { %1479 = vsyncadd [#allocation6], 4294959104 }
  0x4a   :  { %1480 = dma.done.wait [#allocation9], 32  }
  0x4b   :  { %1481 = vsyncadd [#allocation9], 4294967264  ;;  %v168_v0 = vld [vmem:[#allocation5 + $0x8] sm:$0xff]  ;;  %v167_v2 = vld [vmem:[#allocation5] sm:$0xff]  ;;  %v1494_v60 = vmov 0   ;;  %s1495_s3 = smov [#allocation10]  }
  0x4c   :  { %v184_v1 = vld [vmem:[#allocation5 + $0x88] sm:$0xff]  ;;  %v200_v3 = vunpack.c.l.f8e4m3fn %v168_v0  ;;  %v202_v4 = vunpack.c.h.f8e4m3fn %v168_v0  ;;  %v183_v7 = vld [vmem:[#allocation5 + $0x80] sm:$0xff]  ;;  %v199_v8 = vunpack.c.l.f8e4m3fn %v167_v2  ;;  %v170_v10 = vld [vmem:[#allocation5 + $0x18] sm:$0xff]  ;;  %v201_v12 = vunpack.c.h.f8e4m3fn %v167_v2  ;;  %1364 = vset.pattern.permute.xlu0 %v1494_v60  ;;  %1365 = vset.pattern.permute.xlu1 %v1494_v60  ;;  %s1210_s13 = sshll.u32 %s1495_s3, 4  ;;  %s1211_s13 = int_to_ptr.vmem [resolvable:$true] %s1210_s13 }
  0x4d   :  { %v232_v5 = vunpack.c.l.f8e4m3fn %v184_v1  ;;  %v234_v6 = vunpack.c.h.f8e4m3fn %v184_v1  ;;  %v231_v9 = vunpack.c.l.f8e4m3fn %v183_v7  ;;  %v186_v11 = vld [vmem:[#allocation5 + $0x98] sm:$0xff]  ;;  %v233_v13 = vunpack.c.h.f8e4m3fn %v183_v7  ;;  %v169_v16 = vld [vmem:[#allocation5 + $0x10] sm:$0xff]  ;;  %v172_v22 = vld [vmem:[#allocation5 + $0x28] sm:$0xff]  ;;  %s1454_s14 = scalar_lea.vmem %s1211_s13, 4096  ;;  %p1459_p5 = scmp.lt.s32.totalorder %s1211_s13, %s1211_s13 }
  0x4e   :  { %263 = vmatprep.subr.bf16.mxu1 %v200_v3  ;;  %v204_v14 = vunpack.c.l.f8e4m3fn %v170_v10  ;;  %v236_v15 = vunpack.c.l.f8e4m3fn %v186_v11  ;;  %v185_v17 = vld [vmem:[#allocation5 + $0x90] sm:$0xff]  ;;  %v203_v18 = vunpack.c.l.f8e4m3fn %v169_v16  ;;  %v206_v20 = vunpack.c.h.f8e4m3fn %v170_v10  ;;  %v188_v23 = vld [vmem:[#allocation5 + $0xa8] sm:$0xff]  ;;  %v171_v28 = vld [vmem:[#allocation5 + $0x20] sm:$0xff]  ;;  %p1455_p4 = scmp.ne.s32.totalorder %s1211_s13, %s1454_s14  ;;  %p1460_p6 = scmp.lt.s32.totalorder %s1454_s14, %s1454_s14 }
  0x4f   :  { %456 = vmatprep.subr.bf16.mxu0 %v232_v5  ;;  %264 = vmatpush1.bf16.msra.mxu1 %v199_v8  ;;  %v235_v19 = vunpack.c.l.f8e4m3fn %v185_v17  ;;  %v238_v21 = vunpack.c.h.f8e4m3fn %v186_v11  ;;  %v205_v24 = vunpack.c.h.f8e4m3fn %v169_v16  ;;  %v237_v25 = vunpack.c.h.f8e4m3fn %v185_v17  ;;  %v187_v29 = vld [vmem:[#allocation5 + $0xa0] sm:$0xff]  ;;  %v1572_v30 = vld [vmem:[#allocation2 + $0x8] sm:$0xff]  ;;  %v1574_v31 = vld [vmem:[#allocation2 + $0x18] sm:$0xff] }
  0x50   :  { %457 = vmatpush1.bf16.msra.mxu0 %v231_v9  ;;  %265 = vmatprep.subr.bf16.mxu1 %v202_v4  ;;  %v208_v26 = vunpack.c.l.f8e4m3fn %v172_v22  ;;  %v240_v27 = vunpack.c.l.f8e4m3fn %v188_v23  ;;  %v207_v32 = vunpack.c.l.f8e4m3fn %v171_v28  ;;  %v239_v33 = vunpack.c.l.f8e4m3fn %v187_v29  ;;  %v174_v38 = vld [vmem:[#allocation5 + $0x38] sm:$0xff]  ;;  %v173_v44 = vld [vmem:[#allocation5 + $0x30] sm:$0xff]  ;;  %v176_v50 = vld [vmem:[#allocation5 + $0x48] sm:$0xff]  ;;  %p1461_p7 = por %p1460_p6, %p1459_p5 }
  0x51   :  { %458 = vmatprep.subr.bf16.mxu0 %v234_v6  ;;  %v210_v34 = vunpack.c.h.f8e4m3fn %v172_v22  ;;  %v242_v35 = vunpack.c.h.f8e4m3fn %v188_v23  ;;  %v104_v36 = vunpack.c.l.f8e4m3fn %v1572_v30  ;;  %v106_v37 = vunpack.c.l.f8e4m3fn %v1574_v31  ;;  %v190_v39 = vld [vmem:[#allocation5 + $0xb8] sm:$0xff]  ;;  %v189_v45 = vld [vmem:[#allocation5 + $0xb0] sm:$0xff]  ;;  %v192_v51 = vld [vmem:[#allocation5 + $0xc8] sm:$0xff] }
  0x52   :  { %v209_v40 = vunpack.c.h.f8e4m3fn %v171_v28  ;;  %v241_v41 = vunpack.c.h.f8e4m3fn %v187_v29  ;;  %v212_v42 = vunpack.c.l.f8e4m3fn %v174_v38  ;;  %v244_v43 = vunpack.c.l.f8e4m3fn %v190_v39  ;;  %v649_v54 = vld [vmem:[#allocation7] sm:$0xff]  ;;  %v651_v55 = vld [vmem:[#allocation7 + $0x10] sm:$0xff]  ;;  %v650_v63 = vld [vmem:[#allocation7 + $0x8] sm:$0xff]  ;;  %p1462_p8 = pnand %p1461_p7, %p1455_p4 }
  0x53   :  { %266 = vmatpush1.bf16.msra.mxu1 %v201_v12  ;;  %295 = vmatprep.mubr.bf16.mxu1 %v104_v36  ;;  %v211_v46 = vunpack.c.l.f8e4m3fn %v173_v44  ;;  %v243_v47 = vunpack.c.l.f8e4m3fn %v189_v45  ;;  %v214_v48 = vunpack.c.h.f8e4m3fn %v174_v38  ;;  %v246_v49 = vunpack.c.h.f8e4m3fn %v190_v39  ;;  %v175_v58 = vld [vmem:[#allocation5 + $0x40] sm:$0xff]  ;;  %v652_v0 = vld [vmem:[#allocation7 + $0x18] sm:$0xff]  ;;  %v654_v7 = vld [vmem:[#allocation7 + $0x28] sm:$0xff] }
  0x54   :  { %459 = vmatpush1.bf16.msra.mxu0 %v233_v13  ;;  %267 = vmatprep.subr.bf16.mxu1 %v204_v14  ;;  %v213_v52 = vunpack.c.h.f8e4m3fn %v173_v44  ;;  %v245_v53 = vunpack.c.h.f8e4m3fn %v189_v45  ;;  %v216_v56 = vunpack.c.l.f8e4m3fn %v176_v50  ;;  %v248_v57 = vunpack.c.l.f8e4m3fn %v192_v51  ;;  %v191_v59 = vld [vmem:[#allocation5 + $0xc0] sm:$0xff]  ;;  %v178_v3 = vld [vmem:[#allocation5 + $0x58] sm:$0xff]  ;;  %v177_v11 = vld [vmem:[#allocation5 + $0x50] sm:$0xff] }
  0x55   :  { %460 = vmatprep.subr.bf16.mxu0 %v236_v15  ;;  %488 = vmatprep.mubr.bf16.mxu0 %v106_v37  ;;  %v215_v61 = vunpack.c.l.f8e4m3fn %v175_v58  ;;  %v247_v62 = vunpack.c.l.f8e4m3fn %v191_v59  ;;  %v218_v1 = vunpack.c.h.f8e4m3fn %v176_v50  ;;  %v250_v2 = vunpack.c.h.f8e4m3fn %v192_v51  ;;  %v194_v4 = vld [vmem:[#allocation5 + $0xd8] sm:$0xff]  ;;  %v653_v8 = vld [vmem:[#allocation7 + $0x20] sm:$0xff]  ;;  %v193_v12 = vld [vmem:[#allocation5 + $0xd0] sm:$0xff] }
  0x56   :  { %683 = vperm.xlu0 %1364, %v649_v54   ;;  %693 = vperm.xlu1 %1365, %v651_v55   ;;  %v217_v5 = vunpack.c.h.f8e4m3fn %v175_v58  ;;  %v249_v6 = vunpack.c.h.f8e4m3fn %v191_v59  ;;  %v220_v9 = vunpack.c.l.f8e4m3fn %v178_v3  ;;  %v252_v10 = vunpack.c.l.f8e4m3fn %v194_v4  ;;  %v656_v15 = vld [vmem:[#allocation7 + $0x38] sm:$0xff]  ;;  %v655_v16 = vld [vmem:[#allocation7 + $0x30] sm:$0xff]  ;;  %v658_v23 = vld [vmem:[#allocation7 + $0x48] sm:$0xff] }
  0x57   :  { %268 = vmatpush1.bf16.msra.mxu1 %v203_v18  ;;  %v219_v13 = vunpack.c.l.f8e4m3fn %v177_v11  ;;  %v251_v14 = vunpack.c.l.f8e4m3fn %v193_v12  ;;  %v222_v17 = vunpack.c.h.f8e4m3fn %v178_v3  ;;  %v254_v18 = vunpack.c.h.f8e4m3fn %v194_v4  ;;  %v195_v28 = vld [vmem:[#allocation5 + $0xe0] sm:$0xff]  ;;  %v182_v37 = vld [vmem:[#allocation5 + $0x78] sm:$0xff]  ;;  %v181_v45 = vld [vmem:[#allocation5 + $0x70] sm:$0xff] }
  0x58   :  { %461 = vmatpush1.bf16.msra.mxu0 %v235_v19  ;;  %269 = vmatprep.subr.bf16.mxu1 %v206_v20  ;;  %v180_v19 = vld [vmem:[#allocation5 + $0x68] sm:$0xff]  ;;  %v253_v22 = vunpack.c.h.f8e4m3fn %v193_v12  ;;  %v198_v38 = vld [vmem:[#allocation5 + $0xf8] sm:$0xff]  ;;  %v663_v50 = vld [vmem:[#allocation7 + $0x70] sm:$0xff]  ;;  %v230_v51 = vunpack.c.h.f8e4m3fn %v182_v37  ;;  %v229_v54 = vunpack.c.h.f8e4m3fn %v181_v45 }
  0x59   :  { %462 = vmatprep.subr.bf16.mxu0 %v238_v21  ;;  %v196_v20 = vld [vmem:[#allocation5 + $0xe8] sm:$0xff]  ;;  %v221_v21 = vunpack.c.h.f8e4m3fn %v177_v11  ;;  %v260_v44 = vunpack.c.l.f8e4m3fn %v198_v38  ;;  %v665_v58 = vld [vmem:[#allocation7 + $0x80] sm:$0xff] }
  0x5a   :  { %688 = vperm.xlu0 %1364, %v650_v63   ;;  %698 = vperm.xlu1 %1365, %v652_v0   ;;  %v258_v36 = vunpack.c.h.f8e4m3fn %v196_v20  ;;  %v668_v63 = vld [vmem:[#allocation7 + $0x98] sm:$0xff]  ;;  %v667_v0 = vld [vmem:[#allocation7 + $0x90] sm:$0xff]  ;;  %v670_v3 = vld [vmem:[#allocation7 + $0xa8] sm:$0xff] }
  0x5b   :  { %270 = vmatpush1.bf16.msra.mxu1 %v205_v24  ;;  %v657_v24 = vld [vmem:[#allocation7 + $0x40] sm:$0xff]  ;;  %v674_v11 = vld [vmem:[#allocation7 + $0xc8] sm:$0xff] }
  0x5c   :  { %463 = vmatpush1.bf16.msra.mxu0 %v237_v25  ;;  %271 = vmatprep.subr.bf16.mxu1 %v208_v26  ;;  %v224_v25 = vunpack.c.l.f8e4m3fn %v180_v19  ;;  %v256_v26 = vunpack.c.l.f8e4m3fn %v196_v20  ;;  %v669_v4 = vld [vmem:[#allocation7 + $0xa0] sm:$0xff]  ;;  %v82_v20 = vld [vmem:[#allocation2 + $0x58] sm:$0xff] }
  0x5d   :  { %464 = vmatprep.subr.bf16.mxu0 %v240_v27  ;;  %v179_v27 = vld [vmem:[#allocation5 + $0x60] sm:$0xff] }
  0x5e   :  { %708 = vperm.xlu1 %1365, %v654_v7   ;;  %703 = vperm.xlu0 %1364, %v653_v8   ;;  %v223_v29 = vunpack.c.l.f8e4m3fn %v179_v27  ;;  %v225_v39 = vunpack.c.h.f8e4m3fn %v179_v27  ;;  %v673_v12 = vld [vmem:[#allocation7 + $0xc0] sm:$0xff]  ;;  %v680_v27 = vld [vmem:[#allocation7 + $0xf8] sm:$0xff] }
  0x5f   :  { %272 = vmatpush1.bf16.msra.mxu1 %v207_v32  ;;  %v255_v32 = vunpack.c.l.f8e4m3fn %v195_v28 }
  0x60   :  { %465 = vmatpush1.bf16.msra.mxu0 %v239_v33  ;;  %273 = vmatprep.subr.bf16.mxu1 %v210_v34  ;;  %v660_v33 = vld [vmem:[#allocation7 + $0x58] sm:$0xff]  ;;  %v659_v34 = vld [vmem:[#allocation7 + $0x50] sm:$0xff] }
  0x61   :  { %466 = vmatprep.subr.bf16.mxu0 %v242_v35  ;;  %v226_v35 = vunpack.c.h.f8e4m3fn %v180_v19  ;;  %v80_v19 = vld [vmem:[#allocation2 + $0x48] sm:$0xff] }
  0x62   :  { %718 = vperm.xlu1 %1365, %v656_v15   ;;  %713 = vperm.xlu0 %1364, %v655_v16  }
  0x63   :  { %274 = vmatpush1.bf16.msra.mxu1 %v209_v40  ;;  %v257_v40 = vunpack.c.h.f8e4m3fn %v195_v28  ;;  %v679_v28 = vld [vmem:[#allocation7 + $0xf0] sm:$0xff] }
  0x64   :  { %467 = vmatpush1.bf16.msra.mxu0 %v241_v41  ;;  %275 = vmatprep.subr.bf16.mxu1 %v212_v42  ;;  %v662_v41 = vld [vmem:[#allocation7 + $0x68] sm:$0xff]  ;;  %v661_v42 = vld [vmem:[#allocation7 + $0x60] sm:$0xff] }
  0x65   :  { %468 = vmatprep.subr.bf16.mxu0 %v244_v43  ;;  %v228_v43 = vunpack.c.l.f8e4m3fn %v182_v37  ;;  %v84_v37 = vld [vmem:[#allocation2 + $0x68] sm:$0xff] }
  0x66   :  { %728 = vperm.xlu1 %1365, %v658_v23   ;;  %723 = vperm.xlu0 %1364, %v657_v24  }
  0x67   :  { %276 = vmatpush1.bf16.msra.mxu1 %v211_v46  ;;  %v197_v46 = vld [vmem:[#allocation5 + $0xf0] sm:$0xff] }
  0x68   :  { %469 = vmatpush1.bf16.msra.mxu0 %v243_v47  ;;  %277 = vmatprep.subr.bf16.mxu1 %v214_v48  ;;  %v227_v47 = vunpack.c.l.f8e4m3fn %v181_v45  ;;  %v259_v48 = vunpack.c.l.f8e4m3fn %v197_v46  ;;  %v261_v55 = vunpack.c.h.f8e4m3fn %v197_v46 }
  0x69   :  { %470 = vmatprep.subr.bf16.mxu0 %v246_v49  ;;  %v664_v49 = vld [vmem:[#allocation7 + $0x78] sm:$0xff] }
  0x6a   :  { %738 = vperm.xlu1 %1365, %v660_v33   ;;  %733 = vperm.xlu0 %1364, %v659_v34  }
  0x6b   :  { %278 = vmatpush1.bf16.msra.mxu1 %v213_v52  ;;  %v262_v52 = vunpack.c.h.f8e4m3fn %v198_v38  ;;  %v86_v38 = vld [vmem:[#allocation2 + $0x78] sm:$0xff] }
  0x6c   :  { %471 = vmatpush1.bf16.msra.mxu0 %v245_v53  ;;  %279 = vmatprep.subr.bf16.mxu1 %v216_v56  ;;  %v71_v53 = vld [vmem:[#allocation2] sm:$0xff]  ;;  %v73_v56 = vld [vmem:[#allocation2 + $0x10] sm:$0xff] }
  0x6d   :  { %472 = vmatprep.subr.bf16.mxu0 %v248_v57  ;;  %v666_v57 = vld [vmem:[#allocation7 + $0x88] sm:$0xff]  ;;  %v103_v59 = vunpack.c.l.f8e4m3fn %v71_v53  ;;  %v105_v60 = vunpack.c.l.f8e4m3fn %v73_v56 }
  0x6e   :  { %748 = vperm.xlu1 %1365, %v662_v41   ;;  %743 = vperm.xlu0 %1364, %v661_v42   ;;  %v128_v41 = vunpack.c.l.f8e4m3fn %v84_v37  ;;  %v130_v42 = vunpack.c.l.f8e4m3fn %v86_v38 }
  0x6f   :  { %280 = vmatpush1.bf16.msra.mxu1 %v215_v61  ;;  %v108_v61 = vunpack.c.h.f8e4m3fn %v1572_v30  ;;  %v672_v30 = vld [vmem:[#allocation7 + $0xb8] sm:$0xff] }
  0x70   :  { %473 = vmatpush1.bf16.msra.mxu0 %v247_v62  ;;  %281 = vmatprep.subr.bf16.mxu1 %v218_v1  ;;  %v110_v62 = vunpack.c.h.f8e4m3fn %v1574_v31  ;;  %v76_v1 = vld [vmem:[#allocation2 + $0x28] sm:$0xff]  ;;  %v671_v31 = vld [vmem:[#allocation7 + $0xb0] sm:$0xff] }
  0x71   :  { %474 = vmatprep.subr.bf16.mxu0 %v250_v2  ;;  %v78_v2 = vld [vmem:[#allocation2 + $0x38] sm:$0xff]  ;;  %v112_v7 = vunpack.c.l.f8e4m3fn %v76_v1  ;;  %v116_v15 = vunpack.c.h.f8e4m3fn %v76_v1 }
  0x72   :  { %758 = vperm.xlu1 %1365, %v664_v49   ;;  %753 = vperm.xlu0 %1364, %v663_v50   ;;  %v114_v8 = vunpack.c.l.f8e4m3fn %v78_v2  ;;  %v118_v16 = vunpack.c.h.f8e4m3fn %v78_v2  ;;  %v88_v49 = vld [vmem:[#allocation2 + $0x88] sm:$0xff]  ;;  %v90_v50 = vld [vmem:[#allocation2 + $0x98] sm:$0xff] }
  0x73   :  { %282 = vmatpush1.bf16.msra.mxu1 %v217_v5  ;;  %v107_v5 = vunpack.c.h.f8e4m3fn %v71_v53  ;;  %v136_v53 = vunpack.c.l.f8e4m3fn %v88_v49 }
  0x74   :  { %475 = vmatpush1.bf16.msra.mxu0 %v249_v6  ;;  %283 = vmatprep.subr.bf16.mxu1 %v220_v9  ;;  %v109_v6 = vunpack.c.h.f8e4m3fn %v73_v56  ;;  %v75_v9 = vld [vmem:[#allocation2 + $0x20] sm:$0xff]  ;;  %v89_v56 = vld [vmem:[#allocation2 + $0x90] sm:$0xff] }
  0x75   :  { %476 = vmatprep.subr.bf16.mxu0 %v252_v10  ;;  %v77_v10 = vld [vmem:[#allocation2 + $0x30] sm:$0xff]  ;;  %v115_v23 = vunpack.c.h.f8e4m3fn %v75_v9 }
  0x76   :  { %768 = vperm.xlu1 %1365, %v666_v57   ;;  %763 = vperm.xlu0 %1364, %v665_v58   ;;  %v117_v24 = vunpack.c.h.f8e4m3fn %v77_v10  ;;  %v137_v58 = vunpack.c.l.f8e4m3fn %v89_v56 }
  0x77   :  { %284 = vmatpush1.bf16.msra.mxu1 %v219_v13  ;;  %v111_v13 = vunpack.c.l.f8e4m3fn %v75_v9 }
  0x78   :  { %477 = vmatpush1.bf16.msra.mxu0 %v251_v14  ;;  %285 = vmatprep.subr.bf16.mxu1 %v222_v17  ;;  %v113_v14 = vunpack.c.l.f8e4m3fn %v77_v10  ;;  %v676_v17 = vld [vmem:[#allocation7 + $0xd8] sm:$0xff] }
  0x79   :  { %478 = vmatprep.subr.bf16.mxu0 %v254_v18  ;;  %v675_v18 = vld [vmem:[#allocation7 + $0xd0] sm:$0xff] }
  0x7a   :  { %778 = vperm.xlu1 %1365, %v668_v63   ;;  %773 = vperm.xlu0 %1364, %v667_v0   ;;  %v141_v0 = vunpack.c.h.f8e4m3fn %v89_v56 }
  0x7b   :  { %286 = vmatpush1.bf16.msra.mxu1 %v221_v21  ;;  %v678_v21 = vld [vmem:[#allocation7 + $0xe8] sm:$0xff] }
  0x7c   :  { %479 = vmatpush1.bf16.msra.mxu0 %v253_v22  ;;  %287 = vmatprep.subr.bf16.mxu1 %v224_v25  ;;  %v677_v22 = vld [vmem:[#allocation7 + $0xe0] sm:$0xff]  ;;  %v120_v25 = vunpack.c.l.f8e4m3fn %v80_v19 }
  0x7d   :  { %480 = vmatprep.subr.bf16.mxu0 %v256_v26  ;;  %v122_v26 = vunpack.c.l.f8e4m3fn %v82_v20 }
  0x7e   :  { %788 = vperm.xlu1 %1365, %v670_v3   ;;  %783 = vperm.xlu0 %1364, %v669_v4   ;;  %v91_v3 = vld [vmem:[#allocation2 + $0xa0] sm:$0xff]  ;;  %v93_v4 = vld [vmem:[#allocation2 + $0xb0] sm:$0xff] }
  0x7f   :  { %288 = vmatpush1.bf16.msra.mxu1 %v223_v29  ;;  %v79_v29 = vld [vmem:[#allocation2 + $0x40] sm:$0xff]  ;;  %v147_v9 = vunpack.c.h.f8e4m3fn %v91_v3  ;;  %v149_v10 = vunpack.c.h.f8e4m3fn %v93_v4 }
  0x80   :  { %481 = vmatpush1.bf16.msra.mxu0 %v255_v32  ;;  %289 = vmatprep.subr.bf16.mxu1 %v226_v35  ;;  %v81_v32 = vld [vmem:[#allocation2 + $0x50] sm:$0xff]  ;;  %v119_v33 = vunpack.c.l.f8e4m3fn %v79_v29  ;;  %v124_v35 = vunpack.c.h.f8e4m3fn %v80_v19  ;;  %v100_v19 = vld [vmem:[#allocation2 + $0xe8] sm:$0xff] }
  0x81   :  { %482 = vmatprep.subr.bf16.mxu0 %v258_v36  ;;  %v121_v34 = vunpack.c.l.f8e4m3fn %v81_v32  ;;  %v126_v36 = vunpack.c.h.f8e4m3fn %v82_v20  ;;  %v102_v20 = vld [vmem:[#allocation2 + $0xf8] sm:$0xff] }
  0x82   :  { %798 = vperm.xlu1 %1365, %v672_v30   ;;  %793 = vperm.xlu0 %1364, %v671_v31   ;;  %v96_v30 = vld [vmem:[#allocation2 + $0xc8] sm:$0xff]  ;;  %v98_v31 = vld [vmem:[#allocation2 + $0xd8] sm:$0xff] }
  0x83   :  { %290 = vmatpush1.bf16.msra.mxu1 %v225_v39  ;;  %v123_v39 = vunpack.c.h.f8e4m3fn %v79_v29  ;;  %v164_v29 = vunpack.c.h.f8e4m3fn %v100_v19 }
  0x84   :  { %483 = vmatpush1.bf16.msra.mxu0 %v257_v40  ;;  %291 = vmatprep.subr.bf16.mxu1 %v228_v43  ;;  %v125_v40 = vunpack.c.h.f8e4m3fn %v81_v32  ;;  %v83_v43 = vld [vmem:[#allocation2 + $0x60] sm:$0xff]  ;;  %v166_v32 = vunpack.c.h.f8e4m3fn %v102_v20 }
  0x85   :  { %484 = vmatprep.subr.bf16.mxu0 %v260_v44  ;;  %v85_v44 = vld [vmem:[#allocation2 + $0x70] sm:$0xff]  ;;  %v127_v45 = vunpack.c.l.f8e4m3fn %v83_v43 }
  0x86   :  { %808 = vperm.xlu1 %1365, %v674_v11   ;;  %803 = vperm.xlu0 %1364, %v673_v12   ;;  %v129_v46 = vunpack.c.l.f8e4m3fn %v85_v44  ;;  %v152_v11 = vunpack.c.l.f8e4m3fn %v96_v30  ;;  %v154_v12 = vunpack.c.l.f8e4m3fn %v98_v31 }
  0x87   :  { %292 = vmatpush1.bf16.msra.mxu1 %v227_v47  ;;  %v132_v47 = vunpack.c.h.f8e4m3fn %v84_v37 }
  0x88   :  { %485 = vmatpush1.bf16.msra.mxu0 %v259_v48  ;;  %293 = vmatprep.subr.bf16.mxu1 %v230_v51  ;;  %v134_v48 = vunpack.c.h.f8e4m3fn %v86_v38  ;;  %v131_v51 = vunpack.c.h.f8e4m3fn %v83_v43 }
  0x89   :  { %486 = vmatprep.subr.bf16.mxu0 %v262_v52  ;;  %v133_v52 = vunpack.c.h.f8e4m3fn %v85_v44 }
  0x8a   :  { %818 = vperm.xlu1 %1365, %v676_v17   ;;  %813 = vperm.xlu0 %1364, %v675_v18   ;;  %v156_v17 = vunpack.c.h.f8e4m3fn %v96_v30  ;;  %v158_v18 = vunpack.c.h.f8e4m3fn %v98_v31 }
  0x8b   :  { %294 = vmatpush1.bf16.msra.mxu1 %v229_v54  ;;  %v138_v54 = vunpack.c.l.f8e4m3fn %v90_v50 }
  0x8c   :  { %487 = vmatpush1.bf16.msra.mxu0 %v261_v55  ;;  %v87_v55 = vld [vmem:[#allocation2 + $0x80] sm:$0xff] }
  0x8d   :  { %v135_v57 = vunpack.c.l.f8e4m3fn %v87_v55  ;;  %v139_v63 = vunpack.c.h.f8e4m3fn %v87_v55 }
  0x8e   :  { %296 = vmatmul.mubr.bf16.vlgmr.msra.gmra.mrb[0].mxu1 %v103_v59  ;;  %828 = vperm.xlu1 %1365, %v678_v21   ;;  %v140_v59 = vunpack.c.h.f8e4m3fn %v88_v49 }
  0x8f   :  { %489 = vmatmul.mubr.bf16.vlgmr.msra.gmra.mrb[0].mxu0 %v105_v60  ;;  %305 = vmatprep.mubr.bf16.mxu1 %v108_v61  ;;  %v142_v60 = vunpack.c.h.f8e4m3fn %v90_v50  ;;  %v92_v61 = vld [vmem:[#allocation2 + $0xa8] sm:$0xff] }
  0x90   :  { %498 = vmatprep.mubr.bf16.mxu0 %v110_v62  ;;  %823 = vperm.xlu0 %1364, %v677_v22   ;;  %v94_v62 = vld [vmem:[#allocation2 + $0xb8] sm:$0xff]  ;;  %v144_v1 = vunpack.c.l.f8e4m3fn %v92_v61 }
  0x91   :  { %v146_v2 = vunpack.c.l.f8e4m3fn %v94_v62 }
  0x92   :  { %838 = vperm.xlu1 %1365, %v680_v27  }
  0x94   :  { %833 = vperm.xlu0 %1364, %v679_v28  }
  0x96   :  { %306 = vmatmul.mubr.bf16.gmra.mrb[4].mxu1 %v107_v5  ;;  %v143_v5 = vunpack.c.l.f8e4m3fn %v91_v3 }
  0x97   :  { %499 = vmatmul.mubr.bf16.gmra.mrb[4].mxu0 %v109_v6  ;;  %315 = vmatprep.mubr.bf16.mxu1 %v112_v7  ;;  %v145_v6 = vunpack.c.l.f8e4m3fn %v93_v4  ;;  %v148_v7 = vunpack.c.h.f8e4m3fn %v92_v61 }
  0x98   :  { %508 = vmatprep.mubr.bf16.mxu0 %v114_v8  ;;  %v150_v8 = vunpack.c.h.f8e4m3fn %v94_v62 }
  0x9e   :  { %316 = vmatmul.mubr.bf16.gmra.mrb[8].mxu1 %v111_v13  ;;  %v95_v13 = vld [vmem:[#allocation2 + $0xc0] sm:$0xff] }
  0x9f   :  { %509 = vmatmul.mubr.bf16.gmra.mrb[8].mxu0 %v113_v14  ;;  %325 = vmatprep.mubr.bf16.mxu1 %v116_v15  ;;  %v97_v14 = vld [vmem:[#allocation2 + $0xd0] sm:$0xff]  ;;  %v151_v15 = vunpack.c.l.f8e4m3fn %v95_v13  ;;  %v155_v21 = vunpack.c.h.f8e4m3fn %v95_v13 }
  0xa0   :  { %518 = vmatprep.mubr.bf16.mxu0 %v118_v16  ;;  %v153_v16 = vunpack.c.l.f8e4m3fn %v97_v14  ;;  %v157_v22 = vunpack.c.h.f8e4m3fn %v97_v14 }
  0xa6   :  { %326 = vmatmul.mubr.bf16.gmra.mrb[12].mxu1 %v115_v23  ;;  %v160_v23 = vunpack.c.l.f8e4m3fn %v100_v19 }
  0xa7   :  { %519 = vmatmul.mubr.bf16.gmra.mrb[12].mxu0 %v117_v24  ;;  %335 = vmatprep.mubr.bf16.mxu1 %v120_v25  ;;  %v162_v24 = vunpack.c.l.f8e4m3fn %v102_v20  ;;  %v99_v25 = vld [vmem:[#allocation2 + $0xe0] sm:$0xff] }
  0xa8   :  { %528 = vmatprep.mubr.bf16.mxu0 %v122_v26  ;;  %v101_v26 = vld [vmem:[#allocation2 + $0xf0] sm:$0xff]  ;;  %v159_v27 = vunpack.c.l.f8e4m3fn %v99_v25 }
  0xa9   :  { %v161_v28 = vunpack.c.l.f8e4m3fn %v101_v26 }
  0xae   :  { %336 = vmatmul.mubr.bf16.gmra.mrb[16].mxu1 %v119_v33  ;;  %v163_v33 = vunpack.c.h.f8e4m3fn %v99_v25 }
  0xaf   :  { %529 = vmatmul.mubr.bf16.gmra.mrb[16].mxu0 %v121_v34  ;;  %345 = vmatprep.mubr.bf16.mxu1 %v124_v35  ;;  %v165_v34 = vunpack.c.h.f8e4m3fn %v101_v26  ;;  %v907_v35 = vlaneseq }
  0xb0   :  { %538 = vmatprep.mubr.bf16.mxu0 %v126_v36 }
  0xb1   :  { %v908_v37 = vshrl.u32 %v907_v35, 7 }
  0xb3   :  { %v909_v38 = vsub.s32 0, %v908_v37 }
  0xb6   :  { %346 = vmatmul.mubr.bf16.gmra.mrb[20].mxu1 %v123_v39  ;;  %v905_v39 = vld [vmem:[#allocation8] sm:$0x3] }
  0xb7   :  { %539 = vmatmul.mubr.bf16.gmra.mrb[20].mxu0 %v125_v40  ;;  %355 = vmatprep.mubr.bf16.mxu1 %v128_v41  ;;  %v913_v40 = vsub.s32 1, %v908_v37 }
  0xb8   :  { %548 = vmatprep.mubr.bf16.mxu0 %v130_v42 }
  0xb9   :  { %v1582_v49 = vrot.slane %v905_v39, %v913_v40 }
  0xbe   :  { %356 = vmatmul.mubr.bf16.gmra.mrb[24].mxu1 %v127_v45  ;;  %v1580_v45 = vrot.slane %v905_v39, %v909_v38 }
  0xbf   :  { %549 = vmatmul.mubr.bf16.gmra.mrb[24].mxu0 %v129_v46  ;;  %365 = vmatprep.mubr.bf16.mxu1 %v132_v47 }
  0xc0   :  { %558 = vmatprep.mubr.bf16.mxu0 %v134_v48 }
  0xc6   :  { %366 = vmatmul.mubr.bf16.gmra.mrb[28].mxu1 %v131_v51 }
  0xc7   :  { %559 = vmatmul.mubr.bf16.gmra.mrb[28].mxu0 %v133_v52  ;;  %375 = vmatprep.mubr.bf16.mxu1 %v136_v53 }
  0xc8   :  { %568 = vmatprep.mubr.bf16.mxu0 %v138_v54 }
  0xce   :  { %376 = vmatmul.mubr.bf16.gmra.mrb[32].mxu1 %v135_v57 }
  0xcf   :  { %569 = vmatmul.mubr.bf16.gmra.mrb[32].mxu0 %v137_v58  ;;  %385 = vmatprep.mubr.bf16.mxu1 %v140_v59 }
  0xd0   :  { %578 = vmatprep.mubr.bf16.mxu0 %v142_v60 }
  0xd5   :  { %v684_v36 = vpop.permute.xlu0 %683  ;;  %v694_v62 = vpop.permute.xlu1 %693 }
  0xd6   :  { %386 = vmatmul.mubr.bf16.gmra.mrb[36].mxu1 %v139_v63 }
  0xd7   :  { %579 = vmatmul.mubr.bf16.gmra.mrb[36].mxu0 %v141_v0  ;;  %395 = vmatprep.mubr.bf16.mxu1 %v144_v1 }
  0xd8   :  { %588 = vmatprep.mubr.bf16.mxu0 %v146_v2 }
  0xd9   :  { %v689_v41 = vpop.permute.xlu0 %688  ;;  %v699_v13 = vpop.permute.xlu1 %698 }
  0xdd   :  { %v709_v39 = vpop.permute.xlu1 %708 }
  0xde   :  { %396 = vmatmul.mubr.bf16.gmra.mrb[40].mxu1 %v143_v5 }
  0xdf   :  { %589 = vmatmul.mubr.bf16.gmra.mrb[40].mxu0 %v145_v6  ;;  %405 = vmatprep.mubr.bf16.mxu1 %v148_v7 }
  0xe0   :  { %598 = vmatprep.mubr.bf16.mxu0 %v150_v8 }
  0xe6   :  { %406 = vmatmul.mubr.bf16.gmra.mrb[44].mxu1 %v147_v9 }
  0xe7   :  { %599 = vmatmul.mubr.bf16.gmra.mrb[44].mxu0 %v149_v10  ;;  %415 = vmatprep.mubr.bf16.mxu1 %v152_v11 }
  0xe8   :  { %608 = vmatprep.mubr.bf16.mxu0 %v154_v12 }
  0xee   :  { %416 = vmatmul.mubr.bf16.gmra.mrb[48].mxu1 %v151_v15 }
  0xef   :  { %609 = vmatmul.mubr.bf16.gmra.mrb[48].mxu0 %v153_v16  ;;  %425 = vmatprep.mubr.bf16.mxu1 %v156_v17 }
  0xf0   :  { %618 = vmatprep.mubr.bf16.mxu0 %v158_v18 }
  0xf6   :  { %426 = vmatmul.mubr.bf16.gmra.mrb[52].mxu1 %v155_v21  ;;  %v704_v21 = vpop.permute.xlu0 %703 }
  0xf7   :  { %619 = vmatmul.mubr.bf16.gmra.mrb[52].mxu0 %v157_v22  ;;  %435 = vmatprep.mubr.bf16.mxu1 %v160_v23 }
  0xf8   :  { %628 = vmatprep.mubr.bf16.mxu0 %v162_v24 }
  0xfe   :  { %436 = vmatmul.mubr.bf16.gmra.mrb[56].mxu1 %v159_v27 }
  0xff   :  { %629 = vmatmul.mubr.bf16.gmra.mrb[56].mxu0 %v161_v28  ;;  %445 = vmatprep.mubr.bf16.mxu1 %v164_v29 }
 0x100   :  { %638 = vmatprep.mubr.bf16.mxu0 %v166_v32 }
 0x106   :  { %446 = vmatmul.mubr.bf16.gmra.mrb[60].mxu1 %v163_v33 }
 0x107   :  { %639 = vmatmul.mubr.bf16.gmra.mrb[60].mxu0 %v165_v34 }
 0x161   :  { %v297_v42 = vpop.f32.mrb[0].mxu1 }
 0x162   :  { %v490_v43 = vpop.f32.mrb[0].mxu0  ;;  %v299_v46 = vpop.f32.mrb[1].mxu1 }
 0x163   :  { %v491_v44 = vadd.f32 %v490_v43, %v297_v42  ;;  %v492_v47 = vpop.f32.mrb[1].mxu0  ;;  %v301_v50 = vpop.f32.mrb[2].mxu1 }
 0x164   :  { %v493_v48 = vadd.f32 %v492_v47, %v299_v46  ;;  %v494_v51 = vpop.f32.mrb[2].mxu0  ;;  %v303_v54 = vpop.f32.mrb[3].mxu1 }
 0x165   :  { %v841_v52 = vmul.f32 %v684_v36, %v491_v44  ;;  %v495_v53 = vadd.f32 %v494_v51, %v301_v50  ;;  %v496_v55 = vpop.f32.mrb[3].mxu0  ;;  %v714_v47 = vpop.permute.xlu0 %713 }
 0x166   :  { %v842_v56 = vmul.f32 %v684_v36, %v493_v48  ;;  %v497_v57 = vadd.f32 %v496_v55, %v303_v54 }
 0x167   :  { %v917_v58 = vmul.f32 %v1580_v45, %v841_v52  ;;  %v843_v59 = vmul.f32 %v689_v41, %v495_v53 }
 0x168   :  { %v918_v60 = vmul.f32 %v1582_v49, %v842_v56  ;;  %v844_v61 = vmul.f32 %v689_v41, %v497_v57 }
 0x169   :  { %v919_v63 = vmul.f32 %v1580_v45, %v843_v59  ;;  %v307_v2 = vpop.f32.mrb[4].mxu1 }
 0x16a   :  { %v1256_v0 = vpack.c.bf16 %v918_v60, %v917_v58  ;;  %v920_v1 = vmul.f32 %v1582_v49, %v844_v61  ;;  %v500_v3 = vpop.f32.mrb[4].mxu0  ;;  %v309_v5 = vpop.f32.mrb[5].mxu1 }
 0x16b   :  { %v501_v4 = vadd.f32 %v500_v3, %v307_v2  ;;  %v502_v6 = vpop.f32.mrb[5].mxu0  ;;  %v311_v30 = vpop.f32.mrb[6].mxu1 }
 0x16c   :  { %1173 = vst [vmem:[#allocation10] sm:$0xff] %v1256_v0  ;;  %v1257_v7 = vpack.c.bf16 %v920_v1, %v919_v63  ;;  %v503_v8 = vadd.f32 %v502_v6, %v309_v5  ;;  %v504_v31 = vpop.f32.mrb[6].mxu0  ;;  %v313_v11 = vpop.f32.mrb[7].mxu1 }
 0x16d   :  { %v845_v9 = vmul.f32 %v694_v62, %v501_v4  ;;  %v505_v10 = vadd.f32 %v504_v31, %v311_v30  ;;  %v506_v12 = vpop.f32.mrb[7].mxu0  ;;  %v719_v1 = vpop.permute.xlu1 %718 }
 0x16e   :  { %1174 = vst [vmem:[#allocation10 + $0x8] sm:$0xff] %v1257_v7  ;;  %v846_v14 = vmul.f32 %v694_v62, %v503_v8  ;;  %v507_v15 = vadd.f32 %v506_v12, %v313_v11  ;;  %v724_v8 = vpop.permute.xlu0 %723 }
 0x16f   :  { %v921_v16 = vmul.f32 %v1580_v45, %v845_v9  ;;  %v847_v17 = vmul.f32 %v699_v13, %v505_v10 }
 0x170   :  { %v922_v18 = vmul.f32 %v1582_v49, %v846_v14  ;;  %v848_v19 = vmul.f32 %v699_v13, %v507_v15 }
 0x171   :  { %v923_v20 = vmul.f32 %v1580_v45, %v847_v17  ;;  %v317_v24 = vpop.f32.mrb[8].mxu1 }
 0x172   :  { %v1258_v22 = vpack.c.bf16 %v922_v18, %v921_v16  ;;  %v924_v23 = vmul.f32 %v1582_v49, %v848_v19  ;;  %v510_v25 = vpop.f32.mrb[8].mxu0  ;;  %v319_v27 = vpop.f32.mrb[9].mxu1 }
 0x173   :  { %v511_v26 = vadd.f32 %v510_v25, %v317_v24  ;;  %v512_v28 = vpop.f32.mrb[9].mxu0  ;;  %v321_v33 = vpop.f32.mrb[10].mxu1 }
 0x174   :  { %1175 = vst [vmem:[#allocation10 + $0x10] sm:$0xff] %v1258_v22  ;;  %v1259_v29 = vpack.c.bf16 %v924_v23, %v923_v20  ;;  %v513_v32 = vadd.f32 %v512_v28, %v319_v27  ;;  %v514_v34 = vpop.f32.mrb[10].mxu0  ;;  %v323_v37 = vpop.f32.mrb[11].mxu1 }
 0x175   :  { %v849_v35 = vmul.f32 %v704_v21, %v511_v26  ;;  %v515_v36 = vadd.f32 %v514_v34, %v321_v33  ;;  %v516_v38 = vpop.f32.mrb[11].mxu0  ;;  %v729_v23 = vpop.permute.xlu1 %728 }
 0x176   :  { %1176 = vst [vmem:[#allocation10 + $0x18] sm:$0xff] %v1259_v29  ;;  %v850_v40 = vmul.f32 %v704_v21, %v513_v32  ;;  %v517_v41 = vadd.f32 %v516_v38, %v323_v37  ;;  %v734_v32 = vpop.permute.xlu0 %733 }
 0x177   :  { %v925_v42 = vmul.f32 %v1580_v45, %v849_v35  ;;  %v851_v43 = vmul.f32 %v709_v39, %v515_v36 }
 0x178   :  { %v926_v44 = vmul.f32 %v1582_v49, %v850_v40  ;;  %v852_v46 = vmul.f32 %v709_v39, %v517_v41 }
 0x179   :  { %v927_v48 = vmul.f32 %v1580_v45, %v851_v43  ;;  %v327_v52 = vpop.f32.mrb[12].mxu1 }
 0x17a   :  { %v1260_v50 = vpack.c.bf16 %v926_v44, %v925_v42  ;;  %v928_v51 = vmul.f32 %v1582_v49, %v852_v46  ;;  %v520_v53 = vpop.f32.mrb[12].mxu0  ;;  %v329_v55 = vpop.f32.mrb[13].mxu1 }
 0x17b   :  { %v521_v54 = vadd.f32 %v520_v53, %v327_v52  ;;  %v522_v56 = vpop.f32.mrb[13].mxu0  ;;  %v331_v59 = vpop.f32.mrb[14].mxu1 }
 0x17c   :  { %1177 = vst [vmem:[#allocation10 + $0x20] sm:$0xff] %v1260_v50  ;;  %v1261_v57 = vpack.c.bf16 %v928_v51, %v927_v48  ;;  %v523_v58 = vadd.f32 %v522_v56, %v329_v55  ;;  %v524_v60 = vpop.f32.mrb[14].mxu0  ;;  %v333_v63 = vpop.f32.mrb[15].mxu1 }
 0x17d   :  { %v853_v61 = vmul.f32 %v714_v47, %v521_v54  ;;  %v525_v62 = vadd.f32 %v524_v60, %v331_v59  ;;  %v526_v0 = vpop.f32.mrb[15].mxu0  ;;  %v739_v51 = vpop.permute.xlu1 %738 }
 0x17e   :  { %1178 = vst [vmem:[#allocation10 + $0x28] sm:$0xff] %v1261_v57  ;;  %v854_v2 = vmul.f32 %v714_v47, %v523_v58  ;;  %v527_v3 = vadd.f32 %v526_v0, %v333_v63  ;;  %v744_v58 = vpop.permute.xlu0 %743 }
 0x17f   :  { %v929_v4 = vmul.f32 %v1580_v45, %v853_v61  ;;  %v855_v5 = vmul.f32 %v719_v1, %v525_v62 }
 0x180   :  { %v930_v6 = vmul.f32 %v1582_v49, %v854_v2  ;;  %v856_v7 = vmul.f32 %v719_v1, %v527_v3 }
 0x181   :  { %v931_v30 = vmul.f32 %v1580_v45, %v855_v5  ;;  %v337_v10 = vpop.f32.mrb[16].mxu1 }
 0x182   :  { %v1262_v31 = vpack.c.bf16 %v930_v6, %v929_v4  ;;  %v932_v9 = vmul.f32 %v1582_v49, %v856_v7  ;;  %v530_v11 = vpop.f32.mrb[16].mxu0  ;;  %v339_v13 = vpop.f32.mrb[17].mxu1 }
 0x183   :  { %v531_v12 = vadd.f32 %v530_v11, %v337_v10  ;;  %v532_v14 = vpop.f32.mrb[17].mxu0  ;;  %v341_v17 = vpop.f32.mrb[18].mxu1 }
 0x184   :  { %1179 = vst [vmem:[#allocation10 + $0x30] sm:$0xff] %v1262_v31  ;;  %v1263_v15 = vpack.c.bf16 %v932_v9, %v931_v30  ;;  %v533_v16 = vadd.f32 %v532_v14, %v339_v13  ;;  %v534_v18 = vpop.f32.mrb[18].mxu0  ;;  %v343_v21 = vpop.f32.mrb[19].mxu1 }
 0x185   :  { %v857_v19 = vmul.f32 %v724_v8, %v531_v12  ;;  %v535_v20 = vadd.f32 %v534_v18, %v341_v17  ;;  %v536_v22 = vpop.f32.mrb[19].mxu0  ;;  %v749_v9 = vpop.permute.xlu1 %748 }
 0x186   :  { %1180 = vst [vmem:[#allocation10 + $0x38] sm:$0xff] %v1263_v15  ;;  %v858_v24 = vmul.f32 %v724_v8, %v533_v16  ;;  %v537_v25 = vadd.f32 %v536_v22, %v343_v21  ;;  %v754_v16 = vpop.permute.xlu0 %753 }
 0x187   :  { %v933_v26 = vmul.f32 %v1580_v45, %v857_v19  ;;  %v859_v27 = vmul.f32 %v729_v23, %v535_v20 }
 0x188   :  { %v934_v28 = vmul.f32 %v1582_v49, %v858_v24  ;;  %v860_v29 = vmul.f32 %v729_v23, %v537_v25 }
 0x189   :  { %v935_v33 = vmul.f32 %v1580_v45, %v859_v27  ;;  %v347_v36 = vpop.f32.mrb[20].mxu1 }
 0x18a   :  { %v1264_v34 = vpack.c.bf16 %v934_v28, %v933_v26  ;;  %v936_v35 = vmul.f32 %v1582_v49, %v860_v29  ;;  %v540_v37 = vpop.f32.mrb[20].mxu0  ;;  %v349_v39 = vpop.f32.mrb[21].mxu1 }
 0x18b   :  { %v541_v38 = vadd.f32 %v540_v37, %v347_v36  ;;  %v542_v40 = vpop.f32.mrb[21].mxu0  ;;  %v351_v43 = vpop.f32.mrb[22].mxu1 }
 0x18c   :  { %1181 = vst [vmem:[#allocation10 + $0x40] sm:$0xff] %v1264_v34  ;;  %v1265_v41 = vpack.c.bf16 %v936_v35, %v935_v33  ;;  %v543_v42 = vadd.f32 %v542_v40, %v349_v39  ;;  %v544_v44 = vpop.f32.mrb[22].mxu0  ;;  %v353_v48 = vpop.f32.mrb[23].mxu1 }
 0x18d   :  { %v861_v46 = vmul.f32 %v734_v32, %v541_v38  ;;  %v545_v47 = vadd.f32 %v544_v44, %v351_v43  ;;  %v546_v50 = vpop.f32.mrb[23].mxu0  ;;  %v759_v35 = vpop.permute.xlu1 %758 }
 0x18e   :  { %1182 = vst [vmem:[#allocation10 + $0x48] sm:$0xff] %v1265_v41  ;;  %v862_v52 = vmul.f32 %v734_v32, %v543_v42  ;;  %v547_v53 = vadd.f32 %v546_v50, %v353_v48  ;;  %v764_v42 = vpop.permute.xlu0 %763 }
 0x18f   :  { %v937_v54 = vmul.f32 %v1580_v45, %v861_v46  ;;  %v863_v55 = vmul.f32 %v739_v51, %v545_v47 }
 0x190   :  { %v938_v56 = vmul.f32 %v1582_v49, %v862_v52  ;;  %v864_v57 = vmul.f32 %v739_v51, %v547_v53 }
 0x191   :  { %v939_v59 = vmul.f32 %v1580_v45, %v863_v55  ;;  %v357_v62 = vpop.f32.mrb[24].mxu1 }
 0x192   :  { %v1266_v60 = vpack.c.bf16 %v938_v56, %v937_v54  ;;  %v940_v61 = vmul.f32 %v1582_v49, %v864_v57  ;;  %v550_v63 = vpop.f32.mrb[24].mxu0  ;;  %v359_v1 = vpop.f32.mrb[25].mxu1 }
 0x193   :  { %v551_v0 = vadd.f32 %v550_v63, %v357_v62  ;;  %v552_v2 = vpop.f32.mrb[25].mxu0  ;;  %v361_v5 = vpop.f32.mrb[26].mxu1 }
 0x194   :  { %1183 = vst [vmem:[#allocation10 + $0x50] sm:$0xff] %v1266_v60  ;;  %v1267_v3 = vpack.c.bf16 %v940_v61, %v939_v59  ;;  %v553_v4 = vadd.f32 %v552_v2, %v359_v1  ;;  %v554_v6 = vpop.f32.mrb[26].mxu0  ;;  %v363_v30 = vpop.f32.mrb[27].mxu1 }
 0x195   :  { %v865_v7 = vmul.f32 %v744_v58, %v551_v0  ;;  %v555_v8 = vadd.f32 %v554_v6, %v361_v5  ;;  %v556_v31 = vpop.f32.mrb[27].mxu0  ;;  %v769_v61 = vpop.permute.xlu1 %768 }
 0x196   :  { %1184 = vst [vmem:[#allocation10 + $0x58] sm:$0xff] %v1267_v3  ;;  %v866_v10 = vmul.f32 %v744_v58, %v553_v4  ;;  %v557_v11 = vadd.f32 %v556_v31, %v363_v30  ;;  %v774_v4 = vpop.permute.xlu0 %773 }
 0x197   :  { %v941_v12 = vmul.f32 %v1580_v45, %v865_v7  ;;  %v867_v13 = vmul.f32 %v749_v9, %v555_v8 }
 0x198   :  { %v942_v14 = vmul.f32 %v1582_v49, %v866_v10  ;;  %v868_v15 = vmul.f32 %v749_v9, %v557_v11 }
 0x199   :  { %v943_v17 = vmul.f32 %v1580_v45, %v867_v13  ;;  %v367_v20 = vpop.f32.mrb[28].mxu1 }
 0x19a   :  { %v1268_v18 = vpack.c.bf16 %v942_v14, %v941_v12  ;;  %v944_v19 = vmul.f32 %v1582_v49, %v868_v15  ;;  %v560_v21 = vpop.f32.mrb[28].mxu0  ;;  %v369_v23 = vpop.f32.mrb[29].mxu1 }
 0x19b   :  { %v561_v22 = vadd.f32 %v560_v21, %v367_v20  ;;  %v562_v24 = vpop.f32.mrb[29].mxu0  ;;  %v371_v27 = vpop.f32.mrb[30].mxu1 }
 0x19c   :  { %1185 = vst [vmem:[#allocation10 + $0x60] sm:$0xff] %v1268_v18  ;;  %v1269_v25 = vpack.c.bf16 %v944_v19, %v943_v17  ;;  %v563_v26 = vadd.f32 %v562_v24, %v369_v23  ;;  %v564_v28 = vpop.f32.mrb[30].mxu0  ;;  %v373_v33 = vpop.f32.mrb[31].mxu1 }
 0x19d   :  { %v869_v29 = vmul.f32 %v754_v16, %v561_v22  ;;  %v565_v32 = vadd.f32 %v564_v28, %v371_v27  ;;  %v566_v34 = vpop.f32.mrb[31].mxu0  ;;  %v779_v19 = vpop.permute.xlu1 %778 }
 0x19e   :  { %1186 = vst [vmem:[#allocation10 + $0x68] sm:$0xff] %v1269_v25  ;;  %v870_v36 = vmul.f32 %v754_v16, %v563_v26  ;;  %v567_v37 = vadd.f32 %v566_v34, %v373_v33  ;;  %v784_v26 = vpop.permute.xlu0 %783 }
 0x19f   :  { %v945_v38 = vmul.f32 %v1580_v45, %v869_v29  ;;  %v871_v39 = vmul.f32 %v759_v35, %v565_v32 }
 0x1a0   :  { %v946_v40 = vmul.f32 %v1582_v49, %v870_v36  ;;  %v872_v41 = vmul.f32 %v759_v35, %v567_v37 }
 0x1a1   :  { %v947_v43 = vmul.f32 %v1580_v45, %v871_v39  ;;  %v377_v47 = vpop.f32.mrb[32].mxu1 }
 0x1a2   :  { %v1270_v44 = vpack.c.bf16 %v946_v40, %v945_v38  ;;  %v948_v46 = vmul.f32 %v1582_v49, %v872_v41  ;;  %v570_v48 = vpop.f32.mrb[32].mxu0  ;;  %v379_v51 = vpop.f32.mrb[33].mxu1 }
 0x1a3   :  { %v571_v50 = vadd.f32 %v570_v48, %v377_v47  ;;  %v572_v52 = vpop.f32.mrb[33].mxu0  ;;  %v381_v55 = vpop.f32.mrb[34].mxu1 }
 0x1a4   :  { %1187 = vst [vmem:[#allocation10 + $0x70] sm:$0xff] %v1270_v44  ;;  %v1271_v53 = vpack.c.bf16 %v948_v46, %v947_v43  ;;  %v573_v54 = vadd.f32 %v572_v52, %v379_v51  ;;  %v574_v56 = vpop.f32.mrb[34].mxu0  ;;  %v383_v59 = vpop.f32.mrb[35].mxu1 }
 0x1a5   :  { %v873_v57 = vmul.f32 %v764_v42, %v571_v50  ;;  %v575_v58 = vadd.f32 %v574_v56, %v381_v55  ;;  %v576_v60 = vpop.f32.mrb[35].mxu0  ;;  %v789_v46 = vpop.permute.xlu1 %788 }
 0x1a6   :  { %1188 = vst [vmem:[#allocation10 + $0x78] sm:$0xff] %v1271_v53  ;;  %v874_v62 = vmul.f32 %v764_v42, %v573_v54  ;;  %v577_v63 = vadd.f32 %v576_v60, %v383_v59  ;;  %v794_v54 = vpop.permute.xlu0 %793 }
 0x1a7   :  { %v949_v0 = vmul.f32 %v1580_v45, %v873_v57  ;;  %v875_v1 = vmul.f32 %v769_v61, %v575_v58 }
 0x1a8   :  { %v950_v2 = vmul.f32 %v1582_v49, %v874_v62  ;;  %v876_v3 = vmul.f32 %v769_v61, %v577_v63 }
 0x1a9   :  { %v951_v5 = vmul.f32 %v1580_v45, %v875_v1  ;;  %v387_v8 = vpop.f32.mrb[36].mxu1 }
 0x1aa   :  { %v1272_v6 = vpack.c.bf16 %v950_v2, %v949_v0  ;;  %v952_v7 = vmul.f32 %v1582_v49, %v876_v3  ;;  %v580_v30 = vpop.f32.mrb[36].mxu0  ;;  %v389_v9 = vpop.f32.mrb[37].mxu1 }
 0x1ab   :  { %v581_v31 = vadd.f32 %v580_v30, %v387_v8  ;;  %v582_v10 = vpop.f32.mrb[37].mxu0  ;;  %v391_v13 = vpop.f32.mrb[38].mxu1 }
 0x1ac   :  { %1189 = vst [vmem:[#allocation10 + $0x80] sm:$0xff] %v1272_v6  ;;  %v1273_v11 = vpack.c.bf16 %v952_v7, %v951_v5  ;;  %v583_v12 = vadd.f32 %v582_v10, %v389_v9  ;;  %v584_v14 = vpop.f32.mrb[38].mxu0  ;;  %v393_v17 = vpop.f32.mrb[39].mxu1 }
 0x1ad   :  { %v877_v15 = vmul.f32 %v774_v4, %v581_v31  ;;  %v585_v16 = vadd.f32 %v584_v14, %v391_v13  ;;  %v586_v18 = vpop.f32.mrb[39].mxu0  ;;  %v799_v7 = vpop.permute.xlu1 %798 }
 0x1ae   :  { %1190 = vst [vmem:[#allocation10 + $0x88] sm:$0xff] %v1273_v11  ;;  %v878_v20 = vmul.f32 %v774_v4, %v583_v12  ;;  %v587_v21 = vadd.f32 %v586_v18, %v393_v17  ;;  %v804_v12 = vpop.permute.xlu0 %803 }
 0x1af   :  { %v953_v22 = vmul.f32 %v1580_v45, %v877_v15  ;;  %v879_v23 = vmul.f32 %v779_v19, %v585_v16 }
 0x1b0   :  { %v954_v24 = vmul.f32 %v1582_v49, %v878_v20  ;;  %v880_v25 = vmul.f32 %v779_v19, %v587_v21 }
 0x1b1   :  { %v955_v27 = vmul.f32 %v1580_v45, %v879_v23  ;;  %v397_v32 = vpop.f32.mrb[40].mxu1 }
 0x1b2   :  { %v1274_v28 = vpack.c.bf16 %v954_v24, %v953_v22  ;;  %v956_v29 = vmul.f32 %v1582_v49, %v880_v25  ;;  %v590_v33 = vpop.f32.mrb[40].mxu0  ;;  %v399_v35 = vpop.f32.mrb[41].mxu1 }
 0x1b3   :  { %v591_v34 = vadd.f32 %v590_v33, %v397_v32  ;;  %v592_v36 = vpop.f32.mrb[41].mxu0  ;;  %v401_v39 = vpop.f32.mrb[42].mxu1 }
 0x1b4   :  { %1191 = vst [vmem:[#allocation10 + $0x90] sm:$0xff] %v1274_v28  ;;  %v1275_v37 = vpack.c.bf16 %v956_v29, %v955_v27  ;;  %v593_v38 = vadd.f32 %v592_v36, %v399_v35  ;;  %v594_v40 = vpop.f32.mrb[42].mxu0  ;;  %v403_v43 = vpop.f32.mrb[43].mxu1 }
 0x1b5   :  { %v881_v41 = vmul.f32 %v784_v26, %v591_v34  ;;  %v595_v42 = vadd.f32 %v594_v40, %v401_v39  ;;  %v596_v44 = vpop.f32.mrb[43].mxu0  ;;  %v809_v29 = vpop.permute.xlu1 %808 }
 0x1b6   :  { %1192 = vst [vmem:[#allocation10 + $0x98] sm:$0xff] %v1275_v37  ;;  %v882_v47 = vmul.f32 %v784_v26, %v593_v38  ;;  %v597_v48 = vadd.f32 %v596_v44, %v403_v43  ;;  %v814_v38 = vpop.permute.xlu0 %813 }
 0x1b7   :  { %v957_v50 = vmul.f32 %v1580_v45, %v881_v41  ;;  %v883_v51 = vmul.f32 %v789_v46, %v595_v42 }
 0x1b8   :  { %v958_v52 = vmul.f32 %v1582_v49, %v882_v47  ;;  %v884_v53 = vmul.f32 %v789_v46, %v597_v48 }
 0x1b9   :  { %v959_v55 = vmul.f32 %v1580_v45, %v883_v51  ;;  %v407_v58 = vpop.f32.mrb[44].mxu1 }
 0x1ba   :  { %v1276_v56 = vpack.c.bf16 %v958_v52, %v957_v50  ;;  %v960_v57 = vmul.f32 %v1582_v49, %v884_v53  ;;  %v600_v59 = vpop.f32.mrb[44].mxu0  ;;  %v409_v61 = vpop.f32.mrb[45].mxu1 }
 0x1bb   :  { %v601_v60 = vadd.f32 %v600_v59, %v407_v58  ;;  %v602_v62 = vpop.f32.mrb[45].mxu0  ;;  %v411_v1 = vpop.f32.mrb[46].mxu1 }
 0x1bc   :  { %1193 = vst [vmem:[#allocation10 + $0xa0] sm:$0xff] %v1276_v56  ;;  %v1277_v63 = vpack.c.bf16 %v960_v57, %v959_v55  ;;  %v603_v0 = vadd.f32 %v602_v62, %v409_v61  ;;  %v604_v2 = vpop.f32.mrb[46].mxu0  ;;  %v413_v5 = vpop.f32.mrb[47].mxu1 }
 0x1bd   :  { %v885_v3 = vmul.f32 %v794_v54, %v601_v60  ;;  %v605_v4 = vadd.f32 %v604_v2, %v411_v1  ;;  %v606_v6 = vpop.f32.mrb[47].mxu0  ;;  %v819_v57 = vpop.permute.xlu1 %818 }
 0x1be   :  { %1194 = vst [vmem:[#allocation10 + $0xa8] sm:$0xff] %v1277_v63  ;;  %v886_v8 = vmul.f32 %v794_v54, %v603_v0  ;;  %v607_v30 = vadd.f32 %v606_v6, %v413_v5  ;;  %v824_v0 = vpop.permute.xlu0 %823 }
 0x1bf   :  { %v961_v31 = vmul.f32 %v1580_v45, %v885_v3  ;;  %v887_v9 = vmul.f32 %v799_v7, %v605_v4 }
 0x1c0   :  { %v962_v10 = vmul.f32 %v1582_v49, %v886_v8  ;;  %v888_v11 = vmul.f32 %v799_v7, %v607_v30 }
 0x1c1   :  { %v963_v13 = vmul.f32 %v1580_v45, %v887_v9  ;;  %v417_v16 = vpop.f32.mrb[48].mxu1 }
 0x1c2   :  { %v1278_v14 = vpack.c.bf16 %v962_v10, %v961_v31  ;;  %v964_v15 = vmul.f32 %v1582_v49, %v888_v11  ;;  %v610_v17 = vpop.f32.mrb[48].mxu0  ;;  %v419_v19 = vpop.f32.mrb[49].mxu1 }
 0x1c3   :  { %v611_v18 = vadd.f32 %v610_v17, %v417_v16  ;;  %v612_v20 = vpop.f32.mrb[49].mxu0  ;;  %v421_v23 = vpop.f32.mrb[50].mxu1 }
 0x1c4   :  { %1195 = vst [vmem:[#allocation10 + $0xb0] sm:$0xff] %v1278_v14  ;;  %v1279_v21 = vpack.c.bf16 %v964_v15, %v963_v13  ;;  %v613_v22 = vadd.f32 %v612_v20, %v419_v19  ;;  %v614_v24 = vpop.f32.mrb[50].mxu0  ;;  %v423_v27 = vpop.f32.mrb[51].mxu1 }
 0x1c5   :  { %v889_v25 = vmul.f32 %v804_v12, %v611_v18  ;;  %v615_v26 = vadd.f32 %v614_v24, %v421_v23  ;;  %v616_v28 = vpop.f32.mrb[51].mxu0  ;;  %v829_v15 = vpop.permute.xlu1 %828 }
 0x1c6   :  { %1196 = vst [vmem:[#allocation10 + $0xb8] sm:$0xff] %v1279_v21  ;;  %v890_v32 = vmul.f32 %v804_v12, %v613_v22  ;;  %v617_v33 = vadd.f32 %v616_v28, %v423_v27  ;;  %v834_v22 = vpop.permute.xlu0 %833 }
 0x1c7   :  { %v965_v34 = vmul.f32 %v1580_v45, %v889_v25  ;;  %v891_v35 = vmul.f32 %v809_v29, %v615_v26 }
 0x1c8   :  { %v966_v36 = vmul.f32 %v1582_v49, %v890_v32  ;;  %v892_v37 = vmul.f32 %v809_v29, %v617_v33 }
 0x1c9   :  { %v967_v39 = vmul.f32 %v1580_v45, %v891_v35  ;;  %v427_v42 = vpop.f32.mrb[52].mxu1 }
 0x1ca   :  { %v1280_v40 = vpack.c.bf16 %v966_v36, %v965_v34  ;;  %v968_v41 = vmul.f32 %v1582_v49, %v892_v37  ;;  %v620_v43 = vpop.f32.mrb[52].mxu0  ;;  %v429_v46 = vpop.f32.mrb[53].mxu1 }
 0x1cb   :  { %v621_v44 = vadd.f32 %v620_v43, %v427_v42  ;;  %v622_v47 = vpop.f32.mrb[53].mxu0  ;;  %v431_v51 = vpop.f32.mrb[54].mxu1 }
 0x1cc   :  { %1197 = vst [vmem:[#allocation10 + $0xc0] sm:$0xff] %v1280_v40  ;;  %v1281_v48 = vpack.c.bf16 %v968_v41, %v967_v39  ;;  %v623_v50 = vadd.f32 %v622_v47, %v429_v46  ;;  %v624_v52 = vpop.f32.mrb[54].mxu0  ;;  %v433_v55 = vpop.f32.mrb[55].mxu1 }
 0x1cd   :  { %v893_v53 = vmul.f32 %v814_v38, %v621_v44  ;;  %v625_v54 = vadd.f32 %v624_v52, %v431_v51  ;;  %v626_v56 = vpop.f32.mrb[55].mxu0  ;;  %v839_v41 = vpop.permute.xlu1 %838 }
 0x1ce   :  { %1198 = vst [vmem:[#allocation10 + $0xc8] sm:$0xff] %v1281_v48  ;;  %v894_v58 = vmul.f32 %v814_v38, %v623_v50  ;;  %v627_v59 = vadd.f32 %v626_v56, %v433_v55 }
 0x1cf   :  { %v969_v60 = vmul.f32 %v1580_v45, %v893_v53  ;;  %v895_v61 = vmul.f32 %v819_v57, %v625_v54 }
 0x1d0   :  { %v970_v62 = vmul.f32 %v1582_v49, %v894_v58  ;;  %v896_v63 = vmul.f32 %v819_v57, %v627_v59 }
 0x1d1   :  { %v971_v1 = vmul.f32 %v1580_v45, %v895_v61  ;;  %v437_v4 = vpop.f32.mrb[56].mxu1 }
 0x1d2   :  { %v1282_v2 = vpack.c.bf16 %v970_v62, %v969_v60  ;;  %v972_v3 = vmul.f32 %v1582_v49, %v896_v63  ;;  %v630_v5 = vpop.f32.mrb[56].mxu0  ;;  %v439_v7 = vpop.f32.mrb[57].mxu1 }
 0x1d3   :  { %v631_v6 = vadd.f32 %v630_v5, %v437_v4  ;;  %v632_v8 = vpop.f32.mrb[57].mxu0  ;;  %v441_v9 = vpop.f32.mrb[58].mxu1 }
 0x1d4   :  { %1199 = vst [vmem:[#allocation10 + $0xd0] sm:$0xff] %v1282_v2  ;;  %v1283_v30 = vpack.c.bf16 %v972_v3, %v971_v1  ;;  %v633_v31 = vadd.f32 %v632_v8, %v439_v7  ;;  %v634_v10 = vpop.f32.mrb[58].mxu0  ;;  %v443_v13 = vpop.f32.mrb[59].mxu1 }
 0x1d5   :  { %v897_v11 = vmul.f32 %v824_v0, %v631_v6  ;;  %v635_v12 = vadd.f32 %v634_v10, %v441_v9  ;;  %v636_v14 = vpop.f32.mrb[59].mxu0 }
 0x1d6   :  { %1200 = vst [vmem:[#allocation10 + $0xd8] sm:$0xff] %v1283_v30  ;;  %v898_v16 = vmul.f32 %v824_v0, %v633_v31  ;;  %v637_v17 = vadd.f32 %v636_v14, %v443_v13 }
 0x1d7   :  { %v973_v18 = vmul.f32 %v1580_v45, %v897_v11  ;;  %v899_v19 = vmul.f32 %v829_v15, %v635_v12 }
 0x1d8   :  { %v974_v20 = vmul.f32 %v1582_v49, %v898_v16  ;;  %v900_v21 = vmul.f32 %v829_v15, %v637_v17 }
 0x1d9   :  { %v975_v23 = vmul.f32 %v1580_v45, %v899_v19  ;;  %v447_v26 = vpop.f32.mrb[60].mxu1 }
 0x1da   :  { %v1284_v24 = vpack.c.bf16 %v974_v20, %v973_v18  ;;  %v976_v25 = vmul.f32 %v1582_v49, %v900_v21  ;;  %v640_v27 = vpop.f32.mrb[60].mxu0  ;;  %v449_v29 = vpop.f32.mrb[61].mxu1 }
 0x1db   :  { %v641_v28 = vadd.f32 %v640_v27, %v447_v26  ;;  %v642_v32 = vpop.f32.mrb[61].mxu0  ;;  %v451_v35 = vpop.f32.mrb[62].mxu1 }
 0x1dc   :  { %1201 = vst [vmem:[#allocation10 + $0xe0] sm:$0xff] %v1284_v24  ;;  %v1285_v33 = vpack.c.bf16 %v976_v25, %v975_v23  ;;  %v643_v34 = vadd.f32 %v642_v32, %v449_v29  ;;  %v644_v36 = vpop.f32.mrb[62].mxu0  ;;  %v453_v39 = vpop.f32.mrb[63].mxu1 }
 0x1dd   :  { %v901_v37 = vmul.f32 %v834_v22, %v641_v28  ;;  %v645_v38 = vadd.f32 %v644_v36, %v451_v35  ;;  %v646_v40 = vpop.f32.mrb[63].mxu0 }
 0x1de   :  { %1202 = vst [vmem:[#allocation10 + $0xe8] sm:$0xff] %v1285_v33  ;;  %v902_v42 = vmul.f32 %v834_v22, %v643_v34  ;;  %v647_v43 = vadd.f32 %v646_v40, %v453_v39 }
 0x1df   :  { %v977_v44 = vmul.f32 %v1580_v45, %v901_v37  ;;  %v903_v46 = vmul.f32 %v839_v41, %v645_v38 }
 0x1e0   :  { %v978_v47 = vmul.f32 %v1582_v49, %v902_v42  ;;  %v904_v48 = vmul.f32 %v839_v41, %v647_v43 }
 0x1e1   :  { %v979_v50 = vmul.f32 %v1580_v45, %v903_v46 }
 0x1e2   :  { %v1286_v51 = vpack.c.bf16 %v978_v47, %v977_v44  ;;  %v980_v52 = vmul.f32 %v1582_v49, %v904_v48 }
 0x1e4   :  { %1203 = vst [vmem:[#allocation10 + $0xf0] sm:$0xff] %v1286_v51  ;;  %v1287_v53 = vpack.c.bf16 %v980_v52, %v979_v50 }
 0x1e6   :  { %1204 = vst [vmem:[#allocation10 + $0xf8] sm:$0xff] %v1287_v53 }
 0x1e7   :  { %1465 = shalt.err (!%p1462_p8)
}
 0x1e8   :  { %s1466_s17 = scalar_lea.hbm %s1667_s4, 4096 }
 0x1e9   :  { %p1467_p9 = scmp.ne.s32.totalorder %s1667_s4, %s1466_s17  ;;  %p1470_p10 = scmp.lt.u32.totalorder %s1466_s17, %s1667_s4 }
 0x1eb   :  { %p1472_p11 = pnand %p1470_p10, %p1467_p9 }
 0x1ed   :  { %1475 = shalt.err (!%p1472_p11)
}
 0x1ee   :  { %1216 = dma.vmem_to_hbm [thread:$0]  %s1211_s13, 4096, %s1667_s4, [#allocation4], %s1491_s0, %s1491_s0, %s1492_s26  }
 0x1ef   :  { %1482 = dma.done.wait [#allocation4], 4096  }
 0x1f0   :  { %1483 = vsyncadd [#allocation4], 4294963200 }
 0x1f1   :  { %1220 = vsyncpa [#allocation3], 1 }
 0x1f2   :  { %1221 = vsyncpa [#allocation6], 1 }
 0x1f3   :  { %1222 = vsyncpa [#allocation9], 1 }
 0x1f4   :  { %1223 = vsyncpa [#allocation4], 1 }

</bundles_post_ra>
